<compile_context>
chip_gen: v6e
topology: v6e:2x2x1
jax: 0.10.0
libtpu: 0.0.40
codegen_flags: <defaults>
</compile_context>

<pallas_src>
import jax
import jax.numpy as jnp
import numpy as np
from jax.experimental import pallas as pl
from jax.experimental.pallas import tpu as pltpu

# ----- small deterministic config (mirrors cfg.MODEL.*) -----
VOCAB_SIZE = 50
CWS_SIZE = 8
TAGS_SIZE = 10
EMBEDDING_DIM = 16
PRETRAINED_DIM = 16
HIDDEN_DIM = 16          # per-direction hidden size (PyTorch hidden_size)
NUM_LAYERS = 2
LN_EPS = 1e-5

assert HIDDEN_DIM & (HIDDEN_DIM - 1) == 0, "lane-mask trick assumes power-of-two H"


# ---------------- weight packing for the fused fwd+bwd kernel ----------------

def _interleave_gates(w_f, w_b):
    """Pack per-direction gate blocks [i|f|g|o] (each H wide) into the
    interleaved layout [i_f|i_b|f_f|f_b|g_f|g_b|o_f|o_b] (width 8H = 128)."""
    H = HIDDEN_DIM
    parts = []
    for g in range(4):
        parts.append(w_f[..., g * H:(g + 1) * H])
        parts.append(w_b[..., g * H:(g + 1) * H])
    return jnp.concatenate(parts, axis=-1)


def _pack_recurrent(whh_f, whh_b):
    """Block-diagonal recurrent weight (2H, 8H): rows [0:H) act on h_fwd and feed
    only the forward gate columns; rows [H:2H) act on h_bwd / backward columns."""
    z = jnp.zeros_like(whh_f)
    top = _interleave_gates(whh_f, z)
    bot = _interleave_gates(z, whh_b)
    return jnp.concatenate([top, bot], axis=0)


# ---------------- the fused Pallas kernel ----------------

def _make_fused_kernel(num_layers):
    H = HIDDEN_DIM
    E = EMBEDDING_DIM
    G = 8 * H        # fused fwd+bwd gate width (= 128 lanes for H = 16)

    def kernel(*refs):
        (char_ref, cws_ref, w2v_ref, mask_ref, ln1g_ref, ln1b_ref) = refs[:6]
        lstm_refs = refs[6:6 + 3 * num_layers]
        (ln2g_ref, ln2b_ref, lin1w_ref, lin1b_ref,
         lin2w_ref, lin2b_ref, tagadd_ref) = refs[6 + 3 * num_layers:13 + 3 * num_layers]
        out_ref = refs[13 + 3 * num_layers]
        xw_scr, seq_scr = refs[14 + 3 * num_layers:]

        B = tagadd_ref.shape[0]          # padded batch (multiple of 8)
        T = char_ref.shape[0] // B       # sequence length (rows are t-major)
        f32 = jnp.float32

        def layer_norm(x, g, b):
            mu = jnp.mean(x, axis=-1, keepdims=True)
            var = jnp.mean((x - mu) ** 2, axis=-1, keepdims=True)
            return (x - mu) * jax.lax.rsqrt(var + LN_EPS) * g + b

        def sigmoid(x):                   # hand-rolled: exp/div lower cleanly on EUP/VPU
            return 1.0 / (1.0 + jnp.exp(-x))

        # ---- embedding LayerNorm (dropout_embedding = identity, eval mode) ----
        char_n = layer_norm(char_ref[...], ln1g_ref[...], ln1b_ref[...])
        cws_n = layer_norm(cws_ref[...], ln1g_ref[...], ln1b_ref[...])

        # ---- layer-0 input-gate terms for ALL timesteps at once.
        # feats = [char_n | word2vecs | cws_n]; contracting each block against the
        # matching row block of the packed W_ih avoids materialising the concat.
        wih0 = lstm_refs[0]
        xw_scr[...] = (
            jnp.dot(char_n, wih0[0:E, :], preferred_element_type=f32)
            + jnp.dot(w2v_ref[...], wih0[E:2 * E, :], preferred_element_type=f32)
            + jnp.dot(cws_n, wih0[2 * E:3 * E, :], preferred_element_type=f32))

        # lane masks, hoisted once (JAX does not CSE broadcasts)
        gate_lane = jax.lax.broadcasted_iota(jnp.int32, (B, G), 1)
        fwd_gate_lane = (gate_lane & H) == 0            # forward gate columns
        state_lane = jax.lax.broadcasted_iota(jnp.int32, (B, 2 * H), 1)
        fwd_state_lane = state_lane < H                 # fwd half of [h_f|h_b]

        def run_layer(whh, bias):
            """Fused fwd+bwd recurrence, fully unrolled (T is static), one 128-lane
            gate matmul per step. Reads input-gate terms from xw_scr, writes the
            per-timestep [h_fwd | h_bwd] outputs into seq_scr."""
            h = jnp.zeros((B, 2 * H), f32)              # [h_fwd | h_bwd]
            c = jnp.zeros((B, 2 * H), f32)
            for s in range(T):
                rs = T - 1 - s                          # backward-direction time index
                rf, rb = s * B, rs * B
                m_f = mask_ref[rf:rf + B, :]            # (B,1) validity at time s
                m_b = mask_ref[rb:rb + B, :]            # (B,1) validity at time rs
                gx = jnp.where(fwd_gate_lane,
                               xw_scr[rf:rf + B, :], xw_scr[rb:rb + B, :])
                gates = gx + jnp.dot(h, whh, preferred_element_type=f32) + bias
                i = sigmoid(gates[:, 0:2 * H])
                f = sigmoid(gates[:, 2 * H:4 * H])
                g = jnp.tanh(gates[:, 4 * H:6 * H])
                o = sigmoid(gates[:, 6 * H:8 * H])
                c_new = f * c + i * g
                h_new = o * jnp.tanh(c_new)
                # pack_padded_sequence semantics: padded steps never update state.
                m = jnp.where(fwd_state_lane, m_f, m_b)
                h = m * h_new + (1.0 - m) * h
                c = m * c_new + (1.0 - m) * c
                seq_scr[rf:rf + B, 0:H] = h[:, 0:H]           # fwd output @ time s
                seq_scr[rb:rb + B, H:2 * H] = h[:, H:2 * H]   # bwd output @ time rs

        # ---- layer 0 ----
        run_layer(lstm_refs[1][...], lstm_refs[2][...])
        # ---- layers 1..L-1 (inter-layer LSTM dropout = identity, eval mode) ----
        for l in range(1, num_layers):
            wih = lstm_refs[3 * l]
            whh = lstm_refs[3 * l + 1]
            b = lstm_refs[3 * l + 2]
            xw_scr[...] = jnp.dot(seq_scr[...], wih[...], preferred_element_type=f32)
            run_layer(whh[...], b[...])

        # ---- head: LayerNorm_2 -> Linear(2H,4H) -> ReLU -> hidden2tag ----
        # TODO(synk): dropout_blstm / dropout_linear are identity (eval-mode).
        y = layer_norm(seq_scr[...], ln2g_ref[...], ln2b_ref[...])
        h1 = jnp.maximum(
            jnp.dot(y, lin1w_ref[...], preferred_element_type=f32) + lin1b_ref[...], 0.0)
        logits = jnp.dot(h1, lin2w_ref[...], preferred_element_type=f32) + lin2b_ref[...]
        # pad_packed_sequence zero-fills padded steps of the logits, then the tag
        # mask is added: valid*logits + (1-mask)*-1e5  (identical to PyTorch).
        tag_add = tagadd_ref[...]                       # (B, tags), broadcast over T
        for t in range(T):
            r0 = t * B
            out_ref[r0:r0 + B, :] = (
                mask_ref[r0:r0 + B, :] * logits[r0:r0 + B, :] + tag_add)

    return kernel


# ---------------- parameters ----------------

def init_params(key):
    H, E, P = HIDDEN_DIM, EMBEDDING_DIM, PRETRAINED_DIM
    d0 = 2 * E + P
    keys = iter(jax.random.split(key, 64))

    def rnd(shape, scale=0.1):
        return (scale * jax.random.normal(next(keys), shape)).astype(jnp.float32)

    p = {
        "word_emb": rnd((VOCAB_SIZE, E), 1.0),
        "cws_emb": rnd((CWS_SIZE, E), 1.0),
        "ln1_g": jnp.ones((1, E), jnp.float32),
        "ln1_b": jnp.zeros((1, E), jnp.float32),
        "ln2_g": jnp.ones((1, 2 * H), jnp.float32),
        "ln2_b": jnp.zeros((1, 2 * H), jnp.float32),
        "lin1_w": rnd((2 * H, 4 * H)),      # nn.Linear(2H,4H).weight^T
        "lin1_b": rnd((1, 4 * H)),
        "lin2_w": rnd((4 * H, TAGS_SIZE)),  # hidden2tag.weight^T
        "lin2_b": rnd((1, TAGS_SIZE)),
        "lstm": [],       # packed weights consumed by the Pallas kernel
        "lstm_raw": [],   # per-direction weights for the pure-JAX reference
    }
    for l in range(NUM_LAYERS):
        din = d0 if l == 0 else 2 * H
        fwd = {"wih": rnd((din, 4 * H)), "whh": rnd((H, 4 * H)), "b": rnd((1, 4 * H))}
        bwd = {"wih": rnd((din, 4 * H)), "whh": rnd((H, 4 * H)), "b": rnd((1, 4 * H))}
        p["lstm_raw"].append({"fwd": fwd, "bwd": bwd})
        p["lstm"].append({
            "wih": _interleave_gates(fwd["wih"], bwd["wih"]),   # (din, 8H)
            "whh": _pack_recurrent(fwd["whh"], bwd["whh"]),     # (2H, 8H) block-diag
            "b": _interleave_gates(fwd["b"], bwd["b"]),         # (1, 8H) = b_ih+b_hh
        })
    return p


# ---------------- forward (single pallas_call) ----------------

def forward(params, char_ids, cws_ids, word2vecs, tag_mask, seq_lens):
    B0, T = char_ids.shape
    E, P, H = EMBEDDING_DIM, PRETRAINED_DIM, HIDDEN_DIM

    # Fill the sublanes: pad the batch to a multiple of 8 with empty (length-0)
    # sequences; padded rows are sliced off at the end.
    Bp = max(8, ((B0 + 7) // 8) * 8)
    pad = Bp - B0
    if pad:
        char_ids = jnp.pad(char_ids, ((0, pad), (0, 0)))
        cws_ids = jnp.pad(cws_ids, ((0, pad), (0, 0)))
        word2vecs = jnp.pad(word2vecs, ((0, pad), (0, 0), (0, 0)))
        tag_mask = jnp.pad(tag_mask, ((0, pad), (0, 0)), constant_values=1.0)
        seq_lens = jnp.pad(seq_lens, (0, pad))

    # Embedding gathers stay in XLA (no clean Pallas gather at this size).
    char_e = jnp.take(params["word_emb"], char_ids, axis=0)   # (Bp, T, E)
    cws_e = jnp.take(params["cws_emb"], cws_ids, axis=0)      # (Bp, T, E)

    # Time-major 2-D rows (row = t*Bp + b): every in-kernel access becomes a
    # static, sublane-aligned row slice; no in-kernel reshapes or transposes.
    char2d = char_e.transpose(1, 0, 2).reshape(T * Bp, E)
    cws2d = cws_e.transpose(1, 0, 2).reshape(T * Bp, E)
    w2v2d = word2vecs.astype(jnp.float32).transpose(1, 0, 2).reshape(T * Bp, P)
    mask2d = (jnp.arange(T)[:, None] < seq_lens[None, :]
              ).astype(jnp.float32).reshape(T * Bp, 1)
    tag_add = ((1.0 - tag_mask) * -100000.0).astype(jnp.float32)   # (Bp, tags)

    lstm_args = []
    for lp in params["lstm"]:
        lstm_args += [lp["wih"], lp["whh"], lp["b"]]

    out2d = pl.pallas_call(
        _make_fused_kernel(NUM_LAYERS),
        out_shape=jax.ShapeDtypeStruct((T * Bp, TAGS_SIZE), jnp.float32),
        scratch_shapes=[
            pltpu.VMEM((T * Bp, 8 * H), jnp.float32),   # input-gate terms per step
            pltpu.VMEM((T * Bp, 2 * H), jnp.float32),   # per-layer [h_f|h_b] outputs
        ],
    )(char2d, cws2d, w2v2d, mask2d, params["ln1_g"], params["ln1_b"],
      *lstm_args,
      params["ln2_g"], params["ln2_b"], params["lin1_w"], params["lin1_b"],
      params["lin2_w"], params["lin2_b"], tag_add)

    out = out2d.reshape(T, Bp, TAGS_SIZE).transpose(1, 0, 2)   # (Bp, T, tags)
    return out[:B0]


forward_jit = jax.jit(forward)


# ---------------- pure-JAX reference (for a self-check) ----------------

def reference_forward(params, char_ids, cws_ids, word2vecs, tag_mask, seq_lens):
    B, T = char_ids.shape
    H = HIDDEN_DIM

    def layer_norm(x, g, b):
        mu = jnp.mean(x, axis=-1, keepdims=True)
        var = jnp.mean((x - mu) ** 2, axis=-1, keepdims=True)
        return (x - mu) / jnp.sqrt(var + LN_EPS) * g + b

    char_n = layer_norm(jnp.take(params["word_emb"], char_ids, axis=0),
                        params["ln1_g"], params["ln1_b"])
    cws_n = layer_norm(jnp.take(params["cws_emb"], cws_ids, axis=0),
                       params["ln1_g"], params["ln1_b"])
    x = jnp.concatenate([char_n, word2vecs.astype(jnp.float32), cws_n], axis=-1)
    step_mask = (jnp.arange(T)[None, :] < seq_lens[:, None]
                 ).astype(jnp.float32)[..., None]                    # (B, T, 1)

    def run_dir(xs, w, reverse):
        h = jnp.zeros((B, H), jnp.float32)
        c = jnp.zeros((B, H), jnp.float32)
        outs = [None] * T
        order = range(T - 1, -1, -1) if reverse else range(T)
        for t in order:
            g = xs[:, t] @ w["wih"] + h @ w["whh"] + w["b"]
            i = jax.nn.sigmoid(g[:, 0:H])
            f = jax.nn.sigmoid(g[:, H:2 * H])
            gg = jnp.tanh(g[:, 2 * H:3 * H])
            o = jax.nn.sigmoid(g[:, 3 * H:4 * H])
            c_new = f * c + i * gg
            h_new = o * jnp.tanh(c_new)
            m = step_mask[:, t]
            h = m * h_new + (1.0 - m) * h
            c = m * c_new + (1.0 - m) * c
            outs[t] = h
        return jnp.stack(outs, axis=1)        # (B, T, H)

    h = x
    for lw in params["lstm_raw"]:
        h = jnp.concatenate([run_dir(h, lw["fwd"], False),
                             run_dir(h, lw["bwd"], True)], axis=-1)
    y = layer_norm(h, params["ln2_g"], params["ln2_b"])
    y = jnp.maximum(y @ params["lin1_w"] + params["lin1_b"], 0.0)
    logits = y @ params["lin2_w"] + params["lin2_b"]
    tag_add = ((1.0 - tag_mask) * -100000.0).astype(jnp.float32)[:, None, :]
    return step_mask * logits + tag_add


if __name__ == "__main__":
    key = jax.random.PRNGKey(0)
    kp, kc, kw, kv, km = jax.random.split(key, 5)
    params = init_params(kp)

    B, T = 2, 8
    char_ids = jax.random.randint(kc, (B, T), 0, VOCAB_SIZE, dtype=jnp.int32)
    cws_ids = jax.random.randint(kw, (B, T), 0, CWS_SIZE, dtype=jnp.int32)
    word2vecs = jax.random.normal(kv, (B, T, PRETRAINED_DIM), dtype=jnp.float32)
    tag_mask = (jax.random.uniform(km, (B, TAGS_SIZE)) > 0.5).astype(jnp.float32)
    tag_mask = tag_mask.at[:, 0].set(1.0)
    # pack_padded_sequence (enforce_sorted=True) expects descending lengths.
    seq_lens = jnp.array([T, 5], dtype=jnp.int32)

    out = forward_jit(params, char_ids, cws_ids, word2vecs, tag_mask, seq_lens)
    out = jax.block_until_ready(out)
    assert out.shape == (B, T, TAGS_SIZE)

    with jax.default_matmul_precision("highest"):
        ref = reference_forward(params, char_ids, cws_ids, word2vecs, tag_mask, seq_lens)
    np.testing.assert_allclose(np.asarray(out), np.asarray(ref), rtol=2e-3, atol=2e-3)

    print("KERNEL_OK")
</pallas_src>

<mosaic_0001>
module attributes {stable_mosaic.version = 11 : i64} {
  func.func @kernel(%arg0: memref<64x16xf32, #tpu.memory_space<vmem>>, %arg1: memref<64x16xf32, #tpu.memory_space<vmem>>, %arg2: memref<64x16xf32, #tpu.memory_space<vmem>>, %arg3: memref<64x1xf32, #tpu.memory_space<vmem>>, %arg4: memref<1x16xf32, #tpu.memory_space<vmem>>, %arg5: memref<1x16xf32, #tpu.memory_space<vmem>>, %arg6: memref<48x128xf32, #tpu.memory_space<vmem>>, %arg7: memref<32x128xf32, #tpu.memory_space<vmem>>, %arg8: memref<1x128xf32, #tpu.memory_space<vmem>>, %arg9: memref<32x128xf32, #tpu.memory_space<vmem>>, %arg10: memref<32x128xf32, #tpu.memory_space<vmem>>, %arg11: memref<1x128xf32, #tpu.memory_space<vmem>>, %arg12: memref<1x32xf32, #tpu.memory_space<vmem>>, %arg13: memref<1x32xf32, #tpu.memory_space<vmem>>, %arg14: memref<32x64xf32, #tpu.memory_space<vmem>>, %arg15: memref<1x64xf32, #tpu.memory_space<vmem>>, %arg16: memref<64x10xf32, #tpu.memory_space<vmem>>, %arg17: memref<1x10xf32, #tpu.memory_space<vmem>>, %arg18: memref<8x10xf32, #tpu.memory_space<vmem>>, %arg19: memref<64x10xf32, #tpu.memory_space<vmem>>, %arg20: memref<64x128xf32, #tpu.memory_space<vmem>>, %arg21: memref<64x32xf32, #tpu.memory_space<vmem>>) attributes {dimension_semantics = [], scalar_prefetch = 0 : i64, scratch_operands = 2 : i64, tpu.core_type = #tpu.core_type<tc>} {
    %c0 = arith.constant 0 : index
    %c0_0 = arith.constant 0 : index
    %0 = vector.load %arg0[%c0, %c0_0] : memref<64x16xf32, #tpu.memory_space<vmem>>, vector<64x16xf32>
    %c0_1 = arith.constant 0 : index
    %c0_2 = arith.constant 0 : index
    %1 = vector.load %arg4[%c0_1, %c0_2] : memref<1x16xf32, #tpu.memory_space<vmem>>, vector<1x16xf32>
    %c0_3 = arith.constant 0 : index
    %c0_4 = arith.constant 0 : index
    %2 = vector.load %arg5[%c0_3, %c0_4] : memref<1x16xf32, #tpu.memory_space<vmem>>, vector<1x16xf32>
    %cst = arith.constant dense<0.000000e+00> : vector<64xf32>
    %3 = vector.multi_reduction <add>, %0, %cst [1] : vector<64x16xf32> to vector<64xf32>
    %4 = vector.shape_cast %3 : vector<64xf32> to vector<64x1xf32>
    %cst_5 = arith.constant 1.600000e+01 : f32
    %5 = vector.broadcast %cst_5 : f32 to vector<64x1xf32>
    %6 = arith.divf %4, %5 : vector<64x1xf32>
    %7 = vector.broadcast %6 : vector<64x1xf32> to vector<64x16xf32>
    %8 = arith.subf %0, %7 : vector<64x16xf32>
    %9 = arith.mulf %8, %8 : vector<64x16xf32>
    %cst_6 = arith.constant dense<0.000000e+00> : vector<64xf32>
    %10 = vector.multi_reduction <add>, %9, %cst_6 [1] : vector<64x16xf32> to vector<64xf32>
    %11 = vector.shape_cast %10 : vector<64xf32> to vector<64x1xf32>
    %cst_7 = arith.constant 1.600000e+01 : f32
    %12 = vector.broadcast %cst_7 : f32 to vector<64x1xf32>
    %13 = arith.divf %11, %12 : vector<64x1xf32>
    %14 = vector.broadcast %6 : vector<64x1xf32> to vector<64x16xf32>
    %15 = arith.subf %0, %14 : vector<64x16xf32>
    %cst_8 = arith.constant 9.99999974E-6 : f32
    %16 = vector.broadcast %cst_8 : f32 to vector<64x1xf32>
    %17 = arith.addf %13, %16 : vector<64x1xf32>
    %18 = math.rsqrt %17 : vector<64x1xf32>
    %19 = vector.broadcast %18 : vector<64x1xf32> to vector<64x16xf32>
    %20 = arith.mulf %15, %19 : vector<64x16xf32>
    %21 = vector.broadcast %1 : vector<1x16xf32> to vector<64x16xf32>
    %22 = arith.mulf %20, %21 : vector<64x16xf32>
    %23 = vector.broadcast %2 : vector<1x16xf32> to vector<64x16xf32>
    %24 = arith.addf %22, %23 : vector<64x16xf32>
    %c0_9 = arith.constant 0 : index
    %c0_10 = arith.constant 0 : index
    %25 = vector.load %arg1[%c0_9, %c0_10] : memref<64x16xf32, #tpu.memory_space<vmem>>, vector<64x16xf32>
    %c0_11 = arith.constant 0 : index
    %c0_12 = arith.constant 0 : index
    %26 = vector.load %arg4[%c0_11, %c0_12] : memref<1x16xf32, #tpu.memory_space<vmem>>, vector<1x16xf32>
    %c0_13 = arith.constant 0 : index
    %c0_14 = arith.constant 0 : index
    %27 = vector.load %arg5[%c0_13, %c0_14] : memref<1x16xf32, #tpu.memory_space<vmem>>, vector<1x16xf32>
    %cst_15 = arith.constant dense<0.000000e+00> : vector<64xf32>
    %28 = vector.multi_reduction <add>, %25, %cst_15 [1] : vector<64x16xf32> to vector<64xf32>
    %29 = vector.shape_cast %28 : vector<64xf32> to vector<64x1xf32>
    %cst_16 = arith.constant 1.600000e+01 : f32
    %30 = vector.broadcast %cst_16 : f32 to vector<64x1xf32>
    %31 = arith.divf %29, %30 : vector<64x1xf32>
    %32 = vector.broadcast %31 : vector<64x1xf32> to vector<64x16xf32>
    %33 = arith.subf %25, %32 : vector<64x16xf32>
    %34 = arith.mulf %33, %33 : vector<64x16xf32>
    %cst_17 = arith.constant dense<0.000000e+00> : vector<64xf32>
    %35 = vector.multi_reduction <add>, %34, %cst_17 [1] : vector<64x16xf32> to vector<64xf32>
    %36 = vector.shape_cast %35 : vector<64xf32> to vector<64x1xf32>
    %cst_18 = arith.constant 1.600000e+01 : f32
    %37 = vector.broadcast %cst_18 : f32 to vector<64x1xf32>
    %38 = arith.divf %36, %37 : vector<64x1xf32>
    %39 = vector.broadcast %31 : vector<64x1xf32> to vector<64x16xf32>
    %40 = arith.subf %25, %39 : vector<64x16xf32>
    %cst_19 = arith.constant 9.99999974E-6 : f32
    %41 = vector.broadcast %cst_19 : f32 to vector<64x1xf32>
    %42 = arith.addf %38, %41 : vector<64x1xf32>
    %43 = math.rsqrt %42 : vector<64x1xf32>
    %44 = vector.broadcast %43 : vector<64x1xf32> to vector<64x16xf32>
    %45 = arith.mulf %40, %44 : vector<64x16xf32>
    %46 = vector.broadcast %26 : vector<1x16xf32> to vector<64x16xf32>
    %47 = arith.mulf %45, %46 : vector<64x16xf32>
    %48 = vector.broadcast %27 : vector<1x16xf32> to vector<64x16xf32>
    %49 = arith.addf %47, %48 : vector<64x16xf32>
    %c0_20 = arith.constant 0 : index
    %c0_21 = arith.constant 0 : index
    %50 = vector.load %arg6[%c0_20, %c0_21] : memref<48x128xf32, #tpu.memory_space<vmem>>, vector<16x128xf32>
    %cst_22 = arith.constant dense<0.000000e+00> : vector<64x128xf32>
    %51 = tpu.matmul %24, %50, %cst_22 {dimension_numbers = #tpu.dot_dimension_numbers<[1], [0], [0], [1], [0, 0, 1, 1], [], []>} : vector<64x16xf32>, vector<16x128xf32>, vector<64x128xf32> -> vector<64x128xf32>
    %c0_23 = arith.constant 0 : index
    %c0_24 = arith.constant 0 : index
    %52 = vector.load %arg2[%c0_23, %c0_24] : memref<64x16xf32, #tpu.memory_space<vmem>>, vector<64x16xf32>
    %c16 = arith.constant 16 : index
    %c0_25 = arith.constant 0 : index
    %53 = vector.load %arg6[%c16, %c0_25] : memref<48x128xf32, #tpu.memory_space<vmem>>, vector<16x128xf32>
    %cst_26 = arith.constant dense<0.000000e+00> : vector<64x128xf32>
    %54 = tpu.matmul %52, %53, %cst_26 {dimension_numbers = #tpu.dot_dimension_numbers<[1], [0], [0], [1], [0, 0, 1, 1], [], []>} : vector<64x16xf32>, vector<16x128xf32>, vector<64x128xf32> -> vector<64x128xf32>
    %55 = arith.addf %51, %54 : vector<64x128xf32>
    %c32 = arith.constant 32 : index
    %c0_27 = arith.constant 0 : index
    %56 = vector.load %arg6[%c32, %c0_27] : memref<48x128xf32, #tpu.memory_space<vmem>>, vector<16x128xf32>
    %cst_28 = arith.constant dense<0.000000e+00> : vector<64x128xf32>
    %57 = tpu.matmul %49, %56, %cst_28 {dimension_numbers = #tpu.dot_dimension_numbers<[1], [0], [0], [1], [0, 0, 1, 1], [], []>} : vector<64x16xf32>, vector<16x128xf32>, vector<64x128xf32> -> vector<64x128xf32>
    %58 = arith.addf %55, %57 : vector<64x128xf32>
    %c0_29 = arith.constant 0 : index
    %c0_30 = arith.constant 0 : index
    %59 = vector.load %arg20[%c0_29, %c0_30] : memref<64x128xf32, #tpu.memory_space<vmem>>, vector<64x128xf32>
    tpu.vector_store %arg20[%c0_29, %c0_30], %58 {strides = array<i32>} : memref<64x128xf32, #tpu.memory_space<vmem>>, vector<64x128xf32>,
    %60 = tpu.iota {dimensions = array<i32: 1>} : vector<8x128xi32>
    %c16_i32 = arith.constant 16 : i32
    %61 = vector.broadcast %c16_i32 : i32 to vector<8x128xi32>
    %62 = arith.andi %60, %61 : vector<8x128xi32>
    %c0_i32 = arith.constant 0 : i32
    %63 = vector.broadcast %c0_i32 : i32 to vector<8x128xi32>
    %64 = arith.cmpi eq, %62, %63 : vector<8x128xi32>
    %65 = tpu.iota {dimensions = array<i32: 1>} : vector<8x32xi32>
    %c16_i32_31 = arith.constant 16 : i32
    %66 = vector.broadcast %c16_i32_31 : i32 to vector<8x32xi32>
    %67 = arith.cmpi slt, %65, %66 : vector<8x32xi32>
    %c0_32 = arith.constant 0 : index
    %c0_33 = arith.constant 0 : index
    %68 = vector.load %arg7[%c0_32, %c0_33] : memref<32x128xf32, #tpu.memory_space<vmem>>, vector<32x128xf32>
    %c0_34 = arith.constant 0 : index
    %c0_35 = arith.constant 0 : index
    %69 = vector.load %arg8[%c0_34, %c0_35] : memref<1x128xf32, #tpu.memory_space<vmem>>, vector<1x128xf32>
    %cst_36 = arith.constant 0.000000e+00 : f32
    %70 = vector.broadcast %cst_36 : f32 to vector<8x32xf32>
    %cst_37 = arith.constant 0.000000e+00 : f32
    %71 = vector.broadcast %cst_37 : f32 to vector<8x32xf32>
    %c0_38 = arith.constant 0 : index
    %c0_39 = arith.constant 0 : index
    %72 = vector.load %arg3[%c0_38, %c0_39] : memref<64x1xf32, #tpu.memory_space<vmem>>, vector<8x1xf32>
    %c56 = arith.constant 56 : index
    %c0_40 = arith.constant 0 : index
    %73 = vector.load %arg3[%c56, %c0_40] : memref<64x1xf32, #tpu.memory_space<vmem>>, vector<8x1xf32>
    %c0_41 = arith.constant 0 : index
    %c0_42 = arith.constant 0 : index
    %74 = vector.load %arg20[%c0_41, %c0_42] : memref<64x128xf32, #tpu.memory_space<vmem>>, vector<8x128xf32>
    %c56_43 = arith.constant 56 : index
    %c0_44 = arith.constant 0 : index
    %75 = vector.load %arg20[%c56_43, %c0_44] : memref<64x128xf32, #tpu.memory_space<vmem>>, vector<8x128xf32>
    %76 = arith.select %64, %74, %75 : vector<8x128xi1>, vector<8x128xf32>
    %cst_45 = arith.constant dense<0.000000e+00> : vector<8x128xf32>
    %77 = tpu.matmul %70, %68, %cst_45 {dimension_numbers = #tpu.dot_dimension_numbers<[1], [0], [0], [1], [0, 0, 1, 1], [], []>} : vector<8x32xf32>, vector<32x128xf32>, vector<8x128xf32> -> vector<8x128xf32>
    %78 = arith.addf %76, %77 : vector<8x128xf32>
    %79 = vector.broadcast %69 : vector<1x128xf32> to vector<8x128xf32>
    %80 = arith.addf %78, %79 : vector<8x128xf32>
    %81 = vector.extract_strided_slice %80 {offsets = [0, 0], sizes = [8, 32], strides = [1, 1]} : vector<8x128xf32> to vector<8x32xf32>
    %cst_46 = arith.constant 0.000000e+00 : f32
    %82 = vector.broadcast %cst_46 : f32 to vector<8x32xf32>
    %83 = arith.subf %82, %81 : vector<8x32xf32>
    %84 = math.exp %83 : vector<8x32xf32>
    %cst_47 = arith.constant 1.000000e+00 : f32
    %85 = vector.broadcast %cst_47 : f32 to vector<8x32xf32>
    %86 = arith.addf %85, %84 : vector<8x32xf32>
    %cst_48 = arith.constant 1.000000e+00 : f32
    %87 = vector.broadcast %cst_48 : f32 to vector<8x32xf32>
    %88 = arith.divf %87, %86 : vector<8x32xf32>
    %89 = vector.extract_strided_slice %80 {offsets = [0, 32], sizes = [8, 32], strides = [1, 1]} : vector<8x128xf32> to vector<8x32xf32>
    %cst_49 = arith.constant 0.000000e+00 : f32
    %90 = vector.broadcast %cst_49 : f32 to vector<8x32xf32>
    %91 = arith.subf %90, %89 : vector<8x32xf32>
    %92 = math.exp %91 : vector<8x32xf32>
    %cst_50 = arith.constant 1.000000e+00 : f32
    %93 = vector.broadcast %cst_50 : f32 to vector<8x32xf32>
    %94 = arith.addf %93, %92 : vector<8x32xf32>
    %cst_51 = arith.constant 1.000000e+00 : f32
    %95 = vector.broadcast %cst_51 : f32 to vector<8x32xf32>
    %96 = arith.divf %95, %94 : vector<8x32xf32>
    %97 = vector.extract_strided_slice %80 {offsets = [0, 64], sizes = [8, 32], strides = [1, 1]} : vector<8x128xf32> to vector<8x32xf32>
    %98 = math.tanh %97 : vector<8x32xf32>
    %99 = vector.extract_strided_slice %80 {offsets = [0, 96], sizes = [8, 32], strides = [1, 1]} : vector<8x128xf32> to vector<8x32xf32>
    %cst_52 = arith.constant 0.000000e+00 : f32
    %100 = vector.broadcast %cst_52 : f32 to vector<8x32xf32>
    %101 = arith.subf %100, %99 : vector<8x32xf32>
    %102 = math.exp %101 : vector<8x32xf32>
    %cst_53 = arith.constant 1.000000e+00 : f32
    %103 = vector.broadcast %cst_53 : f32 to vector<8x32xf32>
    %104 = arith.addf %103, %102 : vector<8x32xf32>
    %cst_54 = arith.constant 1.000000e+00 : f32
    %105 = vector.broadcast %cst_54 : f32 to vector<8x32xf32>
    %106 = arith.divf %105, %104 : vector<8x32xf32>
    %107 = arith.mulf %96, %71 : vector<8x32xf32>
    %108 = arith.mulf %88, %98 : vector<8x32xf32>
    %109 = arith.addf %107, %108 : vector<8x32xf32>
    %110 = math.tanh %109 : vector<8x32xf32>
    %111 = arith.mulf %106, %110 : vector<8x32xf32>
    %112 = vector.shape_cast %72 : vector<8x1xf32> to vector<8x1xf32>
    %113 = vector.broadcast %112 : vector<8x1xf32> to vector<8x32xf32>
    %114 = vector.shape_cast %73 : vector<8x1xf32> to vector<8x1xf32>
    %115 = vector.broadcast %114 : vector<8x1xf32> to vector<8x32xf32>
    %116 = arith.select %67, %113, %115 : vector<8x32xi1>, vector<8x32xf32>
    %117 = arith.mulf %116, %111 : vector<8x32xf32>
    %cst_55 = arith.constant 1.000000e+00 : f32
    %118 = vector.broadcast %cst_55 : f32 to vector<8x32xf32>
    %119 = arith.subf %118, %116 : vector<8x32xf32>
    %120 = arith.mulf %119, %70 : vector<8x32xf32>
    %121 = arith.addf %117, %120 : vector<8x32xf32>
    %122 = arith.mulf %116, %109 : vector<8x32xf32>
    %cst_56 = arith.constant 1.000000e+00 : f32
    %123 = vector.broadcast %cst_56 : f32 to vector<8x32xf32>
    %124 = arith.subf %123, %116 : vector<8x32xf32>
    %125 = arith.mulf %124, %71 : vector<8x32xf32>
    %126 = arith.addf %122, %125 : vector<8x32xf32>
    %127 = vector.extract_strided_slice %121 {offsets = [0, 0], sizes = [8, 16], strides = [1, 1]} : vector<8x32xf32> to vector<8x16xf32>
    %c0_57 = arith.constant 0 : index
    %c0_58 = arith.constant 0 : index
    %128 = vector.load %arg21[%c0_57, %c0_58] : memref<64x32xf32, #tpu.memory_space<vmem>>, vector<8x16xf32>
    tpu.vector_store %arg21[%c0_57, %c0_58], %127 {strides = array<i32>} : memref<64x32xf32, #tpu.memory_space<vmem>>, vector<8x16xf32>,
    %129 = vector.extract_strided_slice %121 {offsets = [0, 16], sizes = [8, 16], strides = [1, 1]} : vector<8x32xf32> to vector<8x16xf32>
    %c56_59 = arith.constant 56 : index
    %c16_60 = arith.constant 16 : index
    %130 = vector.load %arg21[%c56_59, %c16_60] : memref<64x32xf32, #tpu.memory_space<vmem>>, vector<8x16xf32>
    tpu.vector_store %arg21[%c56_59, %c16_60], %129 {strides = array<i32>} : memref<64x32xf32, #tpu.memory_space<vmem>>, vector<8x16xf32>,
    %c8 = arith.constant 8 : index
    %c0_61 = arith.constant 0 : index
    %131 = vector.load %arg3[%c8, %c0_61] : memref<64x1xf32, #tpu.memory_space<vmem>>, vector<8x1xf32>
    %c48 = arith.constant 48 : index
    %c0_62 = arith.constant 0 : index
    %132 = vector.load %arg3[%c48, %c0_62] : memref<64x1xf32, #tpu.memory_space<vmem>>, vector<8x1xf32>
    %c8_63 = arith.constant 8 : index
    %c0_64 = arith.constant 0 : index
    %133 = vector.load %arg20[%c8_63, %c0_64] : memref<64x128xf32, #tpu.memory_space<vmem>>, vector<8x128xf32>
    %c48_65 = arith.constant 48 : index
    %c0_66 = arith.constant 0 : index
    %134 = vector.load %arg20[%c48_65, %c0_66] : memref<64x128xf32, #tpu.memory_space<vmem>>, vector<8x128xf32>
    %135 = arith.select %64, %133, %134 : vector<8x128xi1>, vector<8x128xf32>
    %cst_67 = arith.constant dense<0.000000e+00> : vector<8x128xf32>
    %136 = tpu.matmul %121, %68, %cst_67 {dimension_numbers = #tpu.dot_dimension_numbers<[1], [0], [0], [1], [0, 0, 1, 1], [], []>} : vector<8x32xf32>, vector<32x128xf32>, vector<8x128xf32> -> vector<8x128xf32>
    %137 = arith.addf %135, %136 : vector<8x128xf32>
    %138 = vector.broadcast %69 : vector<1x128xf32> to vector<8x128xf32>
    %139 = arith.addf %137, %138 : vector<8x128xf32>
    %140 = vector.extract_strided_slice %139 {offsets = [0, 0], sizes = [8, 32], strides = [1, 1]} : vector<8x128xf32> to vector<8x32xf32>
    %cst_68 = arith.constant 0.000000e+00 : f32
    %141 = vector.broadcast %cst_68 : f32 to vector<8x32xf32>
    %142 = arith.subf %141, %140 : vector<8x32xf32>
    %143 = math.exp %142 : vector<8x32xf32>
    %cst_69 = arith.constant 1.000000e+00 : f32
    %144 = vector.broadcast %cst_69 : f32 to vector<8x32xf32>
    %145 = arith.addf %144, %143 : vector<8x32xf32>
    %cst_70 = arith.constant 1.000000e+00 : f32
    %146 = vector.broadcast %cst_70 : f32 to vector<8x32xf32>
    %147 = arith.divf %146, %145 : vector<8x32xf32>
    %148 = vector.extract_strided_slice %139 {offsets = [0, 32], sizes = [8, 32], strides = [1, 1]} : vector<8x128xf32> to vector<8x32xf32>
    %cst_71 = arith.constant 0.000000e+00 : f32
    %149 = vector.broadcast %cst_71 : f32 to vector<8x32xf32>
    %150 = arith.subf %149, %148 : vector<8x32xf32>
    %151 = math.exp %150 : vector<8x32xf32>
    %cst_72 = arith.constant 1.000000e+00 : f32
    %152 = vector.broadcast %cst_72 : f32 to vector<8x32xf32>
    %153 = arith.addf %152, %151 : vector<8x32xf32>
    %cst_73 = arith.constant 1.000000e+00 : f32
    %154 = vector.broadcast %cst_73 : f32 to vector<8x32xf32>
    %155 = arith.divf %154, %153 : vector<8x32xf32>
    %156 = vector.extract_strided_slice %139 {offsets = [0, 64], sizes = [8, 32], strides = [1, 1]} : vector<8x128xf32> to vector<8x32xf32>
    %157 = math.tanh %156 : vector<8x32xf32>
    %158 = vector.extract_strided_slice %139 {offsets = [0, 96], sizes = [8, 32], strides = [1, 1]} : vector<8x128xf32> to vector<8x32xf32>
    %cst_74 = arith.constant 0.000000e+00 : f32
    %159 = vector.broadcast %cst_74 : f32 to vector<8x32xf32>
    %160 = arith.subf %159, %158 : vector<8x32xf32>
    %161 = math.exp %160 : vector<8x32xf32>
    %cst_75 = arith.constant 1.000000e+00 : f32
    %162 = vector.broadcast %cst_75 : f32 to vector<8x32xf32>
    %163 = arith.addf %162, %161 : vector<8x32xf32>
    %cst_76 = arith.constant 1.000000e+00 : f32
    %164 = vector.broadcast %cst_76 : f32 to vector<8x32xf32>
    %165 = arith.divf %164, %163 : vector<8x32xf32>
    %166 = arith.mulf %155, %126 : vector<8x32xf32>
    %167 = arith.mulf %147, %157 : vector<8x32xf32>
    %168 = arith.addf %166, %167 : vector<8x32xf32>
    %169 = math.tanh %168 : vector<8x32xf32>
    %170 = arith.mulf %165, %169 : vector<8x32xf32>
    %171 = vector.shape_cast %131 : vector<8x1xf32> to vector<8x1xf32>
    %172 = vector.broadcast %171 : vector<8x1xf32> to vector<8x32xf32>
    %173 = vector.shape_cast %132 : vector<8x1xf32> to vector<8x1xf32>
    %174 = vector.broadcast %173 : vector<8x1xf32> to vector<8x32xf32>
    %175 = arith.select %67, %172, %174 : vector<8x32xi1>, vector<8x32xf32>
    %176 = arith.mulf %175, %170 : vector<8x32xf32>
    %cst_77 = arith.constant 1.000000e+00 : f32
    %177 = vector.broadcast %cst_77 : f32 to vector<8x32xf32>
    %178 = arith.subf %177, %175 : vector<8x32xf32>
    %179 = arith.mulf %178, %121 : vector<8x32xf32>
    %180 = arith.addf %176, %179 : vector<8x32xf32>
    %181 = arith.mulf %175, %168 : vector<8x32xf32>
    %cst_78 = arith.constant 1.000000e+00 : f32
    %182 = vector.broadcast %cst_78 : f32 to vector<8x32xf32>
    %183 = arith.subf %182, %175 : vector<8x32xf32>
    %184 = arith.mulf %183, %126 : vector<8x32xf32>
    %185 = arith.addf %181, %184 : vector<8x32xf32>
    %186 = vector.extract_strided_slice %180 {offsets = [0, 0], sizes = [8, 16], strides = [1, 1]} : vector<8x32xf32> to vector<8x16xf32>
    %c8_79 = arith.constant 8 : index
    %c0_80 = arith.constant 0 : index
    %187 = vector.load %arg21[%c8_79, %c0_80] : memref<64x32xf32, #tpu.memory_space<vmem>>, vector<8x16xf32>
    tpu.vector_store %arg21[%c8_79, %c0_80], %186 {strides = array<i32>} : memref<64x32xf32, #tpu.memory_space<vmem>>, vector<8x16xf32>,
    %188 = vector.extract_strided_slice %180 {offsets = [0, 16], sizes = [8, 16], strides = [1, 1]} : vector<8x32xf32> to vector<8x16xf32>
    %c48_81 = arith.constant 48 : index
    %c16_82 = arith.constant 16 : index
    %189 = vector.load %arg21[%c48_81, %c16_82] : memref<64x32xf32, #tpu.memory_space<vmem>>, vector<8x16xf32>
    tpu.vector_store %arg21[%c48_81, %c16_82], %188 {strides = array<i32>} : memref<64x32xf32, #tpu.memory_space<vmem>>, vector<8x16xf32>,
    %c16_83 = arith.constant 16 : index
    %c0_84 = arith.constant 0 : index
    %190 = vector.load %arg3[%c16_83, %c0_84] : memref<64x1xf32, #tpu.memory_space<vmem>>, vector<8x1xf32>
    %c40 = arith.constant 40 : index
    %c0_85 = arith.constant 0 : index
    %191 = vector.load %arg3[%c40, %c0_85] : memref<64x1xf32, #tpu.memory_space<vmem>>, vector<8x1xf32>
    %c16_86 = arith.constant 16 : index
    %c0_87 = arith.constant 0 : index
    %192 = vector.load %arg20[%c16_86, %c0_87] : memref<64x128xf32, #tpu.memory_space<vmem>>, vector<8x128xf32>
    %c40_88 = arith.constant 40 : index
    %c0_89 = arith.constant 0 : index
    %193 = vector.load %arg20[%c40_88, %c0_89] : memref<64x128xf32, #tpu.memory_space<vmem>>, vector<8x128xf32>
    %194 = arith.select %64, %192, %193 : vector<8x128xi1>, vector<8x128xf32>
    %cst_90 = arith.constant dense<0.000000e+00> : vector<8x128xf32>
    %195 = tpu.matmul %180, %68, %cst_90 {dimension_numbers = #tpu.dot_dimension_numbers<[1], [0], [0], [1], [0, 0, 1, 1], [], []>} : vector<8x32xf32>, vector<32x128xf32>, vector<8x128xf32> -> vector<8x128xf32>
    %196 = arith.addf %194, %195 : vector<8x128xf32>
    %197 = vector.broadcast %69 : vector<1x128xf32> to vector<8x128xf32>
    %198 = arith.addf %196, %197 : vector<8x128xf32>
    %199 = vector.extract_strided_slice %198 {offsets = [0, 0], sizes = [8, 32], strides = [1, 1]} : vector<8x128xf32> to vector<8x32xf32>
    %cst_91 = arith.constant 0.000000e+00 : f32
    %200 = vector.broadcast %cst_91 : f32 to vector<8x32xf32>
    %201 = arith.subf %200, %199 : vector<8x32xf32>
    %202 = math.exp %201 : vector<8x32xf32>
    %cst_92 = arith.constant 1.000000e+00 : f32
    %203 = vector.broadcast %cst_92 : f32 to vector<8x32xf32>
    %204 = arith.addf %203, %202 : vector<8x32xf32>
    %cst_93 = arith.constant 1.000000e+00 : f32
    %205 = vector.broadcast %cst_93 : f32 to vector<8x32xf32>
    %206 = arith.divf %205, %204 : vector<8x32xf32>
    %207 = vector.extract_strided_slice %198 {offsets = [0, 32], sizes = [8, 32], strides = [1, 1]} : vector<8x128xf32> to vector<8x32xf32>
    %cst_94 = arith.constant 0.000000e+00 : f32
    %208 = vector.broadcast %cst_94 : f32 to vector<8x32xf32>
    %209 = arith.subf %208, %207 : vector<8x32xf32>
    %210 = math.exp %209 : vector<8x32xf32>
    %cst_95 = arith.constant 1.000000e+00 : f32
    %211 = vector.broadcast %cst_95 : f32 to vector<8x32xf32>
    %212 = arith.addf %211, %210 : vector<8x32xf32>
    %cst_96 = arith.constant 1.000000e+00 : f32
    %213 = vector.broadcast %cst_96 : f32 to vector<8x32xf32>
    %214 = arith.divf %213, %212 : vector<8x32xf32>
    %215 = vector.extract_strided_slice %198 {offsets = [0, 64], sizes = [8, 32], strides = [1, 1]} : vector<8x128xf32> to vector<8x32xf32>
    %216 = math.tanh %215 : vector<8x32xf32>
    %217 = vector.extract_strided_slice %198 {offsets = [0, 96], sizes = [8, 32], strides = [1, 1]} : vector<8x128xf32> to vector<8x32xf32>
    %cst_97 = arith.constant 0.000000e+00 : f32
    %218 = vector.broadcast %cst_97 : f32 to vector<8x32xf32>
    %219 = arith.subf %218, %217 : vector<8x32xf32>
    %220 = math.exp %219 : vector<8x32xf32>
    %cst_98 = arith.constant 1.000000e+00 : f32
    %221 = vector.broadcast %cst_98 : f32 to vector<8x32xf32>
    %222 = arith.addf %221, %220 : vector<8x32xf32>
    %cst_99 = arith.constant 1.000000e+00 : f32
    %223 = vector.broadcast %cst_99 : f32 to vector<8x32xf32>
    %224 = arith.divf %223, %222 : vector<8x32xf32>
    %225 = arith.mulf %214, %185 : vector<8x32xf32>
    %226 = arith.mulf %206, %216 : vector<8x32xf32>
    %227 = arith.addf %225, %226 : vector<8x32xf32>
    %228 = math.tanh %227 : vector<8x32xf32>
    %229 = arith.mulf %224, %228 : vector<8x32xf32>
    %230 = vector.shape_cast %190 : vector<8x1xf32> to vector<8x1xf32>
    %231 = vector.broadcast %230 : vector<8x1xf32> to vector<8x32xf32>
    %232 = vector.shape_cast %191 : vector<8x1xf32> to vector<8x1xf32>
    %233 = vector.broadcast %232 : vector<8x1xf32> to vector<8x32xf32>
    %234 = arith.select %67, %231, %233 : vector<8x32xi1>, vector<8x32xf32>
    %235 = arith.mulf %234, %229 : vector<8x32xf32>
    %cst_100 = arith.constant 1.000000e+00 : f32
    %236 = vector.broadcast %cst_100 : f32 to vector<8x32xf32>
    %237 = arith.subf %236, %234 : vector<8x32xf32>
    %238 = arith.mulf %237, %180 : vector<8x32xf32>
    %239 = arith.addf %235, %238 : vector<8x32xf32>
    %240 = arith.mulf %234, %227 : vector<8x32xf32>
    %cst_101 = arith.constant 1.000000e+00 : f32
    %241 = vector.broadcast %cst_101 : f32 to vector<8x32xf32>
    %242 = arith.subf %241, %234 : vector<8x32xf32>
    %243 = arith.mulf %242, %185 : vector<8x32xf32>
    %244 = arith.addf %240, %243 : vector<8x32xf32>
    %245 = vector.extract_strided_slice %239 {offsets = [0, 0], sizes = [8, 16], strides = [1, 1]} : vector<8x32xf32> to vector<8x16xf32>
    %c16_102 = arith.constant 16 : index
    %c0_103 = arith.constant 0 : index
    %246 = vector.load %arg21[%c16_102, %c0_103] : memref<64x32xf32, #tpu.memory_space<vmem>>, vector<8x16xf32>
    tpu.vector_store %arg21[%c16_102, %c0_103], %245 {strides = array<i32>} : memref<64x32xf32, #tpu.memory_space<vmem>>, vector<8x16xf32>,
    %247 = vector.extract_strided_slice %239 {offsets = [0, 16], sizes = [8, 16], strides = [1, 1]} : vector<8x32xf32> to vector<8x16xf32>
    %c40_104 = arith.constant 40 : index
    %c16_105 = arith.constant 16 : index
    %248 = vector.load %arg21[%c40_104, %c16_105] : memref<64x32xf32, #tpu.memory_space<vmem>>, vector<8x16xf32>
    tpu.vector_store %arg21[%c40_104, %c16_105], %247 {strides = array<i32>} : memref<64x32xf32, #tpu.memory_space<vmem>>, vector<8x16xf32>,
    %c24 = arith.constant 24 : index
    %c0_106 = arith.constant 0 : index
    %249 = vector.load %arg3[%c24, %c0_106] : memref<64x1xf32, #tpu.memory_space<vmem>>, vector<8x1xf32>
    %c32_107 = arith.constant 32 : index
    %c0_108 = arith.constant 0 : index
    %250 = vector.load %arg3[%c32_107, %c0_108] : memref<64x1xf32, #tpu.memory_space<vmem>>, vector<8x1xf32>
    %c24_109 = arith.constant 24 : index
    %c0_110 = arith.constant 0 : index
    %251 = vector.load %arg20[%c24_109, %c0_110] : memref<64x128xf32, #tpu.memory_space<vmem>>, vector<8x128xf32>
    %c32_111 = arith.constant 32 : index
    %c0_112 = arith.constant 0 : index
    %252 = vector.load %arg20[%c32_111, %c0_112] : memref<64x128xf32, #tpu.memory_space<vmem>>, vector<8x128xf32>
    %253 = arith.select %64, %251, %252 : vector<8x128xi1>, vector<8x128xf32>
    %cst_113 = arith.constant dense<0.000000e+00> : vector<8x128xf32>
    %254 = tpu.matmul %239, %68, %cst_113 {dimension_numbers = #tpu.dot_dimension_numbers<[1], [0], [0], [1], [0, 0, 1, 1], [], []>} : vector<8x32xf32>, vector<32x128xf32>, vector<8x128xf32> -> vector<8x128xf32>
    %255 = arith.addf %253, %254 : vector<8x128xf32>
    %256 = vector.broadcast %69 : vector<1x128xf32> to vector<8x128xf32>
    %257 = arith.addf %255, %256 : vector<8x128xf32>
    %258 = vector.extract_strided_slice %257 {offsets = [0, 0], sizes = [8, 32], strides = [1, 1]} : vector<8x128xf32> to vector<8x32xf32>
    %cst_114 = arith.constant 0.000000e+00 : f32
    %259 = vector.broadcast %cst_114 : f32 to vector<8x32xf32>
    %260 = arith.subf %259, %258 : vector<8x32xf32>
    %261 = math.exp %260 : vector<8x32xf32>
    %cst_115 = arith.constant 1.000000e+00 : f32
    %262 = vector.broadcast %cst_115 : f32 to vector<8x32xf32>
    %263 = arith.addf %262, %261 : vector<8x32xf32>
    %cst_116 = arith.constant 1.000000e+00 : f32
    %264 = vector.broadcast %cst_116 : f32 to vector<8x32xf32>
    %265 = arith.divf %264, %263 : vector<8x32xf32>
    %266 = vector.extract_strided_slice %257 {offsets = [0, 32], sizes = [8, 32], strides = [1, 1]} : vector<8x128xf32> to vector<8x32xf32>
    %cst_117 = arith.constant 0.000000e+00 : f32
    %267 = vector.broadcast %cst_117 : f32 to vector<8x32xf32>
    %268 = arith.subf %267, %266 : vector<8x32xf32>
    %269 = math.exp %268 : vector<8x32xf32>
    %cst_118 = arith.constant 1.000000e+00 : f32
    %270 = vector.broadcast %cst_118 : f32 to vector<8x32xf32>
    %271 = arith.addf %270, %269 : vector<8x32xf32>
    %cst_119 = arith.constant 1.000000e+00 : f32
    %272 = vector.broadcast %cst_119 : f32 to vector<8x32xf32>
    %273 = arith.divf %272, %271 : vector<8x32xf32>
    %274 = vector.extract_strided_slice %257 {offsets = [0, 64], sizes = [8, 32], strides = [1, 1]} : vector<8x128xf32> to vector<8x32xf32>
    %275 = math.tanh %274 : vector<8x32xf32>
    %276 = vector.extract_strided_slice %257 {offsets = [0, 96], sizes = [8, 32], strides = [1, 1]} : vector<8x128xf32> to vector<8x32xf32>
    %cst_120 = arith.constant 0.000000e+00 : f32
    %277 = vector.broadcast %cst_120 : f32 to vector<8x32xf32>
    %278 = arith.subf %277, %276 : vector<8x32xf32>
    %279 = math.exp %278 : vector<8x32xf32>
    %cst_121 = arith.constant 1.000000e+00 : f32
    %280 = vector.broadcast %cst_121 : f32 to vector<8x32xf32>
    %281 = arith.addf %280, %279 : vector<8x32xf32>
    %cst_122 = arith.constant 1.000000e+00 : f32
    %282 = vector.broadcast %cst_122 : f32 to vector<8x32xf32>
    %283 = arith.divf %282, %281 : vector<8x32xf32>
    %284 = arith.mulf %273, %244 : vector<8x32xf32>
    %285 = arith.mulf %265, %275 : vector<8x32xf32>
    %286 = arith.addf %284, %285 : vector<8x32xf32>
    %287 = math.tanh %286 : vector<8x32xf32>
    %288 = arith.mulf %283, %287 : vector<8x32xf32>
    %289 = vector.shape_cast %249 : vector<8x1xf32> to vector<8x1xf32>
    %290 = vector.broadcast %289 : vector<8x1xf32> to vector<8x32xf32>
    %291 = vector.shape_cast %250 : vector<8x1xf32> to vector<8x1xf32>
    %292 = vector.broadcast %291 : vector<8x1xf32> to vector<8x32xf32>
    %293 = arith.select %67, %290, %292 : vector<8x32xi1>, vector<8x32xf32>
    %294 = arith.mulf %293, %288 : vector<8x32xf32>
    %cst_123 = arith.constant 1.000000e+00 : f32
    %295 = vector.broadcast %cst_123 : f32 to vector<8x32xf32>
    %296 = arith.subf %295, %293 : vector<8x32xf32>
    %297 = arith.mulf %296, %239 : vector<8x32xf32>
    %298 = arith.addf %294, %297 : vector<8x32xf32>
    %299 = arith.mulf %293, %286 : vector<8x32xf32>
    %cst_124 = arith.constant 1.000000e+00 : f32
    %300 = vector.broadcast %cst_124 : f32 to vector<8x32xf32>
    %301 = arith.subf %300, %293 : vector<8x32xf32>
    %302 = arith.mulf %301, %244 : vector<8x32xf32>
    %303 = arith.addf %299, %302 : vector<8x32xf32>
    %304 = vector.extract_strided_slice %298 {offsets = [0, 0], sizes = [8, 16], strides = [1, 1]} : vector<8x32xf32> to vector<8x16xf32>
    %c24_125 = arith.constant 24 : index
    %c0_126 = arith.constant 0 : index
    %305 = vector.load %arg21[%c24_125, %c0_126] : memref<64x32xf32, #tpu.memory_space<vmem>>, vector<8x16xf32>
    tpu.vector_store %arg21[%c24_125, %c0_126], %304 {strides = array<i32>} : memref<64x32xf32, #tpu.memory_space<vmem>>, vector<8x16xf32>,
    %306 = vector.extract_strided_slice %298 {offsets = [0, 16], sizes = [8, 16], strides = [1, 1]} : vector<8x32xf32> to vector<8x16xf32>
    %c32_127 = arith.constant 32 : index
    %c16_128 = arith.constant 16 : index
    %307 = vector.load %arg21[%c32_127, %c16_128] : memref<64x32xf32, #tpu.memory_space<vmem>>, vector<8x16xf32>
    tpu.vector_store %arg21[%c32_127, %c16_128], %306 {strides = array<i32>} : memref<64x32xf32, #tpu.memory_space<vmem>>, vector<8x16xf32>,
    %c32_129 = arith.constant 32 : index
    %c0_130 = arith.constant 0 : index
    %308 = vector.load %arg3[%c32_129, %c0_130] : memref<64x1xf32, #tpu.memory_space<vmem>>, vector<8x1xf32>
    %c24_131 = arith.constant 24 : index
    %c0_132 = arith.constant 0 : index
    %309 = vector.load %arg3[%c24_131, %c0_132] : memref<64x1xf32, #tpu.memory_space<vmem>>, vector<8x1xf32>
    %c32_133 = arith.constant 32 : index
    %c0_134 = arith.constant 0 : index
    %310 = vector.load %arg20[%c32_133, %c0_134] : memref<64x128xf32, #tpu.memory_space<vmem>>, vector<8x128xf32>
    %c24_135 = arith.constant 24 : index
    %c0_136 = arith.constant 0 : index
    %311 = vector.load %arg20[%c24_135, %c0_136] : memref<64x128xf32, #tpu.memory_space<vmem>>, vector<8x128xf32>
    %312 = arith.select %64, %310, %311 : vector<8x128xi1>, vector<8x128xf32>
    %cst_137 = arith.constant dense<0.000000e+00> : vector<8x128xf32>
    %313 = tpu.matmul %298, %68, %cst_137 {dimension_numbers = #tpu.dot_dimension_numbers<[1], [0], [0], [1], [0, 0, 1, 1], [], []>} : vector<8x32xf32>, vector<32x128xf32>, vector<8x128xf32> -> vector<8x128xf32>
    %314 = arith.addf %312, %313 : vector<8x128xf32>
    %315 = vector.broadcast %69 : vector<1x128xf32> to vector<8x128xf32>
    %316 = arith.addf %314, %315 : vector<8x128xf32>
    %317 = vector.extract_strided_slice %316 {offsets = [0, 0], sizes = [8, 32], strides = [1, 1]} : vector<8x128xf32> to vector<8x32xf32>
    %cst_138 = arith.constant 0.000000e+00 : f32
    %318 = vector.broadcast %cst_138 : f32 to vector<8x32xf32>
    %319 = arith.subf %318, %317 : vector<8x32xf32>
    %320 = math.exp %319 : vector<8x32xf32>
    %cst_139 = arith.constant 1.000000e+00 : f32
    %321 = vector.broadcast %cst_139 : f32 to vector<8x32xf32>
    %322 = arith.addf %321, %320 : vector<8x32xf32>
    %cst_140 = arith.constant 1.000000e+00 : f32
    %323 = vector.broadcast %cst_140 : f32 to vector<8x32xf32>
    %324 = arith.divf %323, %322 : vector<8x32xf32>
    %325 = vector.extract_strided_slice %316 {offsets = [0, 32], sizes = [8, 32], strides = [1, 1]} : vector<8x128xf32> to vector<8x32xf32>
    %cst_141 = arith.constant 0.000000e+00 : f32
    %326 = vector.broadcast %cst_141 : f32 to vector<8x32xf32>
    %327 = arith.subf %326, %325 : vector<8x32xf32>
    %328 = math.exp %327 : vector<8x32xf32>
    %cst_142 = arith.constant 1.000000e+00 : f32
    %329 = vector.broadcast %cst_142 : f32 to vector<8x32xf32>
    %330 = arith.addf %329, %328 : vector<8x32xf32>
    %cst_143 = arith.constant 1.000000e+00 : f32
    %331 = vector.broadcast %cst_143 : f32 to vector<8x32xf32>
    %332 = arith.divf %331, %330 : vector<8x32xf32>
    %333 = vector.extract_strided_slice %316 {offsets = [0, 64], sizes = [8, 32], strides = [1, 1]} : vector<8x128xf32> to vector<8x32xf32>
    %334 = math.tanh %333 : vector<8x32xf32>
    %335 = vector.extract_strided_slice %316 {offsets = [0, 96], sizes = [8, 32], strides = [1, 1]} : vector<8x128xf32> to vector<8x32xf32>
    %cst_144 = arith.constant 0.000000e+00 : f32
    %336 = vector.broadcast %cst_144 : f32 to vector<8x32xf32>
    %337 = arith.subf %336, %335 : vector<8x32xf32>
    %338 = math.exp %337 : vector<8x32xf32>
    %cst_145 = arith.constant 1.000000e+00 : f32
    %339 = vector.broadcast %cst_145 : f32 to vector<8x32xf32>
    %340 = arith.addf %339, %338 : vector<8x32xf32>
    %cst_146 = arith.constant 1.000000e+00 : f32
    %341 = vector.broadcast %cst_146 : f32 to vector<8x32xf32>
    %342 = arith.divf %341, %340 : vector<8x32xf32>
    %343 = arith.mulf %332, %303 : vector<8x32xf32>
    %344 = arith.mulf %324, %334 : vector<8x32xf32>
    %345 = arith.addf %343, %344 : vector<8x32xf32>
    %346 = math.tanh %345 : vector<8x32xf32>
    %347 = arith.mulf %342, %346 : vector<8x32xf32>
    %348 = vector.shape_cast %308 : vector<8x1xf32> to vector<8x1xf32>
    %349 = vector.broadcast %348 : vector<8x1xf32> to vector<8x32xf32>
    %350 = vector.shape_cast %309 : vector<8x1xf32> to vector<8x1xf32>
    %351 = vector.broadcast %350 : vector<8x1xf32> to vector<8x32xf32>
    %352 = arith.select %67, %349, %351 : vector<8x32xi1>, vector<8x32xf32>
    %353 = arith.mulf %352, %347 : vector<8x32xf32>
    %cst_147 = arith.constant 1.000000e+00 : f32
    %354 = vector.broadcast %cst_147 : f32 to vector<8x32xf32>
    %355 = arith.subf %354, %352 : vector<8x32xf32>
    %356 = arith.mulf %355, %298 : vector<8x32xf32>
    %357 = arith.addf %353, %356 : vector<8x32xf32>
    %358 = arith.mulf %352, %345 : vector<8x32xf32>
    %cst_148 = arith.constant 1.000000e+00 : f32
    %359 = vector.broadcast %cst_148 : f32 to vector<8x32xf32>
    %360 = arith.subf %359, %352 : vector<8x32xf32>
    %361 = arith.mulf %360, %303 : vector<8x32xf32>
    %362 = arith.addf %358, %361 : vector<8x32xf32>
    %363 = vector.extract_strided_slice %357 {offsets = [0, 0], sizes = [8, 16], strides = [1, 1]} : vector<8x32xf32> to vector<8x16xf32>
    %c32_149 = arith.constant 32 : index
    %c0_150 = arith.constant 0 : index
    %364 = vector.load %arg21[%c32_149, %c0_150] : memref<64x32xf32, #tpu.memory_space<vmem>>, vector<8x16xf32>
    tpu.vector_store %arg21[%c32_149, %c0_150], %363 {strides = array<i32>} : memref<64x32xf32, #tpu.memory_space<vmem>>, vector<8x16xf32>,
    %365 = vector.extract_strided_slice %357 {offsets = [0, 16], sizes = [8, 16], strides = [1, 1]} : vector<8x32xf32> to vector<8x16xf32>
    %c24_151 = arith.constant 24 : index
    %c16_152 = arith.constant 16 : index
    %366 = vector.load %arg21[%c24_151, %c16_152] : memref<64x32xf32, #tpu.memory_space<vmem>>, vector<8x16xf32>
    tpu.vector_store %arg21[%c24_151, %c16_152], %365 {strides = array<i32>} : memref<64x32xf32, #tpu.memory_space<vmem>>, vector<8x16xf32>,
    %c40_153 = arith.constant 40 : index
    %c0_154 = arith.constant 0 : index
    %367 = vector.load %arg3[%c40_153, %c0_154] : memref<64x1xf32, #tpu.memory_space<vmem>>, vector<8x1xf32>
    %c16_155 = arith.constant 16 : index
    %c0_156 = arith.constant 0 : index
    %368 = vector.load %arg3[%c16_155, %c0_156] : memref<64x1xf32, #tpu.memory_space<vmem>>, vector<8x1xf32>
    %c40_157 = arith.constant 40 : index
    %c0_158 = arith.constant 0 : index
    %369 = vector.load %arg20[%c40_157, %c0_158] : memref<64x128xf32, #tpu.memory_space<vmem>>, vector<8x128xf32>
    %c16_159 = arith.constant 16 : index
    %c0_160 = arith.constant 0 : index
    %370 = vector.load %arg20[%c16_159, %c0_160] : memref<64x128xf32, #tpu.memory_space<vmem>>, vector<8x128xf32>
    %371 = arith.select %64, %369, %370 : vector<8x128xi1>, vector<8x128xf32>
    %cst_161 = arith.constant dense<0.000000e+00> : vector<8x128xf32>
    %372 = tpu.matmul %357, %68, %cst_161 {dimension_numbers = #tpu.dot_dimension_numbers<[1], [0], [0], [1], [0, 0, 1, 1], [], []>} : vector<8x32xf32>, vector<32x128xf32>, vector<8x128xf32> -> vector<8x128xf32>
    %373 = arith.addf %371, %372 : vector<8x128xf32>
    %374 = vector.broadcast %69 : vector<1x128xf32> to vector<8x128xf32>
    %375 = arith.addf %373, %374 : vector<8x128xf32>
    %376 = vector.extract_strided_slice %375 {offsets = [0, 0], sizes = [8, 32], strides = [1, 1]} : vector<8x128xf32> to vector<8x32xf32>
    %cst_162 = arith.constant 0.000000e+00 : f32
    %377 = vector.broadcast %cst_162 : f32 to vector<8x32xf32>
    %378 = arith.subf %377, %376 : vector<8x32xf32>
    %379 = math.exp %378 : vector<8x32xf32>
    %cst_163 = arith.constant 1.000000e+00 : f32
    %380 = vector.broadcast %cst_163 : f32 to vector<8x32xf32>
    %381 = arith.addf %380, %379 : vector<8x32xf32>
    %cst_164 = arith.constant 1.000000e+00 : f32
    %382 = vector.broadcast %cst_164 : f32 to vector<8x32xf32>
    %383 = arith.divf %382, %381 : vector<8x32xf32>
    %384 = vector.extract_strided_slice %375 {offsets = [0, 32], sizes = [8, 32], strides = [1, 1]} : vector<8x128xf32> to vector<8x32xf32>
    %cst_165 = arith.constant 0.000000e+00 : f32
    %385 = vector.broadcast %cst_165 : f32 to vector<8x32xf32>
    %386 = arith.subf %385, %384 : vector<8x32xf32>
    %387 = math.exp %386 : vector<8x32xf32>
    %cst_166 = arith.constant 1.000000e+00 : f32
    %388 = vector.broadcast %cst_166 : f32 to vector<8x32xf32>
    %389 = arith.addf %388, %387 : vector<8x32xf32>
    %cst_167 = arith.constant 1.000000e+00 : f32
    %390 = vector.broadcast %cst_167 : f32 to vector<8x32xf32>
    %391 = arith.divf %390, %389 : vector<8x32xf32>
    %392 = vector.extract_strided_slice %375 {offsets = [0, 64], sizes = [8, 32], strides = [1, 1]} : vector<8x128xf32> to vector<8x32xf32>
    %393 = math.tanh %392 : vector<8x32xf32>
    %394 = vector.extract_strided_slice %375 {offsets = [0, 96], sizes = [8, 32], strides = [1, 1]} : vector<8x128xf32> to vector<8x32xf32>
    %cst_168 = arith.constant 0.000000e+00 : f32
    %395 = vector.broadcast %cst_168 : f32 to vector<8x32xf32>
    %396 = arith.subf %395, %394 : vector<8x32xf32>
    %397 = math.exp %396 : vector<8x32xf32>
    %cst_169 = arith.constant 1.000000e+00 : f32
    %398 = vector.broadcast %cst_169 : f32 to vector<8x32xf32>
    %399 = arith.addf %398, %397 : vector<8x32xf32>
    %cst_170 = arith.constant 1.000000e+00 : f32
    %400 = vector.broadcast %cst_170 : f32 to vector<8x32xf32>
    %401 = arith.divf %400, %399 : vector<8x32xf32>
    %402 = arith.mulf %391, %362 : vector<8x32xf32>
    %403 = arith.mulf %383, %393 : vector<8x32xf32>
    %404 = arith.addf %402, %403 : vector<8x32xf32>
    %405 = math.tanh %404 : vector<8x32xf32>
    %406 = arith.mulf %401, %405 : vector<8x32xf32>
    %407 = vector.shape_cast %367 : vector<8x1xf32> to vector<8x1xf32>
    %408 = vector.broadcast %407 : vector<8x1xf32> to vector<8x32xf32>
    %409 = vector.shape_cast %368 : vector<8x1xf32> to vector<8x1xf32>
    %410 = vector.broadcast %409 : vector<8x1xf32> to vector<8x32xf32>
    %411 = arith.select %67, %408, %410 : vector<8x32xi1>, vector<8x32xf32>
    %412 = arith.mulf %411, %406 : vector<8x32xf32>
    %cst_171 = arith.constant 1.000000e+00 : f32
    %413 = vector.broadcast %cst_171 : f32 to vector<8x32xf32>
    %414 = arith.subf %413, %411 : vector<8x32xf32>
    %415 = arith.mulf %414, %357 : vector<8x32xf32>
    %416 = arith.addf %412, %415 : vector<8x32xf32>
    %417 = arith.mulf %411, %404 : vector<8x32xf32>
    %cst_172 = arith.constant 1.000000e+00 : f32
    %418 = vector.broadcast %cst_172 : f32 to vector<8x32xf32>
    %419 = arith.subf %418, %411 : vector<8x32xf32>
    %420 = arith.mulf %419, %362 : vector<8x32xf32>
    %421 = arith.addf %417, %420 : vector<8x32xf32>
    %422 = vector.extract_strided_slice %416 {offsets = [0, 0], sizes = [8, 16], strides = [1, 1]} : vector<8x32xf32> to vector<8x16xf32>
    %c40_173 = arith.constant 40 : index
    %c0_174 = arith.constant 0 : index
    %423 = vector.load %arg21[%c40_173, %c0_174] : memref<64x32xf32, #tpu.memory_space<vmem>>, vector<8x16xf32>
    tpu.vector_store %arg21[%c40_173, %c0_174], %422 {strides = array<i32>} : memref<64x32xf32, #tpu.memory_space<vmem>>, vector<8x16xf32>,
    %424 = vector.extract_strided_slice %416 {offsets = [0, 16], sizes = [8, 16], strides = [1, 1]} : vector<8x32xf32> to vector<8x16xf32>
    %c16_175 = arith.constant 16 : index
    %c16_176 = arith.constant 16 : index
    %425 = vector.load %arg21[%c16_175, %c16_176] : memref<64x32xf32, #tpu.memory_space<vmem>>, vector<8x16xf32>
    tpu.vector_store %arg21[%c16_175, %c16_176], %424 {strides = array<i32>} : memref<64x32xf32, #tpu.memory_space<vmem>>, vector<8x16xf32>,
    %c48_177 = arith.constant 48 : index
    %c0_178 = arith.constant 0 : index
    %426 = vector.load %arg3[%c48_177, %c0_178] : memref<64x1xf32, #tpu.memory_space<vmem>>, vector<8x1xf32>
    %c8_179 = arith.constant 8 : index
    %c0_180 = arith.constant 0 : index
    %427 = vector.load %arg3[%c8_179, %c0_180] : memref<64x1xf32, #tpu.memory_space<vmem>>, vector<8x1xf32>
    %c48_181 = arith.constant 48 : index
    %c0_182 = arith.constant 0 : index
    %428 = vector.load %arg20[%c48_181, %c0_182] : memref<64x128xf32, #tpu.memory_space<vmem>>, vector<8x128xf32>
    %c8_183 = arith.constant 8 : index
    %c0_184 = arith.constant 0 : index
    %429 = vector.load %arg20[%c8_183, %c0_184] : memref<64x128xf32, #tpu.memory_space<vmem>>, vector<8x128xf32>
    %430 = arith.select %64, %428, %429 : vector<8x128xi1>, vector<8x128xf32>
    %cst_185 = arith.constant dense<0.000000e+00> : vector<8x128xf32>
    %431 = tpu.matmul %416, %68, %cst_185 {dimension_numbers = #tpu.dot_dimension_numbers<[1], [0], [0], [1], [0, 0, 1, 1], [], []>} : vector<8x32xf32>, vector<32x128xf32>, vector<8x128xf32> -> vector<8x128xf32>
    %432 = arith.addf %430, %431 : vector<8x128xf32>
    %433 = vector.broadcast %69 : vector<1x128xf32> to vector<8x128xf32>
    %434 = arith.addf %432, %433 : vector<8x128xf32>
    %435 = vector.extract_strided_slice %434 {offsets = [0, 0], sizes = [8, 32], strides = [1, 1]} : vector<8x128xf32> to vector<8x32xf32>
    %cst_186 = arith.constant 0.000000e+00 : f32
    %436 = vector.broadcast %cst_186 : f32 to vector<8x32xf32>
    %437 = arith.subf %436, %435 : vector<8x32xf32>
    %438 = math.exp %437 : vector<8x32xf32>
    %cst_187 = arith.constant 1.000000e+00 : f32
    %439 = vector.broadcast %cst_187 : f32 to vector<8x32xf32>
    %440 = arith.addf %439, %438 : vector<8x32xf32>
    %cst_188 = arith.constant 1.000000e+00 : f32
    %441 = vector.broadcast %cst_188 : f32 to vector<8x32xf32>
    %442 = arith.divf %441, %440 : vector<8x32xf32>
    %443 = vector.extract_strided_slice %434 {offsets = [0, 32], sizes = [8, 32], strides = [1, 1]} : vector<8x128xf32> to vector<8x32xf32>
    %cst_189 = arith.constant 0.000000e+00 : f32
    %444 = vector.broadcast %cst_189 : f32 to vector<8x32xf32>
    %445 = arith.subf %444, %443 : vector<8x32xf32>
    %446 = math.exp %445 : vector<8x32xf32>
    %cst_190 = arith.constant 1.000000e+00 : f32
    %447 = vector.broadcast %cst_190 : f32 to vector<8x32xf32>
    %448 = arith.addf %447, %446 : vector<8x32xf32>
    %cst_191 = arith.constant 1.000000e+00 : f32
    %449 = vector.broadcast %cst_191 : f32 to vector<8x32xf32>
    %450 = arith.divf %449, %448 : vector<8x32xf32>
    %451 = vector.extract_strided_slice %434 {offsets = [0, 64], sizes = [8, 32], strides = [1, 1]} : vector<8x128xf32> to vector<8x32xf32>
    %452 = math.tanh %451 : vector<8x32xf32>
    %453 = vector.extract_strided_slice %434 {offsets = [0, 96], sizes = [8, 32], strides = [1, 1]} : vector<8x128xf32> to vector<8x32xf32>
    %cst_192 = arith.constant 0.000000e+00 : f32
    %454 = vector.broadcast %cst_192 : f32 to vector<8x32xf32>
    %455 = arith.subf %454, %453 : vector<8x32xf32>
    %456 = math.exp %455 : vector<8x32xf32>
    %cst_193 = arith.constant 1.000000e+00 : f32
    %457 = vector.broadcast %cst_193 : f32 to vector<8x32xf32>
    %458 = arith.addf %457, %456 : vector<8x32xf32>
    %cst_194 = arith.constant 1.000000e+00 : f32
    %459 = vector.broadcast %cst_194 : f32 to vector<8x32xf32>
    %460 = arith.divf %459, %458 : vector<8x32xf32>
    %461 = arith.mulf %450, %421 : vector<8x32xf32>
    %462 = arith.mulf %442, %452 : vector<8x32xf32>
    %463 = arith.addf %461, %462 : vector<8x32xf32>
    %464 = math.tanh %463 : vector<8x32xf32>
    %465 = arith.mulf %460, %464 : vector<8x32xf32>
    %466 = vector.shape_cast %426 : vector<8x1xf32> to vector<8x1xf32>
    %467 = vector.broadcast %466 : vector<8x1xf32> to vector<8x32xf32>
    %468 = vector.shape_cast %427 : vector<8x1xf32> to vector<8x1xf32>
    %469 = vector.broadcast %468 : vector<8x1xf32> to vector<8x32xf32>
    %470 = arith.select %67, %467, %469 : vector<8x32xi1>, vector<8x32xf32>
    %471 = arith.mulf %470, %465 : vector<8x32xf32>
    %cst_195 = arith.constant 1.000000e+00 : f32
    %472 = vector.broadcast %cst_195 : f32 to vector<8x32xf32>
    %473 = arith.subf %472, %470 : vector<8x32xf32>
    %474 = arith.mulf %473, %416 : vector<8x32xf32>
    %475 = arith.addf %471, %474 : vector<8x32xf32>
    %476 = arith.mulf %470, %463 : vector<8x32xf32>
    %cst_196 = arith.constant 1.000000e+00 : f32
    %477 = vector.broadcast %cst_196 : f32 to vector<8x32xf32>
    %478 = arith.subf %477, %470 : vector<8x32xf32>
    %479 = arith.mulf %478, %421 : vector<8x32xf32>
    %480 = arith.addf %476, %479 : vector<8x32xf32>
    %481 = vector.extract_strided_slice %475 {offsets = [0, 0], sizes = [8, 16], strides = [1, 1]} : vector<8x32xf32> to vector<8x16xf32>
    %c48_197 = arith.constant 48 : index
    %c0_198 = arith.constant 0 : index
    %482 = vector.load %arg21[%c48_197, %c0_198] : memref<64x32xf32, #tpu.memory_space<vmem>>, vector<8x16xf32>
    tpu.vector_store %arg21[%c48_197, %c0_198], %481 {strides = array<i32>} : memref<64x32xf32, #tpu.memory_space<vmem>>, vector<8x16xf32>,
    %483 = vector.extract_strided_slice %475 {offsets = [0, 16], sizes = [8, 16], strides = [1, 1]} : vector<8x32xf32> to vector<8x16xf32>
    %c8_199 = arith.constant 8 : index
    %c16_200 = arith.constant 16 : index
    %484 = vector.load %arg21[%c8_199, %c16_200] : memref<64x32xf32, #tpu.memory_space<vmem>>, vector<8x16xf32>
    tpu.vector_store %arg21[%c8_199, %c16_200], %483 {strides = array<i32>} : memref<64x32xf32, #tpu.memory_space<vmem>>, vector<8x16xf32>,
    %c56_201 = arith.constant 56 : index
    %c0_202 = arith.constant 0 : index
    %485 = vector.load %arg3[%c56_201, %c0_202] : memref<64x1xf32, #tpu.memory_space<vmem>>, vector<8x1xf32>
    %c0_203 = arith.constant 0 : index
    %c0_204 = arith.constant 0 : index
    %486 = vector.load %arg3[%c0_203, %c0_204] : memref<64x1xf32, #tpu.memory_space<vmem>>, vector<8x1xf32>
    %c56_205 = arith.constant 56 : index
    %c0_206 = arith.constant 0 : index
    %487 = vector.load %arg20[%c56_205, %c0_206] : memref<64x128xf32, #tpu.memory_space<vmem>>, vector<8x128xf32>
    %c0_207 = arith.constant 0 : index
    %c0_208 = arith.constant 0 : index
    %488 = vector.load %arg20[%c0_207, %c0_208] : memref<64x128xf32, #tpu.memory_space<vmem>>, vector<8x128xf32>
    %489 = arith.select %64, %487, %488 : vector<8x128xi1>, vector<8x128xf32>
    %cst_209 = arith.constant dense<0.000000e+00> : vector<8x128xf32>
    %490 = tpu.matmul %475, %68, %cst_209 {dimension_numbers = #tpu.dot_dimension_numbers<[1], [0], [0], [1], [0, 0, 1, 1], [], []>} : vector<8x32xf32>, vector<32x128xf32>, vector<8x128xf32> -> vector<8x128xf32>
    %491 = arith.addf %489, %490 : vector<8x128xf32>
    %492 = vector.broadcast %69 : vector<1x128xf32> to vector<8x128xf32>
    %493 = arith.addf %491, %492 : vector<8x128xf32>
    %494 = vector.extract_strided_slice %493 {offsets = [0, 0], sizes = [8, 32], strides = [1, 1]} : vector<8x128xf32> to vector<8x32xf32>
    %cst_210 = arith.constant 0.000000e+00 : f32
    %495 = vector.broadcast %cst_210 : f32 to vector<8x32xf32>
    %496 = arith.subf %495, %494 : vector<8x32xf32>
    %497 = math.exp %496 : vector<8x32xf32>
    %cst_211 = arith.constant 1.000000e+00 : f32
    %498 = vector.broadcast %cst_211 : f32 to vector<8x32xf32>
    %499 = arith.addf %498, %497 : vector<8x32xf32>
    %cst_212 = arith.constant 1.000000e+00 : f32
    %500 = vector.broadcast %cst_212 : f32 to vector<8x32xf32>
    %501 = arith.divf %500, %499 : vector<8x32xf32>
    %502 = vector.extract_strided_slice %493 {offsets = [0, 32], sizes = [8, 32], strides = [1, 1]} : vector<8x128xf32> to vector<8x32xf32>
    %cst_213 = arith.constant 0.000000e+00 : f32
    %503 = vector.broadcast %cst_213 : f32 to vector<8x32xf32>
    %504 = arith.subf %503, %502 : vector<8x32xf32>
    %505 = math.exp %504 : vector<8x32xf32>
    %cst_214 = arith.constant 1.000000e+00 : f32
    %506 = vector.broadcast %cst_214 : f32 to vector<8x32xf32>
    %507 = arith.addf %506, %505 : vector<8x32xf32>
    %cst_215 = arith.constant 1.000000e+00 : f32
    %508 = vector.broadcast %cst_215 : f32 to vector<8x32xf32>
    %509 = arith.divf %508, %507 : vector<8x32xf32>
    %510 = vector.extract_strided_slice %493 {offsets = [0, 64], sizes = [8, 32], strides = [1, 1]} : vector<8x128xf32> to vector<8x32xf32>
    %511 = math.tanh %510 : vector<8x32xf32>
    %512 = vector.extract_strided_slice %493 {offsets = [0, 96], sizes = [8, 32], strides = [1, 1]} : vector<8x128xf32> to vector<8x32xf32>
    %cst_216 = arith.constant 0.000000e+00 : f32
    %513 = vector.broadcast %cst_216 : f32 to vector<8x32xf32>
    %514 = arith.subf %513, %512 : vector<8x32xf32>
    %515 = math.exp %514 : vector<8x32xf32>
    %cst_217 = arith.constant 1.000000e+00 : f32
    %516 = vector.broadcast %cst_217 : f32 to vector<8x32xf32>
    %517 = arith.addf %516, %515 : vector<8x32xf32>
    %cst_218 = arith.constant 1.000000e+00 : f32
    %518 = vector.broadcast %cst_218 : f32 to vector<8x32xf32>
    %519 = arith.divf %518, %517 : vector<8x32xf32>
    %520 = arith.mulf %509, %480 : vector<8x32xf32>
    %521 = arith.mulf %501, %511 : vector<8x32xf32>
    %522 = arith.addf %520, %521 : vector<8x32xf32>
    %523 = math.tanh %522 : vector<8x32xf32>
    %524 = arith.mulf %519, %523 : vector<8x32xf32>
    %525 = vector.shape_cast %485 : vector<8x1xf32> to vector<8x1xf32>
    %526 = vector.broadcast %525 : vector<8x1xf32> to vector<8x32xf32>
    %527 = vector.shape_cast %486 : vector<8x1xf32> to vector<8x1xf32>
    %528 = vector.broadcast %527 : vector<8x1xf32> to vector<8x32xf32>
    %529 = arith.select %67, %526, %528 : vector<8x32xi1>, vector<8x32xf32>
    %530 = arith.mulf %529, %524 : vector<8x32xf32>
    %cst_219 = arith.constant 1.000000e+00 : f32
    %531 = vector.broadcast %cst_219 : f32 to vector<8x32xf32>
    %532 = arith.subf %531, %529 : vector<8x32xf32>
    %533 = arith.mulf %532, %475 : vector<8x32xf32>
    %534 = arith.addf %530, %533 : vector<8x32xf32>
    %535 = vector.extract_strided_slice %534 {offsets = [0, 0], sizes = [8, 16], strides = [1, 1]} : vector<8x32xf32> to vector<8x16xf32>
    %c56_220 = arith.constant 56 : index
    %c0_221 = arith.constant 0 : index
    %536 = vector.load %arg21[%c56_220, %c0_221] : memref<64x32xf32, #tpu.memory_space<vmem>>, vector<8x16xf32>
    tpu.vector_store %arg21[%c56_220, %c0_221], %535 {strides = array<i32>} : memref<64x32xf32, #tpu.memory_space<vmem>>, vector<8x16xf32>,
    %537 = vector.extract_strided_slice %534 {offsets = [0, 16], sizes = [8, 16], strides = [1, 1]} : vector<8x32xf32> to vector<8x16xf32>
    %c0_222 = arith.constant 0 : index
    %c16_223 = arith.constant 16 : index
    %538 = vector.load %arg21[%c0_222, %c16_223] : memref<64x32xf32, #tpu.memory_space<vmem>>, vector<8x16xf32>
    tpu.vector_store %arg21[%c0_222, %c16_223], %537 {strides = array<i32>} : memref<64x32xf32, #tpu.memory_space<vmem>>, vector<8x16xf32>,
    %c0_224 = arith.constant 0 : index
    %c0_225 = arith.constant 0 : index
    %539 = vector.load %arg21[%c0_224, %c0_225] : memref<64x32xf32, #tpu.memory_space<vmem>>, vector<64x32xf32>
    %c0_226 = arith.constant 0 : index
    %c0_227 = arith.constant 0 : index
    %540 = vector.load %arg9[%c0_226, %c0_227] : memref<32x128xf32, #tpu.memory_space<vmem>>, vector<32x128xf32>
    %cst_228 = arith.constant dense<0.000000e+00> : vector<64x128xf32>
    %541 = tpu.matmul %539, %540, %cst_228 {dimension_numbers = #tpu.dot_dimension_numbers<[1], [0], [0], [1], [0, 0, 1, 1], [], []>} : vector<64x32xf32>, vector<32x128xf32>, vector<64x128xf32> -> vector<64x128xf32>
    %c0_229 = arith.constant 0 : index
    %c0_230 = arith.constant 0 : index
    %542 = vector.load %arg20[%c0_229, %c0_230] : memref<64x128xf32, #tpu.memory_space<vmem>>, vector<64x128xf32>
    tpu.vector_store %arg20[%c0_229, %c0_230], %541 {strides = array<i32>} : memref<64x128xf32, #tpu.memory_space<vmem>>, vector<64x128xf32>,
    %c0_231 = arith.constant 0 : index
    %c0_232 = arith.constant 0 : index
    %543 = vector.load %arg10[%c0_231, %c0_232] : memref<32x128xf32, #tpu.memory_space<vmem>>, vector<32x128xf32>
    %c0_233 = arith.constant 0 : index
    %c0_234 = arith.constant 0 : index
    %544 = vector.load %arg11[%c0_233, %c0_234] : memref<1x128xf32, #tpu.memory_space<vmem>>, vector<1x128xf32>
    %cst_235 = arith.constant 0.000000e+00 : f32
    %545 = vector.broadcast %cst_235 : f32 to vector<8x32xf32>
    %cst_236 = arith.constant 0.000000e+00 : f32
    %546 = vector.broadcast %cst_236 : f32 to vector<8x32xf32>
    %c0_237 = arith.constant 0 : index
    %c0_238 = arith.constant 0 : index
    %547 = vector.load %arg3[%c0_237, %c0_238] : memref<64x1xf32, #tpu.memory_space<vmem>>, vector<8x1xf32>
    %c56_239 = arith.constant 56 : index
    %c0_240 = arith.constant 0 : index
    %548 = vector.load %arg3[%c56_239, %c0_240] : memref<64x1xf32, #tpu.memory_space<vmem>>, vector<8x1xf32>
    %c0_241 = arith.constant 0 : index
    %c0_242 = arith.constant 0 : index
    %549 = vector.load %arg20[%c0_241, %c0_242] : memref<64x128xf32, #tpu.memory_space<vmem>>, vector<8x128xf32>
    %c56_243 = arith.constant 56 : index
    %c0_244 = arith.constant 0 : index
    %550 = vector.load %arg20[%c56_243, %c0_244] : memref<64x128xf32, #tpu.memory_space<vmem>>, vector<8x128xf32>
    %551 = arith.select %64, %549, %550 : vector<8x128xi1>, vector<8x128xf32>
    %cst_245 = arith.constant dense<0.000000e+00> : vector<8x128xf32>
    %552 = tpu.matmul %545, %543, %cst_245 {dimension_numbers = #tpu.dot_dimension_numbers<[1], [0], [0], [1], [0, 0, 1, 1], [], []>} : vector<8x32xf32>, vector<32x128xf32>, vector<8x128xf32> -> vector<8x128xf32>
    %553 = arith.addf %551, %552 : vector<8x128xf32>
    %554 = vector.broadcast %544 : vector<1x128xf32> to vector<8x128xf32>
    %555 = arith.addf %553, %554 : vector<8x128xf32>
    %556 = vector.extract_strided_slice %555 {offsets = [0, 0], sizes = [8, 32], strides = [1, 1]} : vector<8x128xf32> to vector<8x32xf32>
    %cst_246 = arith.constant 0.000000e+00 : f32
    %557 = vector.broadcast %cst_246 : f32 to vector<8x32xf32>
    %558 = arith.subf %557, %556 : vector<8x32xf32>
    %559 = math.exp %558 : vector<8x32xf32>
    %cst_247 = arith.constant 1.000000e+00 : f32
    %560 = vector.broadcast %cst_247 : f32 to vector<8x32xf32>
    %561 = arith.addf %560, %559 : vector<8x32xf32>
    %cst_248 = arith.constant 1.000000e+00 : f32
    %562 = vector.broadcast %cst_248 : f32 to vector<8x32xf32>
    %563 = arith.divf %562, %561 : vector<8x32xf32>
    %564 = vector.extract_strided_slice %555 {offsets = [0, 32], sizes = [8, 32], strides = [1, 1]} : vector<8x128xf32> to vector<8x32xf32>
    %cst_249 = arith.constant 0.000000e+00 : f32
    %565 = vector.broadcast %cst_249 : f32 to vector<8x32xf32>
    %566 = arith.subf %565, %564 : vector<8x32xf32>
    %567 = math.exp %566 : vector<8x32xf32>
    %cst_250 = arith.constant 1.000000e+00 : f32
    %568 = vector.broadcast %cst_250 : f32 to vector<8x32xf32>
    %569 = arith.addf %568, %567 : vector<8x32xf32>
    %cst_251 = arith.constant 1.000000e+00 : f32
    %570 = vector.broadcast %cst_251 : f32 to vector<8x32xf32>
    %571 = arith.divf %570, %569 : vector<8x32xf32>
    %572 = vector.extract_strided_slice %555 {offsets = [0, 64], sizes = [8, 32], strides = [1, 1]} : vector<8x128xf32> to vector<8x32xf32>
    %573 = math.tanh %572 : vector<8x32xf32>
    %574 = vector.extract_strided_slice %555 {offsets = [0, 96], sizes = [8, 32], strides = [1, 1]} : vector<8x128xf32> to vector<8x32xf32>
    %cst_252 = arith.constant 0.000000e+00 : f32
    %575 = vector.broadcast %cst_252 : f32 to vector<8x32xf32>
    %576 = arith.subf %575, %574 : vector<8x32xf32>
    %577 = math.exp %576 : vector<8x32xf32>
    %cst_253 = arith.constant 1.000000e+00 : f32
    %578 = vector.broadcast %cst_253 : f32 to vector<8x32xf32>
    %579 = arith.addf %578, %577 : vector<8x32xf32>
    %cst_254 = arith.constant 1.000000e+00 : f32
    %580 = vector.broadcast %cst_254 : f32 to vector<8x32xf32>
    %581 = arith.divf %580, %579 : vector<8x32xf32>
    %582 = arith.mulf %571, %546 : vector<8x32xf32>
    %583 = arith.mulf %563, %573 : vector<8x32xf32>
    %584 = arith.addf %582, %583 : vector<8x32xf32>
    %585 = math.tanh %584 : vector<8x32xf32>
    %586 = arith.mulf %581, %585 : vector<8x32xf32>
    %587 = vector.shape_cast %547 : vector<8x1xf32> to vector<8x1xf32>
    %588 = vector.broadcast %587 : vector<8x1xf32> to vector<8x32xf32>
    %589 = vector.shape_cast %548 : vector<8x1xf32> to vector<8x1xf32>
    %590 = vector.broadcast %589 : vector<8x1xf32> to vector<8x32xf32>
    %591 = arith.select %67, %588, %590 : vector<8x32xi1>, vector<8x32xf32>
    %592 = arith.mulf %591, %586 : vector<8x32xf32>
    %cst_255 = arith.constant 1.000000e+00 : f32
    %593 = vector.broadcast %cst_255 : f32 to vector<8x32xf32>
    %594 = arith.subf %593, %591 : vector<8x32xf32>
    %595 = arith.mulf %594, %545 : vector<8x32xf32>
    %596 = arith.addf %592, %595 : vector<8x32xf32>
    %597 = arith.mulf %591, %584 : vector<8x32xf32>
    %cst_256 = arith.constant 1.000000e+00 : f32
    %598 = vector.broadcast %cst_256 : f32 to vector<8x32xf32>
    %599 = arith.subf %598, %591 : vector<8x32xf32>
    %600 = arith.mulf %599, %546 : vector<8x32xf32>
    %601 = arith.addf %597, %600 : vector<8x32xf32>
    %602 = vector.extract_strided_slice %596 {offsets = [0, 0], sizes = [8, 16], strides = [1, 1]} : vector<8x32xf32> to vector<8x16xf32>
    %c0_257 = arith.constant 0 : index
    %c0_258 = arith.constant 0 : index
    %603 = vector.load %arg21[%c0_257, %c0_258] : memref<64x32xf32, #tpu.memory_space<vmem>>, vector<8x16xf32>
    tpu.vector_store %arg21[%c0_257, %c0_258], %602 {strides = array<i32>} : memref<64x32xf32, #tpu.memory_space<vmem>>, vector<8x16xf32>,
    %604 = vector.extract_strided_slice %596 {offsets = [0, 16], sizes = [8, 16], strides = [1, 1]} : vector<8x32xf32> to vector<8x16xf32>
    %c56_259 = arith.constant 56 : index
    %c16_260 = arith.constant 16 : index
    %605 = vector.load %arg21[%c56_259, %c16_260] : memref<64x32xf32, #tpu.memory_space<vmem>>, vector<8x16xf32>
    tpu.vector_store %arg21[%c56_259, %c16_260], %604 {strides = array<i32>} : memref<64x32xf32, #tpu.memory_space<vmem>>, vector<8x16xf32>,
    %c8_261 = arith.constant 8 : index
    %c0_262 = arith.constant 0 : index
    %606 = vector.load %arg3[%c8_261, %c0_262] : memref<64x1xf32, #tpu.memory_space<vmem>>, vector<8x1xf32>
    %c48_263 = arith.constant 48 : index
    %c0_264 = arith.constant 0 : index
    %607 = vector.load %arg3[%c48_263, %c0_264] : memref<64x1xf32, #tpu.memory_space<vmem>>, vector<8x1xf32>
    %c8_265 = arith.constant 8 : index
    %c0_266 = arith.constant 0 : index
    %608 = vector.load %arg20[%c8_265, %c0_266] : memref<64x128xf32, #tpu.memory_space<vmem>>, vector<8x128xf32>
    %c48_267 = arith.constant 48 : index
    %c0_268 = arith.constant 0 : index
    %609 = vector.load %arg20[%c48_267, %c0_268] : memref<64x128xf32, #tpu.memory_space<vmem>>, vector<8x128xf32>
    %610 = arith.select %64, %608, %609 : vector<8x128xi1>, vector<8x128xf32>
    %cst_269 = arith.constant dense<0.000000e+00> : vector<8x128xf32>
    %611 = tpu.matmul %596, %543, %cst_269 {dimension_numbers = #tpu.dot_dimension_numbers<[1], [0], [0], [1], [0, 0, 1, 1], [], []>} : vector<8x32xf32>, vector<32x128xf32>, vector<8x128xf32> -> vector<8x128xf32>
    %612 = arith.addf %610, %611 : vector<8x128xf32>
    %613 = vector.broadcast %544 : vector<1x128xf32> to vector<8x128xf32>
    %614 = arith.addf %612, %613 : vector<8x128xf32>
    %615 = vector.extract_strided_slice %614 {offsets = [0, 0], sizes = [8, 32], strides = [1, 1]} : vector<8x128xf32> to vector<8x32xf32>
    %cst_270 = arith.constant 0.000000e+00 : f32
    %616 = vector.broadcast %cst_270 : f32 to vector<8x32xf32>
    %617 = arith.subf %616, %615 : vector<8x32xf32>
    %618 = math.exp %617 : vector<8x32xf32>
    %cst_271 = arith.constant 1.000000e+00 : f32
    %619 = vector.broadcast %cst_271 : f32 to vector<8x32xf32>
    %620 = arith.addf %619, %618 : vector<8x32xf32>
    %cst_272 = arith.constant 1.000000e+00 : f32
    %621 = vector.broadcast %cst_272 : f32 to vector<8x32xf32>
    %622 = arith.divf %621, %620 : vector<8x32xf32>
    %623 = vector.extract_strided_slice %614 {offsets = [0, 32], sizes = [8, 32], strides = [1, 1]} : vector<8x128xf32> to vector<8x32xf32>
    %cst_273 = arith.constant 0.000000e+00 : f32
    %624 = vector.broadcast %cst_273 : f32 to vector<8x32xf32>
    %625 = arith.subf %624, %623 : vector<8x32xf32>
    %626 = math.exp %625 : vector<8x32xf32>
    %cst_274 = arith.constant 1.000000e+00 : f32
    %627 = vector.broadcast %cst_274 : f32 to vector<8x32xf32>
    %628 = arith.addf %627, %626 : vector<8x32xf32>
    %cst_275 = arith.constant 1.000000e+00 : f32
    %629 = vector.broadcast %cst_275 : f32 to vector<8x32xf32>
    %630 = arith.divf %629, %628 : vector<8x32xf32>
    %631 = vector.extract_strided_slice %614 {offsets = [0, 64], sizes = [8, 32], strides = [1, 1]} : vector<8x128xf32> to vector<8x32xf32>
    %632 = math.tanh %631 : vector<8x32xf32>
    %633 = vector.extract_strided_slice %614 {offsets = [0, 96], sizes = [8, 32], strides = [1, 1]} : vector<8x128xf32> to vector<8x32xf32>
    %cst_276 = arith.constant 0.000000e+00 : f32
    %634 = vector.broadcast %cst_276 : f32 to vector<8x32xf32>
    %635 = arith.subf %634, %633 : vector<8x32xf32>
    %636 = math.exp %635 : vector<8x32xf32>
    %cst_277 = arith.constant 1.000000e+00 : f32
    %637 = vector.broadcast %cst_277 : f32 to vector<8x32xf32>
    %638 = arith.addf %637, %636 : vector<8x32xf32>
    %cst_278 = arith.constant 1.000000e+00 : f32
    %639 = vector.broadcast %cst_278 : f32 to vector<8x32xf32>
    %640 = arith.divf %639, %638 : vector<8x32xf32>
    %641 = arith.mulf %630, %601 : vector<8x32xf32>
    %642 = arith.mulf %622, %632 : vector<8x32xf32>
    %643 = arith.addf %641, %642 : vector<8x32xf32>
    %644 = math.tanh %643 : vector<8x32xf32>
    %645 = arith.mulf %640, %644 : vector<8x32xf32>
    %646 = vector.shape_cast %606 : vector<8x1xf32> to vector<8x1xf32>
    %647 = vector.broadcast %646 : vector<8x1xf32> to vector<8x32xf32>
    %648 = vector.shape_cast %607 : vector<8x1xf32> to vector<8x1xf32>
    %649 = vector.broadcast %648 : vector<8x1xf32> to vector<8x32xf32>
    %650 = arith.select %67, %647, %649 : vector<8x32xi1>, vector<8x32xf32>
    %651 = arith.mulf %650, %645 : vector<8x32xf32>
    %cst_279 = arith.constant 1.000000e+00 : f32
    %652 = vector.broadcast %cst_279 : f32 to vector<8x32xf32>
    %653 = arith.subf %652, %650 : vector<8x32xf32>
    %654 = arith.mulf %653, %596 : vector<8x32xf32>
    %655 = arith.addf %651, %654 : vector<8x32xf32>
    %656 = arith.mulf %650, %643 : vector<8x32xf32>
    %cst_280 = arith.constant 1.000000e+00 : f32
    %657 = vector.broadcast %cst_280 : f32 to vector<8x32xf32>
    %658 = arith.subf %657, %650 : vector<8x32xf32>
    %659 = arith.mulf %658, %601 : vector<8x32xf32>
    %660 = arith.addf %656, %659 : vector<8x32xf32>
    %661 = vector.extract_strided_slice %655 {offsets = [0, 0], sizes = [8, 16], strides = [1, 1]} : vector<8x32xf32> to vector<8x16xf32>
    %c8_281 = arith.constant 8 : index
    %c0_282 = arith.constant 0 : index
    %662 = vector.load %arg21[%c8_281, %c0_282] : memref<64x32xf32, #tpu.memory_space<vmem>>, vector<8x16xf32>
    tpu.vector_store %arg21[%c8_281, %c0_282], %661 {strides = array<i32>} : memref<64x32xf32, #tpu.memory_space<vmem>>, vector<8x16xf32>,
    %663 = vector.extract_strided_slice %655 {offsets = [0, 16], sizes = [8, 16], strides = [1, 1]} : vector<8x32xf32> to vector<8x16xf32>
    %c48_283 = arith.constant 48 : index
    %c16_284 = arith.constant 16 : index
    %664 = vector.load %arg21[%c48_283, %c16_284] : memref<64x32xf32, #tpu.memory_space<vmem>>, vector<8x16xf32>
    tpu.vector_store %arg21[%c48_283, %c16_284], %663 {strides = array<i32>} : memref<64x32xf32, #tpu.memory_space<vmem>>, vector<8x16xf32>,
    %c16_285 = arith.constant 16 : index
    %c0_286 = arith.constant 0 : index
    %665 = vector.load %arg3[%c16_285, %c0_286] : memref<64x1xf32, #tpu.memory_space<vmem>>, vector<8x1xf32>
    %c40_287 = arith.constant 40 : index
    %c0_288 = arith.constant 0 : index
    %666 = vector.load %arg3[%c40_287, %c0_288] : memref<64x1xf32, #tpu.memory_space<vmem>>, vector<8x1xf32>
    %c16_289 = arith.constant 16 : index
    %c0_290 = arith.constant 0 : index
    %667 = vector.load %arg20[%c16_289, %c0_290] : memref<64x128xf32, #tpu.memory_space<vmem>>, vector<8x128xf32>
    %c40_291 = arith.constant 40 : index
    %c0_292 = arith.constant 0 : index
    %668 = vector.load %arg20[%c40_291, %c0_292] : memref<64x128xf32, #tpu.memory_space<vmem>>, vector<8x128xf32>
    %669 = arith.select %64, %667, %668 : vector<8x128xi1>, vector<8x128xf32>
    %cst_293 = arith.constant dense<0.000000e+00> : vector<8x128xf32>
    %670 = tpu.matmul %655, %543, %cst_293 {dimension_numbers = #tpu.dot_dimension_numbers<[1], [0], [0], [1], [0, 0, 1, 1], [], []>} : vector<8x32xf32>, vector<32x128xf32>, vector<8x128xf32> -> vector<8x128xf32>
    %671 = arith.addf %669, %670 : vector<8x128xf32>
    %672 = vector.broadcast %544 : vector<1x128xf32> to vector<8x128xf32>
    %673 = arith.addf %671, %672 : vector<8x128xf32>
    %674 = vector.extract_strided_slice %673 {offsets = [0, 0], sizes = [8, 32], strides = [1, 1]} : vector<8x128xf32> to vector<8x32xf32>
    %cst_294 = arith.constant 0.000000e+00 : f32
    %675 = vector.broadcast %cst_294 : f32 to vector<8x32xf32>
    %676 = arith.subf %675, %674 : vector<8x32xf32>
    %677 = math.exp %676 : vector<8x32xf32>
    %cst_295 = arith.constant 1.000000e+00 : f32
    %678 = vector.broadcast %cst_295 : f32 to vector<8x32xf32>
    %679 = arith.addf %678, %677 : vector<8x32xf32>
    %cst_296 = arith.constant 1.000000e+00 : f32
    %680 = vector.broadcast %cst_296 : f32 to vector<8x32xf32>
    %681 = arith.divf %680, %679 : vector<8x32xf32>
    %682 = vector.extract_strided_slice %673 {offsets = [0, 32], sizes = [8, 32], strides = [1, 1]} : vector<8x128xf32> to vector<8x32xf32>
    %cst_297 = arith.constant 0.000000e+00 : f32
    %683 = vector.broadcast %cst_297 : f32 to vector<8x32xf32>
    %684 = arith.subf %683, %682 : vector<8x32xf32>
    %685 = math.exp %684 : vector<8x32xf32>
    %cst_298 = arith.constant 1.000000e+00 : f32
    %686 = vector.broadcast %cst_298 : f32 to vector<8x32xf32>
    %687 = arith.addf %686, %685 : vector<8x32xf32>
    %cst_299 = arith.constant 1.000000e+00 : f32
    %688 = vector.broadcast %cst_299 : f32 to vector<8x32xf32>
    %689 = arith.divf %688, %687 : vector<8x32xf32>
    %690 = vector.extract_strided_slice %673 {offsets = [0, 64], sizes = [8, 32], strides = [1, 1]} : vector<8x128xf32> to vector<8x32xf32>
    %691 = math.tanh %690 : vector<8x32xf32>
    %692 = vector.extract_strided_slice %673 {offsets = [0, 96], sizes = [8, 32], strides = [1, 1]} : vector<8x128xf32> to vector<8x32xf32>
    %cst_300 = arith.constant 0.000000e+00 : f32
    %693 = vector.broadcast %cst_300 : f32 to vector<8x32xf32>
    %694 = arith.subf %693, %692 : vector<8x32xf32>
    %695 = math.exp %694 : vector<8x32xf32>
    %cst_301 = arith.constant 1.000000e+00 : f32
    %696 = vector.broadcast %cst_301 : f32 to vector<8x32xf32>
    %697 = arith.addf %696, %695 : vector<8x32xf32>
    %cst_302 = arith.constant 1.000000e+00 : f32
    %698 = vector.broadcast %cst_302 : f32 to vector<8x32xf32>
    %699 = arith.divf %698, %697 : vector<8x32xf32>
    %700 = arith.mulf %689, %660 : vector<8x32xf32>
    %701 = arith.mulf %681, %691 : vector<8x32xf32>
    %702 = arith.addf %700, %701 : vector<8x32xf32>
    %703 = math.tanh %702 : vector<8x32xf32>
    %704 = arith.mulf %699, %703 : vector<8x32xf32>
    %705 = vector.shape_cast %665 : vector<8x1xf32> to vector<8x1xf32>
    %706 = vector.broadcast %705 : vector<8x1xf32> to vector<8x32xf32>
    %707 = vector.shape_cast %666 : vector<8x1xf32> to vector<8x1xf32>
    %708 = vector.broadcast %707 : vector<8x1xf32> to vector<8x32xf32>
    %709 = arith.select %67, %706, %708 : vector<8x32xi1>, vector<8x32xf32>
    %710 = arith.mulf %709, %704 : vector<8x32xf32>
    %cst_303 = arith.constant 1.000000e+00 : f32
    %711 = vector.broadcast %cst_303 : f32 to vector<8x32xf32>
    %712 = arith.subf %711, %709 : vector<8x32xf32>
    %713 = arith.mulf %712, %655 : vector<8x32xf32>
    %714 = arith.addf %710, %713 : vector<8x32xf32>
    %715 = arith.mulf %709, %702 : vector<8x32xf32>
    %cst_304 = arith.constant 1.000000e+00 : f32
    %716 = vector.broadcast %cst_304 : f32 to vector<8x32xf32>
    %717 = arith.subf %716, %709 : vector<8x32xf32>
    %718 = arith.mulf %717, %660 : vector<8x32xf32>
    %719 = arith.addf %715, %718 : vector<8x32xf32>
    %720 = vector.extract_strided_slice %714 {offsets = [0, 0], sizes = [8, 16], strides = [1, 1]} : vector<8x32xf32> to vector<8x16xf32>
    %c16_305 = arith.constant 16 : index
    %c0_306 = arith.constant 0 : index
    %721 = vector.load %arg21[%c16_305, %c0_306] : memref<64x32xf32, #tpu.memory_space<vmem>>, vector<8x16xf32>
    tpu.vector_store %arg21[%c16_305, %c0_306], %720 {strides = array<i32>} : memref<64x32xf32, #tpu.memory_space<vmem>>, vector<8x16xf32>,
    %722 = vector.extract_strided_slice %714 {offsets = [0, 16], sizes = [8, 16], strides = [1, 1]} : vector<8x32xf32> to vector<8x16xf32>
    %c40_307 = arith.constant 40 : index
    %c16_308 = arith.constant 16 : index
    %723 = vector.load %arg21[%c40_307, %c16_308] : memref<64x32xf32, #tpu.memory_space<vmem>>, vector<8x16xf32>
    tpu.vector_store %arg21[%c40_307, %c16_308], %722 {strides = array<i32>} : memref<64x32xf32, #tpu.memory_space<vmem>>, vector<8x16xf32>,
    %c24_309 = arith.constant 24 : index
    %c0_310 = arith.constant 0 : index
    %724 = vector.load %arg3[%c24_309, %c0_310] : memref<64x1xf32, #tpu.memory_space<vmem>>, vector<8x1xf32>
    %c32_311 = arith.constant 32 : index
    %c0_312 = arith.constant 0 : index
    %725 = vector.load %arg3[%c32_311, %c0_312] : memref<64x1xf32, #tpu.memory_space<vmem>>, vector<8x1xf32>
    %c24_313 = arith.constant 24 : index
    %c0_314 = arith.constant 0 : index
    %726 = vector.load %arg20[%c24_313, %c0_314] : memref<64x128xf32, #tpu.memory_space<vmem>>, vector<8x128xf32>
    %c32_315 = arith.constant 32 : index
    %c0_316 = arith.constant 0 : index
    %727 = vector.load %arg20[%c32_315, %c0_316] : memref<64x128xf32, #tpu.memory_space<vmem>>, vector<8x128xf32>
    %728 = arith.select %64, %726, %727 : vector<8x128xi1>, vector<8x128xf32>
    %cst_317 = arith.constant dense<0.000000e+00> : vector<8x128xf32>
    %729 = tpu.matmul %714, %543, %cst_317 {dimension_numbers = #tpu.dot_dimension_numbers<[1], [0], [0], [1], [0, 0, 1, 1], [], []>} : vector<8x32xf32>, vector<32x128xf32>, vector<8x128xf32> -> vector<8x128xf32>
    %730 = arith.addf %728, %729 : vector<8x128xf32>
    %731 = vector.broadcast %544 : vector<1x128xf32> to vector<8x128xf32>
    %732 = arith.addf %730, %731 : vector<8x128xf32>
    %733 = vector.extract_strided_slice %732 {offsets = [0, 0], sizes = [8, 32], strides = [1, 1]} : vector<8x128xf32> to vector<8x32xf32>
    %cst_318 = arith.constant 0.000000e+00 : f32
    %734 = vector.broadcast %cst_318 : f32 to vector<8x32xf32>
    %735 = arith.subf %734, %733 : vector<8x32xf32>
    %736 = math.exp %735 : vector<8x32xf32>
    %cst_319 = arith.constant 1.000000e+00 : f32
    %737 = vector.broadcast %cst_319 : f32 to vector<8x32xf32>
    %738 = arith.addf %737, %736 : vector<8x32xf32>
    %cst_320 = arith.constant 1.000000e+00 : f32
    %739 = vector.broadcast %cst_320 : f32 to vector<8x32xf32>
    %740 = arith.divf %739, %738 : vector<8x32xf32>
    %741 = vector.extract_strided_slice %732 {offsets = [0, 32], sizes = [8, 32], strides = [1, 1]} : vector<8x128xf32> to vector<8x32xf32>
    %cst_321 = arith.constant 0.000000e+00 : f32
    %742 = vector.broadcast %cst_321 : f32 to vector<8x32xf32>
    %743 = arith.subf %742, %741 : vector<8x32xf32>
    %744 = math.exp %743 : vector<8x32xf32>
    %cst_322 = arith.constant 1.000000e+00 : f32
    %745 = vector.broadcast %cst_322 : f32 to vector<8x32xf32>
    %746 = arith.addf %745, %744 : vector<8x32xf32>
    %cst_323 = arith.constant 1.000000e+00 : f32
    %747 = vector.broadcast %cst_323 : f32 to vector<8x32xf32>
    %748 = arith.divf %747, %746 : vector<8x32xf32>
    %749 = vector.extract_strided_slice %732 {offsets = [0, 64], sizes = [8, 32], strides = [1, 1]} : vector<8x128xf32> to vector<8x32xf32>
    %750 = math.tanh %749 : vector<8x32xf32>
    %751 = vector.extract_strided_slice %732 {offsets = [0, 96], sizes = [8, 32], strides = [1, 1]} : vector<8x128xf32> to vector<8x32xf32>
    %cst_324 = arith.constant 0.000000e+00 : f32
    %752 = vector.broadcast %cst_324 : f32 to vector<8x32xf32>
    %753 = arith.subf %752, %751 : vector<8x32xf32>
    %754 = math.exp %753 : vector<8x32xf32>
    %cst_325 = arith.constant 1.000000e+00 : f32
    %755 = vector.broadcast %cst_325 : f32 to vector<8x32xf32>
    %756 = arith.addf %755, %754 : vector<8x32xf32>
    %cst_326 = arith.constant 1.000000e+00 : f32
    %757 = vector.broadcast %cst_326 : f32 to vector<8x32xf32>
    %758 = arith.divf %757, %756 : vector<8x32xf32>
    %759 = arith.mulf %748, %719 : vector<8x32xf32>
    %760 = arith.mulf %740, %750 : vector<8x32xf32>
    %761 = arith.addf %759, %760 : vector<8x32xf32>
    %762 = math.tanh %761 : vector<8x32xf32>
    %763 = arith.mulf %758, %762 : vector<8x32xf32>
    %764 = vector.shape_cast %724 : vector<8x1xf32> to vector<8x1xf32>
    %765 = vector.broadcast %764 : vector<8x1xf32> to vector<8x32xf32>
    %766 = vector.shape_cast %725 : vector<8x1xf32> to vector<8x1xf32>
    %767 = vector.broadcast %766 : vector<8x1xf32> to vector<8x32xf32>
    %768 = arith.select %67, %765, %767 : vector<8x32xi1>, vector<8x32xf32>
    %769 = arith.mulf %768, %763 : vector<8x32xf32>
    %cst_327 = arith.constant 1.000000e+00 : f32
    %770 = vector.broadcast %cst_327 : f32 to vector<8x32xf32>
    %771 = arith.subf %770, %768 : vector<8x32xf32>
    %772 = arith.mulf %771, %714 : vector<8x32xf32>
    %773 = arith.addf %769, %772 : vector<8x32xf32>
    %774 = arith.mulf %768, %761 : vector<8x32xf32>
    %cst_328 = arith.constant 1.000000e+00 : f32
    %775 = vector.broadcast %cst_328 : f32 to vector<8x32xf32>
    %776 = arith.subf %775, %768 : vector<8x32xf32>
    %777 = arith.mulf %776, %719 : vector<8x32xf32>
    %778 = arith.addf %774, %777 : vector<8x32xf32>
    %779 = vector.extract_strided_slice %773 {offsets = [0, 0], sizes = [8, 16], strides = [1, 1]} : vector<8x32xf32> to vector<8x16xf32>
    %c24_329 = arith.constant 24 : index
    %c0_330 = arith.constant 0 : index
    %780 = vector.load %arg21[%c24_329, %c0_330] : memref<64x32xf32, #tpu.memory_space<vmem>>, vector<8x16xf32>
    tpu.vector_store %arg21[%c24_329, %c0_330], %779 {strides = array<i32>} : memref<64x32xf32, #tpu.memory_space<vmem>>, vector<8x16xf32>,
    %781 = vector.extract_strided_slice %773 {offsets = [0, 16], sizes = [8, 16], strides = [1, 1]} : vector<8x32xf32> to vector<8x16xf32>
    %c32_331 = arith.constant 32 : index
    %c16_332 = arith.constant 16 : index
    %782 = vector.load %arg21[%c32_331, %c16_332] : memref<64x32xf32, #tpu.memory_space<vmem>>, vector<8x16xf32>
    tpu.vector_store %arg21[%c32_331, %c16_332], %781 {strides = array<i32>} : memref<64x32xf32, #tpu.memory_space<vmem>>, vector<8x16xf32>,
    %c32_333 = arith.constant 32 : index
    %c0_334 = arith.constant 0 : index
    %783 = vector.load %arg3[%c32_333, %c0_334] : memref<64x1xf32, #tpu.memory_space<vmem>>, vector<8x1xf32>
    %c24_335 = arith.constant 24 : index
    %c0_336 = arith.constant 0 : index
    %784 = vector.load %arg3[%c24_335, %c0_336] : memref<64x1xf32, #tpu.memory_space<vmem>>, vector<8x1xf32>
    %c32_337 = arith.constant 32 : index
    %c0_338 = arith.constant 0 : index
    %785 = vector.load %arg20[%c32_337, %c0_338] : memref<64x128xf32, #tpu.memory_space<vmem>>, vector<8x128xf32>
    %c24_339 = arith.constant 24 : index
    %c0_340 = arith.constant 0 : index
    %786 = vector.load %arg20[%c24_339, %c0_340] : memref<64x128xf32, #tpu.memory_space<vmem>>, vector<8x128xf32>
    %787 = arith.select %64, %785, %786 : vector<8x128xi1>, vector<8x128xf32>
    %cst_341 = arith.constant dense<0.000000e+00> : vector<8x128xf32>
    %788 = tpu.matmul %773, %543, %cst_341 {dimension_numbers = #tpu.dot_dimension_numbers<[1], [0], [0], [1], [0, 0, 1, 1], [], []>} : vector<8x32xf32>, vector<32x128xf32>, vector<8x128xf32> -> vector<8x128xf32>
    %789 = arith.addf %787, %788 : vector<8x128xf32>
    %790 = vector.broadcast %544 : vector<1x128xf32> to vector<8x128xf32>
    %791 = arith.addf %789, %790 : vector<8x128xf32>
    %792 = vector.extract_strided_slice %791 {offsets = [0, 0], sizes = [8, 32], strides = [1, 1]} : vector<8x128xf32> to vector<8x32xf32>
    %cst_342 = arith.constant 0.000000e+00 : f32
    %793 = vector.broadcast %cst_342 : f32 to vector<8x32xf32>
    %794 = arith.subf %793, %792 : vector<8x32xf32>
    %795 = math.exp %794 : vector<8x32xf32>
    %cst_343 = arith.constant 1.000000e+00 : f32
    %796 = vector.broadcast %cst_343 : f32 to vector<8x32xf32>
    %797 = arith.addf %796, %795 : vector<8x32xf32>
    %cst_344 = arith.constant 1.000000e+00 : f32
    %798 = vector.broadcast %cst_344 : f32 to vector<8x32xf32>
    %799 = arith.divf %798, %797 : vector<8x32xf32>
    %800 = vector.extract_strided_slice %791 {offsets = [0, 32], sizes = [8, 32], strides = [1, 1]} : vector<8x128xf32> to vector<8x32xf32>
    %cst_345 = arith.constant 0.000000e+00 : f32
    %801 = vector.broadcast %cst_345 : f32 to vector<8x32xf32>
    %802 = arith.subf %801, %800 : vector<8x32xf32>
    %803 = math.exp %802 : vector<8x32xf32>
    %cst_346 = arith.constant 1.000000e+00 : f32
    %804 = vector.broadcast %cst_346 : f32 to vector<8x32xf32>
    %805 = arith.addf %804, %803 : vector<8x32xf32>
    %cst_347 = arith.constant 1.000000e+00 : f32
    %806 = vector.broadcast %cst_347 : f32 to vector<8x32xf32>
    %807 = arith.divf %806, %805 : vector<8x32xf32>
    %808 = vector.extract_strided_slice %791 {offsets = [0, 64], sizes = [8, 32], strides = [1, 1]} : vector<8x128xf32> to vector<8x32xf32>
    %809 = math.tanh %808 : vector<8x32xf32>
    %810 = vector.extract_strided_slice %791 {offsets = [0, 96], sizes = [8, 32], strides = [1, 1]} : vector<8x128xf32> to vector<8x32xf32>
    %cst_348 = arith.constant 0.000000e+00 : f32
    %811 = vector.broadcast %cst_348 : f32 to vector<8x32xf32>
    %812 = arith.subf %811, %810 : vector<8x32xf32>
    %813 = math.exp %812 : vector<8x32xf32>
    %cst_349 = arith.constant 1.000000e+00 : f32
    %814 = vector.broadcast %cst_349 : f32 to vector<8x32xf32>
    %815 = arith.addf %814, %813 : vector<8x32xf32>
    %cst_350 = arith.constant 1.000000e+00 : f32
    %816 = vector.broadcast %cst_350 : f32 to vector<8x32xf32>
    %817 = arith.divf %816, %815 : vector<8x32xf32>
    %818 = arith.mulf %807, %778 : vector<8x32xf32>
    %819 = arith.mulf %799, %809 : vector<8x32xf32>
    %820 = arith.addf %818, %819 : vector<8x32xf32>
    %821 = math.tanh %820 : vector<8x32xf32>
    %822 = arith.mulf %817, %821 : vector<8x32xf32>
    %823 = vector.shape_cast %783 : vector<8x1xf32> to vector<8x1xf32>
    %824 = vector.broadcast %823 : vector<8x1xf32> to vector<8x32xf32>
    %825 = vector.shape_cast %784 : vector<8x1xf32> to vector<8x1xf32>
    %826 = vector.broadcast %825 : vector<8x1xf32> to vector<8x32xf32>
    %827 = arith.select %67, %824, %826 : vector<8x32xi1>, vector<8x32xf32>
    %828 = arith.mulf %827, %822 : vector<8x32xf32>
    %cst_351 = arith.constant 1.000000e+00 : f32
    %829 = vector.broadcast %cst_351 : f32 to vector<8x32xf32>
    %830 = arith.subf %829, %827 : vector<8x32xf32>
    %831 = arith.mulf %830, %773 : vector<8x32xf32>
    %832 = arith.addf %828, %831 : vector<8x32xf32>
    %833 = arith.mulf %827, %820 : vector<8x32xf32>
    %cst_352 = arith.constant 1.000000e+00 : f32
    %834 = vector.broadcast %cst_352 : f32 to vector<8x32xf32>
    %835 = arith.subf %834, %827 : vector<8x32xf32>
    %836 = arith.mulf %835, %778 : vector<8x32xf32>
    %837 = arith.addf %833, %836 : vector<8x32xf32>
    %838 = vector.extract_strided_slice %832 {offsets = [0, 0], sizes = [8, 16], strides = [1, 1]} : vector<8x32xf32> to vector<8x16xf32>
    %c32_353 = arith.constant 32 : index
    %c0_354 = arith.constant 0 : index
    %839 = vector.load %arg21[%c32_353, %c0_354] : memref<64x32xf32, #tpu.memory_space<vmem>>, vector<8x16xf32>
    tpu.vector_store %arg21[%c32_353, %c0_354], %838 {strides = array<i32>} : memref<64x32xf32, #tpu.memory_space<vmem>>, vector<8x16xf32>,
    %840 = vector.extract_strided_slice %832 {offsets = [0, 16], sizes = [8, 16], strides = [1, 1]} : vector<8x32xf32> to vector<8x16xf32>
    %c24_355 = arith.constant 24 : index
    %c16_356 = arith.constant 16 : index
    %841 = vector.load %arg21[%c24_355, %c16_356] : memref<64x32xf32, #tpu.memory_space<vmem>>, vector<8x16xf32>
    tpu.vector_store %arg21[%c24_355, %c16_356], %840 {strides = array<i32>} : memref<64x32xf32, #tpu.memory_space<vmem>>, vector<8x16xf32>,
    %c40_357 = arith.constant 40 : index
    %c0_358 = arith.constant 0 : index
    %842 = vector.load %arg3[%c40_357, %c0_358] : memref<64x1xf32, #tpu.memory_space<vmem>>, vector<8x1xf32>
    %c16_359 = arith.constant 16 : index
    %c0_360 = arith.constant 0 : index
    %843 = vector.load %arg3[%c16_359, %c0_360] : memref<64x1xf32, #tpu.memory_space<vmem>>, vector<8x1xf32>
    %c40_361 = arith.constant 40 : index
    %c0_362 = arith.constant 0 : index
    %844 = vector.load %arg20[%c40_361, %c0_362] : memref<64x128xf32, #tpu.memory_space<vmem>>, vector<8x128xf32>
    %c16_363 = arith.constant 16 : index
    %c0_364 = arith.constant 0 : index
    %845 = vector.load %arg20[%c16_363, %c0_364] : memref<64x128xf32, #tpu.memory_space<vmem>>, vector<8x128xf32>
    %846 = arith.select %64, %844, %845 : vector<8x128xi1>, vector<8x128xf32>
    %cst_365 = arith.constant dense<0.000000e+00> : vector<8x128xf32>
    %847 = tpu.matmul %832, %543, %cst_365 {dimension_numbers = #tpu.dot_dimension_numbers<[1], [0], [0], [1], [0, 0, 1, 1], [], []>} : vector<8x32xf32>, vector<32x128xf32>, vector<8x128xf32> -> vector<8x128xf32>
    %848 = arith.addf %846, %847 : vector<8x128xf32>
    %849 = vector.broadcast %544 : vector<1x128xf32> to vector<8x128xf32>
    %850 = arith.addf %848, %849 : vector<8x128xf32>
    %851 = vector.extract_strided_slice %850 {offsets = [0, 0], sizes = [8, 32], strides = [1, 1]} : vector<8x128xf32> to vector<8x32xf32>
    %cst_366 = arith.constant 0.000000e+00 : f32
    %852 = vector.broadcast %cst_366 : f32 to vector<8x32xf32>
    %853 = arith.subf %852, %851 : vector<8x32xf32>
    %854 = math.exp %853 : vector<8x32xf32>
    %cst_367 = arith.constant 1.000000e+00 : f32
    %855 = vector.broadcast %cst_367 : f32 to vector<8x32xf32>
    %856 = arith.addf %855, %854 : vector<8x32xf32>
    %cst_368 = arith.constant 1.000000e+00 : f32
    %857 = vector.broadcast %cst_368 : f32 to vector<8x32xf32>
    %858 = arith.divf %857, %856 : vector<8x32xf32>
    %859 = vector.extract_strided_slice %850 {offsets = [0, 32], sizes = [8, 32], strides = [1, 1]} : vector<8x128xf32> to vector<8x32xf32>
    %cst_369 = arith.constant 0.000000e+00 : f32
    %860 = vector.broadcast %cst_369 : f32 to vector<8x32xf32>
    %861 = arith.subf %860, %859 : vector<8x32xf32>
    %862 = math.exp %861 : vector<8x32xf32>
    %cst_370 = arith.constant 1.000000e+00 : f32
    %863 = vector.broadcast %cst_370 : f32 to vector<8x32xf32>
    %864 = arith.addf %863, %862 : vector<8x32xf32>
    %cst_371 = arith.constant 1.000000e+00 : f32
    %865 = vector.broadcast %cst_371 : f32 to vector<8x32xf32>
    %866 = arith.divf %865, %864 : vector<8x32xf32>
    %867 = vector.extract_strided_slice %850 {offsets = [0, 64], sizes = [8, 32], strides = [1, 1]} : vector<8x128xf32> to vector<8x32xf32>
    %868 = math.tanh %867 : vector<8x32xf32>
    %869 = vector.extract_strided_slice %850 {offsets = [0, 96], sizes = [8, 32], strides = [1, 1]} : vector<8x128xf32> to vector<8x32xf32>
    %cst_372 = arith.constant 0.000000e+00 : f32
    %870 = vector.broadcast %cst_372 : f32 to vector<8x32xf32>
    %871 = arith.subf %870, %869 : vector<8x32xf32>
    %872 = math.exp %871 : vector<8x32xf32>
    %cst_373 = arith.constant 1.000000e+00 : f32
    %873 = vector.broadcast %cst_373 : f32 to vector<8x32xf32>
    %874 = arith.addf %873, %872 : vector<8x32xf32>
    %cst_374 = arith.constant 1.000000e+00 : f32
    %875 = vector.broadcast %cst_374 : f32 to vector<8x32xf32>
    %876 = arith.divf %875, %874 : vector<8x32xf32>
    %877 = arith.mulf %866, %837 : vector<8x32xf32>
    %878 = arith.mulf %858, %868 : vector<8x32xf32>
    %879 = arith.addf %877, %878 : vector<8x32xf32>
    %880 = math.tanh %879 : vector<8x32xf32>
    %881 = arith.mulf %876, %880 : vector<8x32xf32>
    %882 = vector.shape_cast %842 : vector<8x1xf32> to vector<8x1xf32>
    %883 = vector.broadcast %882 : vector<8x1xf32> to vector<8x32xf32>
    %884 = vector.shape_cast %843 : vector<8x1xf32> to vector<8x1xf32>
    %885 = vector.broadcast %884 : vector<8x1xf32> to vector<8x32xf32>
    %886 = arith.select %67, %883, %885 : vector<8x32xi1>, vector<8x32xf32>
    %887 = arith.mulf %886, %881 : vector<8x32xf32>
    %cst_375 = arith.constant 1.000000e+00 : f32
    %888 = vector.broadcast %cst_375 : f32 to vector<8x32xf32>
    %889 = arith.subf %888, %886 : vector<8x32xf32>
    %890 = arith.mulf %889, %832 : vector<8x32xf32>
    %891 = arith.addf %887, %890 : vector<8x32xf32>
    %892 = arith.mulf %886, %879 : vector<8x32xf32>
    %cst_376 = arith.constant 1.000000e+00 : f32
    %893 = vector.broadcast %cst_376 : f32 to vector<8x32xf32>
    %894 = arith.subf %893, %886 : vector<8x32xf32>
    %895 = arith.mulf %894, %837 : vector<8x32xf32>
    %896 = arith.addf %892, %895 : vector<8x32xf32>
    %897 = vector.extract_strided_slice %891 {offsets = [0, 0], sizes = [8, 16], strides = [1, 1]} : vector<8x32xf32> to vector<8x16xf32>
    %c40_377 = arith.constant 40 : index
    %c0_378 = arith.constant 0 : index
    %898 = vector.load %arg21[%c40_377, %c0_378] : memref<64x32xf32, #tpu.memory_space<vmem>>, vector<8x16xf32>
    tpu.vector_store %arg21[%c40_377, %c0_378], %897 {strides = array<i32>} : memref<64x32xf32, #tpu.memory_space<vmem>>, vector<8x16xf32>,
    %899 = vector.extract_strided_slice %891 {offsets = [0, 16], sizes = [8, 16], strides = [1, 1]} : vector<8x32xf32> to vector<8x16xf32>
    %c16_379 = arith.constant 16 : index
    %c16_380 = arith.constant 16 : index
    %900 = vector.load %arg21[%c16_379, %c16_380] : memref<64x32xf32, #tpu.memory_space<vmem>>, vector<8x16xf32>
    tpu.vector_store %arg21[%c16_379, %c16_380], %899 {strides = array<i32>} : memref<64x32xf32, #tpu.memory_space<vmem>>, vector<8x16xf32>,
    %c48_381 = arith.constant 48 : index
    %c0_382 = arith.constant 0 : index
    %901 = vector.load %arg3[%c48_381, %c0_382] : memref<64x1xf32, #tpu.memory_space<vmem>>, vector<8x1xf32>
    %c8_383 = arith.constant 8 : index
    %c0_384 = arith.constant 0 : index
    %902 = vector.load %arg3[%c8_383, %c0_384] : memref<64x1xf32, #tpu.memory_space<vmem>>, vector<8x1xf32>
    %c48_385 = arith.constant 48 : index
    %c0_386 = arith.constant 0 : index
    %903 = vector.load %arg20[%c48_385, %c0_386] : memref<64x128xf32, #tpu.memory_space<vmem>>, vector<8x128xf32>
    %c8_387 = arith.constant 8 : index
    %c0_388 = arith.constant 0 : index
    %904 = vector.load %arg20[%c8_387, %c0_388] : memref<64x128xf32, #tpu.memory_space<vmem>>, vector<8x128xf32>
    %905 = arith.select %64, %903, %904 : vector<8x128xi1>, vector<8x128xf32>
    %cst_389 = arith.constant dense<0.000000e+00> : vector<8x128xf32>
    %906 = tpu.matmul %891, %543, %cst_389 {dimension_numbers = #tpu.dot_dimension_numbers<[1], [0], [0], [1], [0, 0, 1, 1], [], []>} : vector<8x32xf32>, vector<32x128xf32>, vector<8x128xf32> -> vector<8x128xf32>
    %907 = arith.addf %905, %906 : vector<8x128xf32>
    %908 = vector.broadcast %544 : vector<1x128xf32> to vector<8x128xf32>
    %909 = arith.addf %907, %908 : vector<8x128xf32>
    %910 = vector.extract_strided_slice %909 {offsets = [0, 0], sizes = [8, 32], strides = [1, 1]} : vector<8x128xf32> to vector<8x32xf32>
    %cst_390 = arith.constant 0.000000e+00 : f32
    %911 = vector.broadcast %cst_390 : f32 to vector<8x32xf32>
    %912 = arith.subf %911, %910 : vector<8x32xf32>
    %913 = math.exp %912 : vector<8x32xf32>
    %cst_391 = arith.constant 1.000000e+00 : f32
    %914 = vector.broadcast %cst_391 : f32 to vector<8x32xf32>
    %915 = arith.addf %914, %913 : vector<8x32xf32>
    %cst_392 = arith.constant 1.000000e+00 : f32
    %916 = vector.broadcast %cst_392 : f32 to vector<8x32xf32>
    %917 = arith.divf %916, %915 : vector<8x32xf32>
    %918 = vector.extract_strided_slice %909 {offsets = [0, 32], sizes = [8, 32], strides = [1, 1]} : vector<8x128xf32> to vector<8x32xf32>
    %cst_393 = arith.constant 0.000000e+00 : f32
    %919 = vector.broadcast %cst_393 : f32 to vector<8x32xf32>
    %920 = arith.subf %919, %918 : vector<8x32xf32>
    %921 = math.exp %920 : vector<8x32xf32>
    %cst_394 = arith.constant 1.000000e+00 : f32
    %922 = vector.broadcast %cst_394 : f32 to vector<8x32xf32>
    %923 = arith.addf %922, %921 : vector<8x32xf32>
    %cst_395 = arith.constant 1.000000e+00 : f32
    %924 = vector.broadcast %cst_395 : f32 to vector<8x32xf32>
    %925 = arith.divf %924, %923 : vector<8x32xf32>
    %926 = vector.extract_strided_slice %909 {offsets = [0, 64], sizes = [8, 32], strides = [1, 1]} : vector<8x128xf32> to vector<8x32xf32>
    %927 = math.tanh %926 : vector<8x32xf32>
    %928 = vector.extract_strided_slice %909 {offsets = [0, 96], sizes = [8, 32], strides = [1, 1]} : vector<8x128xf32> to vector<8x32xf32>
    %cst_396 = arith.constant 0.000000e+00 : f32
    %929 = vector.broadcast %cst_396 : f32 to vector<8x32xf32>
    %930 = arith.subf %929, %928 : vector<8x32xf32>
    %931 = math.exp %930 : vector<8x32xf32>
    %cst_397 = arith.constant 1.000000e+00 : f32
    %932 = vector.broadcast %cst_397 : f32 to vector<8x32xf32>
    %933 = arith.addf %932, %931 : vector<8x32xf32>
    %cst_398 = arith.constant 1.000000e+00 : f32
    %934 = vector.broadcast %cst_398 : f32 to vector<8x32xf32>
    %935 = arith.divf %934, %933 : vector<8x32xf32>
    %936 = arith.mulf %925, %896 : vector<8x32xf32>
    %937 = arith.mulf %917, %927 : vector<8x32xf32>
    %938 = arith.addf %936, %937 : vector<8x32xf32>
    %939 = math.tanh %938 : vector<8x32xf32>
    %940 = arith.mulf %935, %939 : vector<8x32xf32>
    %941 = vector.shape_cast %901 : vector<8x1xf32> to vector<8x1xf32>
    %942 = vector.broadcast %941 : vector<8x1xf32> to vector<8x32xf32>
    %943 = vector.shape_cast %902 : vector<8x1xf32> to vector<8x1xf32>
    %944 = vector.broadcast %943 : vector<8x1xf32> to vector<8x32xf32>
    %945 = arith.select %67, %942, %944 : vector<8x32xi1>, vector<8x32xf32>
    %946 = arith.mulf %945, %940 : vector<8x32xf32>
    %cst_399 = arith.constant 1.000000e+00 : f32
    %947 = vector.broadcast %cst_399 : f32 to vector<8x32xf32>
    %948 = arith.subf %947, %945 : vector<8x32xf32>
    %949 = arith.mulf %948, %891 : vector<8x32xf32>
    %950 = arith.addf %946, %949 : vector<8x32xf32>
    %951 = arith.mulf %945, %938 : vector<8x32xf32>
    %cst_400 = arith.constant 1.000000e+00 : f32
    %952 = vector.broadcast %cst_400 : f32 to vector<8x32xf32>
    %953 = arith.subf %952, %945 : vector<8x32xf32>
    %954 = arith.mulf %953, %896 : vector<8x32xf32>
    %955 = arith.addf %951, %954 : vector<8x32xf32>
    %956 = vector.extract_strided_slice %950 {offsets = [0, 0], sizes = [8, 16], strides = [1, 1]} : vector<8x32xf32> to vector<8x16xf32>
    %c48_401 = arith.constant 48 : index
    %c0_402 = arith.constant 0 : index
    %957 = vector.load %arg21[%c48_401, %c0_402] : memref<64x32xf32, #tpu.memory_space<vmem>>, vector<8x16xf32>
    tpu.vector_store %arg21[%c48_401, %c0_402], %956 {strides = array<i32>} : memref<64x32xf32, #tpu.memory_space<vmem>>, vector<8x16xf32>,
    %958 = vector.extract_strided_slice %950 {offsets = [0, 16], sizes = [8, 16], strides = [1, 1]} : vector<8x32xf32> to vector<8x16xf32>
    %c8_403 = arith.constant 8 : index
    %c16_404 = arith.constant 16 : index
    %959 = vector.load %arg21[%c8_403, %c16_404] : memref<64x32xf32, #tpu.memory_space<vmem>>, vector<8x16xf32>
    tpu.vector_store %arg21[%c8_403, %c16_404], %958 {strides = array<i32>} : memref<64x32xf32, #tpu.memory_space<vmem>>, vector<8x16xf32>,
    %c56_405 = arith.constant 56 : index
    %c0_406 = arith.constant 0 : index
    %960 = vector.load %arg3[%c56_405, %c0_406] : memref<64x1xf32, #tpu.memory_space<vmem>>, vector<8x1xf32>
    %c0_407 = arith.constant 0 : index
    %c0_408 = arith.constant 0 : index
    %961 = vector.load %arg3[%c0_407, %c0_408] : memref<64x1xf32, #tpu.memory_space<vmem>>, vector<8x1xf32>
    %c56_409 = arith.constant 56 : index
    %c0_410 = arith.constant 0 : index
    %962 = vector.load %arg20[%c56_409, %c0_410] : memref<64x128xf32, #tpu.memory_space<vmem>>, vector<8x128xf32>
    %c0_411 = arith.constant 0 : index
    %c0_412 = arith.constant 0 : index
    %963 = vector.load %arg20[%c0_411, %c0_412] : memref<64x128xf32, #tpu.memory_space<vmem>>, vector<8x128xf32>
    %964 = arith.select %64, %962, %963 : vector<8x128xi1>, vector<8x128xf32>
    %cst_413 = arith.constant dense<0.000000e+00> : vector<8x128xf32>
    %965 = tpu.matmul %950, %543, %cst_413 {dimension_numbers = #tpu.dot_dimension_numbers<[1], [0], [0], [1], [0, 0, 1, 1], [], []>} : vector<8x32xf32>, vector<32x128xf32>, vector<8x128xf32> -> vector<8x128xf32>
    %966 = arith.addf %964, %965 : vector<8x128xf32>
    %967 = vector.broadcast %544 : vector<1x128xf32> to vector<8x128xf32>
    %968 = arith.addf %966, %967 : vector<8x128xf32>
    %969 = vector.extract_strided_slice %968 {offsets = [0, 0], sizes = [8, 32], strides = [1, 1]} : vector<8x128xf32> to vector<8x32xf32>
    %cst_414 = arith.constant 0.000000e+00 : f32
    %970 = vector.broadcast %cst_414 : f32 to vector<8x32xf32>
    %971 = arith.subf %970, %969 : vector<8x32xf32>
    %972 = math.exp %971 : vector<8x32xf32>
    %cst_415 = arith.constant 1.000000e+00 : f32
    %973 = vector.broadcast %cst_415 : f32 to vector<8x32xf32>
    %974 = arith.addf %973, %972 : vector<8x32xf32>
    %cst_416 = arith.constant 1.000000e+00 : f32
    %975 = vector.broadcast %cst_416 : f32 to vector<8x32xf32>
    %976 = arith.divf %975, %974 : vector<8x32xf32>
    %977 = vector.extract_strided_slice %968 {offsets = [0, 32], sizes = [8, 32], strides = [1, 1]} : vector<8x128xf32> to vector<8x32xf32>
    %cst_417 = arith.constant 0.000000e+00 : f32
    %978 = vector.broadcast %cst_417 : f32 to vector<8x32xf32>
    %979 = arith.subf %978, %977 : vector<8x32xf32>
    %980 = math.exp %979 : vector<8x32xf32>
    %cst_418 = arith.constant 1.000000e+00 : f32
    %981 = vector.broadcast %cst_418 : f32 to vector<8x32xf32>
    %982 = arith.addf %981, %980 : vector<8x32xf32>
    %cst_419 = arith.constant 1.000000e+00 : f32
    %983 = vector.broadcast %cst_419 : f32 to vector<8x32xf32>
    %984 = arith.divf %983, %982 : vector<8x32xf32>
    %985 = vector.extract_strided_slice %968 {offsets = [0, 64], sizes = [8, 32], strides = [1, 1]} : vector<8x128xf32> to vector<8x32xf32>
    %986 = math.tanh %985 : vector<8x32xf32>
    %987 = vector.extract_strided_slice %968 {offsets = [0, 96], sizes = [8, 32], strides = [1, 1]} : vector<8x128xf32> to vector<8x32xf32>
    %cst_420 = arith.constant 0.000000e+00 : f32
    %988 = vector.broadcast %cst_420 : f32 to vector<8x32xf32>
    %989 = arith.subf %988, %987 : vector<8x32xf32>
    %990 = math.exp %989 : vector<8x32xf32>
    %cst_421 = arith.constant 1.000000e+00 : f32
    %991 = vector.broadcast %cst_421 : f32 to vector<8x32xf32>
    %992 = arith.addf %991, %990 : vector<8x32xf32>
    %cst_422 = arith.constant 1.000000e+00 : f32
    %993 = vector.broadcast %cst_422 : f32 to vector<8x32xf32>
    %994 = arith.divf %993, %992 : vector<8x32xf32>
    %995 = arith.mulf %984, %955 : vector<8x32xf32>
    %996 = arith.mulf %976, %986 : vector<8x32xf32>
    %997 = arith.addf %995, %996 : vector<8x32xf32>
    %998 = math.tanh %997 : vector<8x32xf32>
    %999 = arith.mulf %994, %998 : vector<8x32xf32>
    %1000 = vector.shape_cast %960 : vector<8x1xf32> to vector<8x1xf32>
    %1001 = vector.broadcast %1000 : vector<8x1xf32> to vector<8x32xf32>
    %1002 = vector.shape_cast %961 : vector<8x1xf32> to vector<8x1xf32>
    %1003 = vector.broadcast %1002 : vector<8x1xf32> to vector<8x32xf32>
    %1004 = arith.select %67, %1001, %1003 : vector<8x32xi1>, vector<8x32xf32>
    %1005 = arith.mulf %1004, %999 : vector<8x32xf32>
    %cst_423 = arith.constant 1.000000e+00 : f32
    %1006 = vector.broadcast %cst_423 : f32 to vector<8x32xf32>
    %1007 = arith.subf %1006, %1004 : vector<8x32xf32>
    %1008 = arith.mulf %1007, %950 : vector<8x32xf32>
    %1009 = arith.addf %1005, %1008 : vector<8x32xf32>
    %1010 = vector.extract_strided_slice %1009 {offsets = [0, 0], sizes = [8, 16], strides = [1, 1]} : vector<8x32xf32> to vector<8x16xf32>
    %c56_424 = arith.constant 56 : index
    %c0_425 = arith.constant 0 : index
    %1011 = vector.load %arg21[%c56_424, %c0_425] : memref<64x32xf32, #tpu.memory_space<vmem>>, vector<8x16xf32>
    tpu.vector_store %arg21[%c56_424, %c0_425], %1010 {strides = array<i32>} : memref<64x32xf32, #tpu.memory_space<vmem>>, vector<8x16xf32>,
    %1012 = vector.extract_strided_slice %1009 {offsets = [0, 16], sizes = [8, 16], strides = [1, 1]} : vector<8x32xf32> to vector<8x16xf32>
    %c0_426 = arith.constant 0 : index
    %c16_427 = arith.constant 16 : index
    %1013 = vector.load %arg21[%c0_426, %c16_427] : memref<64x32xf32, #tpu.memory_space<vmem>>, vector<8x16xf32>
    tpu.vector_store %arg21[%c0_426, %c16_427], %1012 {strides = array<i32>} : memref<64x32xf32, #tpu.memory_space<vmem>>, vector<8x16xf32>,
    %c0_428 = arith.constant 0 : index
    %c0_429 = arith.constant 0 : index
    %1014 = vector.load %arg21[%c0_428, %c0_429] : memref<64x32xf32, #tpu.memory_space<vmem>>, vector<64x32xf32>
    %c0_430 = arith.constant 0 : index
    %c0_431 = arith.constant 0 : index
    %1015 = vector.load %arg12[%c0_430, %c0_431] : memref<1x32xf32, #tpu.memory_space<vmem>>, vector<1x32xf32>
    %c0_432 = arith.constant 0 : index
    %c0_433 = arith.constant 0 : index
    %1016 = vector.load %arg13[%c0_432, %c0_433] : memref<1x32xf32, #tpu.memory_space<vmem>>, vector<1x32xf32>
    %cst_434 = arith.constant dense<0.000000e+00> : vector<64xf32>
    %1017 = vector.multi_reduction <add>, %1014, %cst_434 [1] : vector<64x32xf32> to vector<64xf32>
    %1018 = vector.shape_cast %1017 : vector<64xf32> to vector<64x1xf32>
    %cst_435 = arith.constant 3.200000e+01 : f32
    %1019 = vector.broadcast %cst_435 : f32 to vector<64x1xf32>
    %1020 = arith.divf %1018, %1019 : vector<64x1xf32>
    %1021 = vector.broadcast %1020 : vector<64x1xf32> to vector<64x32xf32>
    %1022 = arith.subf %1014, %1021 : vector<64x32xf32>
    %1023 = arith.mulf %1022, %1022 : vector<64x32xf32>
    %cst_436 = arith.constant dense<0.000000e+00> : vector<64xf32>
    %1024 = vector.multi_reduction <add>, %1023, %cst_436 [1] : vector<64x32xf32> to vector<64xf32>
    %1025 = vector.shape_cast %1024 : vector<64xf32> to vector<64x1xf32>
    %cst_437 = arith.constant 3.200000e+01 : f32
    %1026 = vector.broadcast %cst_437 : f32 to vector<64x1xf32>
    %1027 = arith.divf %1025, %1026 : vector<64x1xf32>
    %1028 = vector.broadcast %1020 : vector<64x1xf32> to vector<64x32xf32>
    %1029 = arith.subf %1014, %1028 : vector<64x32xf32>
    %cst_438 = arith.constant 9.99999974E-6 : f32
    %1030 = vector.broadcast %cst_438 : f32 to vector<64x1xf32>
    %1031 = arith.addf %1027, %1030 : vector<64x1xf32>
    %1032 = math.rsqrt %1031 : vector<64x1xf32>
    %1033 = vector.broadcast %1032 : vector<64x1xf32> to vector<64x32xf32>
    %1034 = arith.mulf %1029, %1033 : vector<64x32xf32>
    %1035 = vector.broadcast %1015 : vector<1x32xf32> to vector<64x32xf32>
    %1036 = arith.mulf %1034, %1035 : vector<64x32xf32>
    %1037 = vector.broadcast %1016 : vector<1x32xf32> to vector<64x32xf32>
    %1038 = arith.addf %1036, %1037 : vector<64x32xf32>
    %c0_439 = arith.constant 0 : index
    %c0_440 = arith.constant 0 : index
    %1039 = vector.load %arg14[%c0_439, %c0_440] : memref<32x64xf32, #tpu.memory_space<vmem>>, vector<32x64xf32>
    %cst_441 = arith.constant dense<0.000000e+00> : vector<64x64xf32>
    %1040 = tpu.matmul %1038, %1039, %cst_441 {dimension_numbers = #tpu.dot_dimension_numbers<[1], [0], [0], [1], [0, 0, 1, 1], [], []>} : vector<64x32xf32>, vector<32x64xf32>, vector<64x64xf32> -> vector<64x64xf32>
    %c0_442 = arith.constant 0 : index
    %c0_443 = arith.constant 0 : index
    %1041 = vector.load %arg15[%c0_442, %c0_443] : memref<1x64xf32, #tpu.memory_space<vmem>>, vector<1x64xf32>
    %1042 = vector.broadcast %1041 : vector<1x64xf32> to vector<64x64xf32>
    %1043 = arith.addf %1040, %1042 : vector<64x64xf32>
    %cst_444 = arith.constant 0.000000e+00 : f32
    %1044 = vector.broadcast %cst_444 : f32 to vector<64x64xf32>
    %1045 = arith.maximumf %1043, %1044 : vector<64x64xf32>
    %c0_445 = arith.constant 0 : index
    %c0_446 = arith.constant 0 : index
    %1046 = vector.load %arg16[%c0_445, %c0_446] : memref<64x10xf32, #tpu.memory_space<vmem>>, vector<64x10xf32>
    %cst_447 = arith.constant dense<0.000000e+00> : vector<64x10xf32>
    %1047 = tpu.matmul %1045, %1046, %cst_447 {dimension_numbers = #tpu.dot_dimension_numbers<[1], [0], [0], [1], [0, 0, 1, 1], [], []>} : vector<64x64xf32>, vector<64x10xf32>, vector<64x10xf32> -> vector<64x10xf32>
    %c0_448 = arith.constant 0 : index
    %c0_449 = arith.constant 0 : index
    %1048 = vector.load %arg17[%c0_448, %c0_449] : memref<1x10xf32, #tpu.memory_space<vmem>>, vector<1x10xf32>
    %1049 = vector.broadcast %1048 : vector<1x10xf32> to vector<64x10xf32>
    %1050 = arith.addf %1047, %1049 : vector<64x10xf32>
    %c0_450 = arith.constant 0 : index
    %c0_451 = arith.constant 0 : index
    %1051 = vector.load %arg18[%c0_450, %c0_451] : memref<8x10xf32, #tpu.memory_space<vmem>>, vector<8x10xf32>
    %c0_452 = arith.constant 0 : index
    %c0_453 = arith.constant 0 : index
    %1052 = vector.load %arg3[%c0_452, %c0_453] : memref<64x1xf32, #tpu.memory_space<vmem>>, vector<8x1xf32>
    %1053 = vector.extract_strided_slice %1050 {offsets = [0, 0], sizes = [8, 10], strides = [1, 1]} : vector<64x10xf32> to vector<8x10xf32>
    %1054 = vector.broadcast %1052 : vector<8x1xf32> to vector<8x10xf32>
    %1055 = arith.mulf %1054, %1053 : vector<8x10xf32>
    %1056 = arith.addf %1055, %1051 : vector<8x10xf32>
    %c0_454 = arith.constant 0 : index
    %c0_455 = arith.constant 0 : index
    %1057 = vector.load %arg19[%c0_454, %c0_455] : memref<64x10xf32, #tpu.memory_space<vmem>>, vector<8x10xf32>
    tpu.vector_store %arg19[%c0_454, %c0_455], %1056 {strides = array<i32>} : memref<64x10xf32, #tpu.memory_space<vmem>>, vector<8x10xf32>,
    %c8_456 = arith.constant 8 : index
    %c0_457 = arith.constant 0 : index
    %1058 = vector.load %arg3[%c8_456, %c0_457] : memref<64x1xf32, #tpu.memory_space<vmem>>, vector<8x1xf32>
    %1059 = vector.extract_strided_slice %1050 {offsets = [8, 0], sizes = [8, 10], strides = [1, 1]} : vector<64x10xf32> to vector<8x10xf32>
    %1060 = vector.broadcast %1058 : vector<8x1xf32> to vector<8x10xf32>
    %1061 = arith.mulf %1060, %1059 : vector<8x10xf32>
    %1062 = arith.addf %1061, %1051 : vector<8x10xf32>
    %c8_458 = arith.constant 8 : index
    %c0_459 = arith.constant 0 : index
    %1063 = vector.load %arg19[%c8_458, %c0_459] : memref<64x10xf32, #tpu.memory_space<vmem>>, vector<8x10xf32>
    tpu.vector_store %arg19[%c8_458, %c0_459], %1062 {strides = array<i32>} : memref<64x10xf32, #tpu.memory_space<vmem>>, vector<8x10xf32>,
    %c16_460 = arith.constant 16 : index
    %c0_461 = arith.constant 0 : index
    %1064 = vector.load %arg3[%c16_460, %c0_461] : memref<64x1xf32, #tpu.memory_space<vmem>>, vector<8x1xf32>
    %1065 = vector.extract_strided_slice %1050 {offsets = [16, 0], sizes = [8, 10], strides = [1, 1]} : vector<64x10xf32> to vector<8x10xf32>
    %1066 = vector.broadcast %1064 : vector<8x1xf32> to vector<8x10xf32>
    %1067 = arith.mulf %1066, %1065 : vector<8x10xf32>
    %1068 = arith.addf %1067, %1051 : vector<8x10xf32>
    %c16_462 = arith.constant 16 : index
    %c0_463 = arith.constant 0 : index
    %1069 = vector.load %arg19[%c16_462, %c0_463] : memref<64x10xf32, #tpu.memory_space<vmem>>, vector<8x10xf32>
    tpu.vector_store %arg19[%c16_462, %c0_463], %1068 {strides = array<i32>} : memref<64x10xf32, #tpu.memory_space<vmem>>, vector<8x10xf32>,
    %c24_464 = arith.constant 24 : index
    %c0_465 = arith.constant 0 : index
    %1070 = vector.load %arg3[%c24_464, %c0_465] : memref<64x1xf32, #tpu.memory_space<vmem>>, vector<8x1xf32>
    %1071 = vector.extract_strided_slice %1050 {offsets = [24, 0], sizes = [8, 10], strides = [1, 1]} : vector<64x10xf32> to vector<8x10xf32>
    %1072 = vector.broadcast %1070 : vector<8x1xf32> to vector<8x10xf32>
    %1073 = arith.mulf %1072, %1071 : vector<8x10xf32>
    %1074 = arith.addf %1073, %1051 : vector<8x10xf32>
    %c24_466 = arith.constant 24 : index
    %c0_467 = arith.constant 0 : index
    %1075 = vector.load %arg19[%c24_466, %c0_467] : memref<64x10xf32, #tpu.memory_space<vmem>>, vector<8x10xf32>
    tpu.vector_store %arg19[%c24_466, %c0_467], %1074 {strides = array<i32>} : memref<64x10xf32, #tpu.memory_space<vmem>>, vector<8x10xf32>,
    %c32_468 = arith.constant 32 : index
    %c0_469 = arith.constant 0 : index
    %1076 = vector.load %arg3[%c32_468, %c0_469] : memref<64x1xf32, #tpu.memory_space<vmem>>, vector<8x1xf32>
    %1077 = vector.extract_strided_slice %1050 {offsets = [32, 0], sizes = [8, 10], strides = [1, 1]} : vector<64x10xf32> to vector<8x10xf32>
    %1078 = vector.broadcast %1076 : vector<8x1xf32> to vector<8x10xf32>
    %1079 = arith.mulf %1078, %1077 : vector<8x10xf32>
    %1080 = arith.addf %1079, %1051 : vector<8x10xf32>
    %c32_470 = arith.constant 32 : index
    %c0_471 = arith.constant 0 : index
    %1081 = vector.load %arg19[%c32_470, %c0_471] : memref<64x10xf32, #tpu.memory_space<vmem>>, vector<8x10xf32>
    tpu.vector_store %arg19[%c32_470, %c0_471], %1080 {strides = array<i32>} : memref<64x10xf32, #tpu.memory_space<vmem>>, vector<8x10xf32>,
    %c40_472 = arith.constant 40 : index
    %c0_473 = arith.constant 0 : index
    %1082 = vector.load %arg3[%c40_472, %c0_473] : memref<64x1xf32, #tpu.memory_space<vmem>>, vector<8x1xf32>
    %1083 = vector.extract_strided_slice %1050 {offsets = [40, 0], sizes = [8, 10], strides = [1, 1]} : vector<64x10xf32> to vector<8x10xf32>
    %1084 = vector.broadcast %1082 : vector<8x1xf32> to vector<8x10xf32>
    %1085 = arith.mulf %1084, %1083 : vector<8x10xf32>
    %1086 = arith.addf %1085, %1051 : vector<8x10xf32>
    %c40_474 = arith.constant 40 : index
    %c0_475 = arith.constant 0 : index
    %1087 = vector.load %arg19[%c40_474, %c0_475] : memref<64x10xf32, #tpu.memory_space<vmem>>, vector<8x10xf32>
    tpu.vector_store %arg19[%c40_474, %c0_475], %1086 {strides = array<i32>} : memref<64x10xf32, #tpu.memory_space<vmem>>, vector<8x10xf32>,
    %c48_476 = arith.constant 48 : index
    %c0_477 = arith.constant 0 : index
    %1088 = vector.load %arg3[%c48_476, %c0_477] : memref<64x1xf32, #tpu.memory_space<vmem>>, vector<8x1xf32>
    %1089 = vector.extract_strided_slice %1050 {offsets = [48, 0], sizes = [8, 10], strides = [1, 1]} : vector<64x10xf32> to vector<8x10xf32>
    %1090 = vector.broadcast %1088 : vector<8x1xf32> to vector<8x10xf32>
    %1091 = arith.mulf %1090, %1089 : vector<8x10xf32>
    %1092 = arith.addf %1091, %1051 : vector<8x10xf32>
    %c48_478 = arith.constant 48 : index
    %c0_479 = arith.constant 0 : index
    %1093 = vector.load %arg19[%c48_478, %c0_479] : memref<64x10xf32, #tpu.memory_space<vmem>>, vector<8x10xf32>
    tpu.vector_store %arg19[%c48_478, %c0_479], %1092 {strides = array<i32>} : memref<64x10xf32, #tpu.memory_space<vmem>>, vector<8x10xf32>,
    %c56_480 = arith.constant 56 : index
    %c0_481 = arith.constant 0 : index
    %1094 = vector.load %arg3[%c56_480, %c0_481] : memref<64x1xf32, #tpu.memory_space<vmem>>, vector<8x1xf32>
    %1095 = vector.extract_strided_slice %1050 {offsets = [56, 0], sizes = [8, 10], strides = [1, 1]} : vector<64x10xf32> to vector<8x10xf32>
    %1096 = vector.broadcast %1094 : vector<8x1xf32> to vector<8x10xf32>
    %1097 = arith.mulf %1096, %1095 : vector<8x10xf32>
    %1098 = arith.addf %1097, %1051 : vector<8x10xf32>
    %c56_482 = arith.constant 56 : index
    %c0_483 = arith.constant 0 : index
    %1099 = vector.load %arg19[%c56_482, %c0_483] : memref<64x10xf32, #tpu.memory_space<vmem>>, vector<8x10xf32>
    tpu.vector_store %arg19[%c56_482, %c0_483], %1098 {strides = array<i32>} : memref<64x10xf32, #tpu.memory_space<vmem>>, vector<8x10xf32>,
    return
  }
}

</mosaic_0001>

<bundles_post_ra>
// kernel: forward.1
= control target key start
LH: loop header
LB: loop body
LE: loop exit
PB: predicated region body
PF: predicated region fallthrough
CT: control target
= control target key end

     0   :  { %vm72_vm0 = vcmask 130048   ;;  %vm4293_vm1 = vmmov 0   ;;  %s4297_s25 = smov 96   ;;  %vm766_vm4 = vcmask 261120   ;;  %vm898_vm5 = vcmask 261248   ;;  %s5573_s0 = inlined_call_operand.vmem [shape: f32[64,16], index: 0, kind: input, shape index: {}]   ;;  %s5574_s1 = inlined_call_operand.vmem [shape: f32[64,16], index: 1, kind: input, shape index: {}]   ;;  %s5575_s6 = inlined_call_operand.vmem [shape: f32[48,128], index: 6, kind: input, shape index: {}]   ;;  %s5576_s2 = inlined_call_operand.vmem [shape: f32[64,16], index: 2, kind: input, shape index: {}]   ;;  %s5577_s4 = inlined_call_operand.vmem [shape: f32[1,16], index: 4, kind: input, shape index: {}]   ;;  %s5578_s5 = inlined_call_operand.vmem [shape: f32[1,16], index: 5, kind: input, shape index: {}]   ;;  %s5579_s7 = inlined_call_operand.vmem [shape: f32[32,128], index: 7, kind: input, shape index: {}]   ;;  %s5580_s8 = inlined_call_operand.vmem [shape: f32[1,128], index: 8, kind: input, shape index: {}]   ;;  %s5581_s3 = inlined_call_operand.vmem [shape: f32[64,1], index: 3, kind: input, shape index: {}]   ;;  %s5582_s9 = inlined_call_operand.vmem [shape: f32[32,128], index: 9, kind: input, shape index: {}]   ;;  %s5583_s10 = inlined_call_operand.vmem [shape: f32[32,128], index: 10, kind: input, shape index: {}]   ;;  %s5584_s11 = inlined_call_operand.vmem [shape: f32[1,128], index: 11, kind: input, shape index: {}]   ;;  %s5585_s14 = inlined_call_operand.vmem [shape: f32[32,64], index: 14, kind: input, shape index: {}]   ;;  %s5586_s16 = inlined_call_operand.vmem [shape: f32[64,10], index: 16, kind: input, shape index: {}]   ;;  %s5587_s12 = inlined_call_operand.vmem [shape: f32[1,32], index: 12, kind: input, shape index: {}]   ;;  %s5588_s13 = inlined_call_operand.vmem [shape: f32[1,32], index: 13, kind: input, shape index: {}]   ;;  %s5589_s15 = inlined_call_operand.vmem [shape: f32[1,64], index: 15, kind: input, shape index: {}]   ;;  %s5590_s17 = inlined_call_operand.vmem [shape: f32[1,10], index: 17, kind: input, shape index: {}]   ;;  %s5591_s18 = inlined_call_operand.vmem [shape: f32[8,10], index: 18, kind: input, shape index: {}]   ;;  %s5592_s19 = inlined_call_operand.vmem [shape: f32[64,10], index: 19, kind: output, shape index: {}]  }
   0x1   :  { %5597 = sst [smem:[#allocation4_spill]] %s5573_s0  ;;  %vm3384_vm6 = vcmask 523264   ;;  %vm3523_vm7 = vcmask 80896  }
   0x2   :  { %5598 = sst [smem:[#allocation5_spill]] %s5574_s1 }
   0x3   :  { %5599 = sst [smem:[#allocation6_spill]] %s5575_s6  ;;  %s4295_s6 = smov 32  }
   0x4   :  { %5600 = sst [smem:[#allocation7_spill]] %s5576_s2 }
   0x5   :  { %s5601_s20 = sld [smem:[#allocation4_spill]] }
   0x6   :  { %s5602_s22 = sld [smem:[#allocation5_spill]] }
   0x7   :  { %s5603_s24 = sld [smem:[#allocation6_spill]] }
   0x8   :  { %s5604_s28 = sld [smem:[#allocation7_spill]] }
   0xb   :  { %v62_v0 = vld [vmem:[%s5601_s20] sm:$0xff]  ;;  %v63_v2 = vld [vmem:[%s5601_s20 + $0x8] sm:$0xff]  ;;  %v64_v8 = vld [vmem:[%s5601_s20 + $0x10] sm:$0xff] }
   0xc   :  { %v206_v1 = vld [vmem:[%s5602_s22] sm:$0xff]  ;;  %v73_v3 = vsel %vm72_vm0, %v62_v0, 0.0  ;;  %v207_v5 = vld [vmem:[%s5602_s22 + $0x8] sm:$0xff]  ;;  %v76_v6 = vsel %vm72_vm0, %v63_v2, 0.0  ;;  %v65_v9 = vld [vmem:[%s5601_s20 + $0x18] sm:$0xff]  ;;  %v79_v10 = vsel %vm72_vm0, %v64_v8, 0.0 }
   0xd   :  { %v214_v4 = vsel %vm72_vm0, %v206_v1, 0.0  ;;  %74 = vadd.xlane.f32.xlu0 %v73_v3  ;;  %v217_v7 = vsel %vm72_vm0, %v207_v5, 0.0  ;;  %v82_v11 = vsel %vm72_vm0, %v65_v9, 0.0  ;;  %v4425_v12 = vld [vmem:[%s5602_s22 + $0x10] sm:$0xff]  ;;  %v4430_v13 = vld [vmem:[%s5602_s22 + $0x18] sm:$0xff]  ;;  %v4439_v16 = vld [vmem:[%s5601_s20 + $0x20] sm:$0xff] }
   0xe   :  { %215 = vadd.xlane.f32.xlu1 %v214_v4  ;;  %v220_v14 = vsel %vm72_vm0, %v4425_v12, 0.0  ;;  %v223_v15 = vsel %vm72_vm0, %v4430_v13, 0.0  ;;  %v4444_v17 = vld [vmem:[%s5601_s20 + $0x28] sm:$0xff]  ;;  %v85_v18 = vsel %vm72_vm0, %v4439_v16, 0.0  ;;  %v4453_v20 = vld [vmem:[%s5602_s22 + $0x20] sm:$0xff]  ;;  %v4467_v24 = vld [vmem:[%s5601_s20 + $0x30] sm:$0xff] }
   0xf   :  { %v88_v19 = vsel %vm72_vm0, %v4444_v17, 0.0  ;;  %v4458_v21 = vld [vmem:[%s5602_s22 + $0x28] sm:$0xff]  ;;  %v226_v22 = vsel %vm72_vm0, %v4453_v20, 0.0  ;;  %v4472_v25 = vld [vmem:[%s5601_s20 + $0x38] sm:$0xff]  ;;  %v91_v26 = vsel %vm72_vm0, %v4467_v24, 0.0  ;;  %v4481_v28 = vld [vmem:[%s5602_s22 + $0x30] sm:$0xff] }
  0x10   :  { %v229_v23 = vsel %vm72_vm0, %v4458_v21, 0.0  ;;  %v94_v27 = vsel %vm72_vm0, %v4472_v25, 0.0  ;;  %v4486_v29 = vld [vmem:[%s5602_s22 + $0x38] sm:$0xff]  ;;  %v232_v30 = vsel %vm72_vm0, %v4481_v28, 0.0 }
  0x11   :  { %77 = vadd.xlane.f32.xlu0 %v76_v6  ;;  %v235_v31 = vsel %vm72_vm0, %v4486_v29, 0.0 }
  0x12   :  { %218 = vadd.xlane.f32.xlu1 %v217_v7 }
  0x15   :  { %80 = vadd.xlane.f32.xlu0 %v79_v10 }
  0x16   :  { %83 = vadd.xlane.f32.xlu1 %v82_v11 }
  0x19   :  { %221 = vadd.xlane.f32.xlu0 %v220_v14 }
  0x1a   :  { %224 = vadd.xlane.f32.xlu1 %v223_v15 }
  0x1d   :  { %86 = vadd.xlane.f32.xlu0 %v85_v18 }
  0x1e   :  { %89 = vadd.xlane.f32.xlu1 %v88_v19 }
  0x21   :  { %227 = vadd.xlane.f32.xlu0 %v226_v22 }
  0x22   :  { %230 = vadd.xlane.f32.xlu1 %v229_v23 }
  0x25   :  { %92 = vadd.xlane.f32.xlu0 %v91_v26 }
  0x26   :  { %95 = vadd.xlane.f32.xlu1 %v94_v27 }
  0x29   :  { %233 = vadd.xlane.f32.xlu0 %v232_v30 }
  0x2a   :  { %236 = vadd.xlane.f32.xlu1 %v235_v31 }
  0x96   :  { %v75_v32 = vpop.xlane.xlu0 %74 }
  0x97   :  { %v216_v33 = vpop.xlane.xlu1 %215  ;;  %v98_v34 = vmul.f32 0.0625, %v75_v32 }
  0x98   :  { %v238_v35 = vmul.f32 0.0625, %v216_v33 }
  0x99   :  { %v4492_v36 = vsub.f32 %v62_v0, %v98_v34 }
  0x9a   :  { %v4494_v37 = vsub.f32 %v206_v1, %v238_v35  ;;  %v78_v38 = vpop.xlane.xlu0 %77 }
  0x9b   :  { %v219_v39 = vpop.xlane.xlu1 %218  ;;  %v99_v40 = vmul.f32 0.0625, %v78_v38  ;;  %v114_v42 = vmul.f32 %v4492_v36, %v4492_v36 }
  0x9c   :  { %v239_v41 = vmul.f32 0.0625, %v219_v39  ;;  %v254_v43 = vmul.f32 %v4494_v37, %v4494_v37 }
  0x9d   :  { %v4500_v44 = vsub.f32 %v63_v2, %v99_v40  ;;  %v122_v46 = vsel %vm72_vm0, %v114_v42, 0.0  ;;  %v344_v40 = vld [vmem:[%s5603_s24 + $0x10] sm:$0xff] }
  0x9e   :  { %v4502_v45 = vsub.f32 %v207_v5, %v239_v41  ;;  %123 = vadd.xlane.f32.xlu0 %v122_v46  ;;  %v81_v47 = vpop.xlane.xlu0 %80  ;;  %v262_v49 = vsel %vm72_vm0, %v254_v43, 0.0 }
  0x9f   :  { %v84_v48 = vpop.xlane.xlu1 %83  ;;  %v100_v50 = vmul.f32 0.0625, %v81_v47  ;;  %v115_v52 = vmul.f32 %v4500_v44, %v4500_v44 }
  0xa0   :  { %v101_v51 = vmul.f32 0.0625, %v84_v48  ;;  %v255_v53 = vmul.f32 %v4502_v45, %v4502_v45 }
  0xa1   :  { %v4510_v54 = vsub.f32 %v64_v8, %v100_v50  ;;  %v125_v56 = vsel %vm72_vm0, %v115_v52, 0.0 }
  0xa2   :  { %v4512_v55 = vsub.f32 %v65_v9, %v101_v51  ;;  %263 = vadd.xlane.f32.xlu0 %v262_v49  ;;  %126 = vadd.xlane.f32.xlu1 %v125_v56  ;;  %v222_v57 = vpop.xlane.xlu0 %221  ;;  %v265_v59 = vsel %vm72_vm0, %v255_v53, 0.0  ;;  %v337_v49 = vld [vmem:[%s5604_s28 + $0x8] sm:$0xff]  ;;  %v338_v53 = vld [vmem:[%s5604_s28 + $0x10] sm:$0xff] }
  0xa3   :  { %v225_v58 = vpop.xlane.xlu1 %224  ;;  %v240_v60 = vmul.f32 0.0625, %v222_v57  ;;  %v116_v62 = vmul.f32 %v4510_v54, %v4510_v54 }
  0xa4   :  { %v241_v61 = vmul.f32 0.0625, %v225_v58  ;;  %v117_v63 = vmul.f32 %v4512_v55, %v4512_v55 }
  0xa5   :  { %v4521_v0 = vsub.f32 %v4425_v12, %v240_v60  ;;  %v128_v2 = vsel %vm72_vm0, %v116_v62, 0.0  ;;  %v342_v62 = vld [vmem:[%s5604_s28 + $0x30] sm:$0xff] }
  0xa6   :  { %v4524_v1 = vsub.f32 %v4430_v13, %v241_v61  ;;  %266 = vadd.xlane.f32.xlu1 %v265_v59  ;;  %129 = vadd.xlane.f32.xlu0 %v128_v2  ;;  %v87_v3 = vpop.xlane.xlu0 %86  ;;  %v131_v5 = vsel %vm72_vm0, %v117_v63, 0.0  ;;  %v340_v59 = vld [vmem:[%s5604_s28 + $0x20] sm:$0xff]  ;;  %v341_v61 = vld [vmem:[%s5604_s28 + $0x28] sm:$0xff]  ;;  %v343_v63 = vld [vmem:[%s5604_s28 + $0x38] sm:$0xff] }
  0xa7   :  { %v90_v4 = vpop.xlane.xlu1 %89  ;;  %v102_v6 = vmul.f32 0.0625, %v87_v3  ;;  %v256_v8 = vmul.f32 %v4521_v0, %v4521_v0  ;;  %v335_v2 = vld [vmem:[%s5603_s24 + $0x8] sm:$0xff]  ;;  %v334_v3 = vld [vmem:[%s5603_s24] sm:$0xff] }
  0xa8   :  { %v103_v7 = vmul.f32 0.0625, %v90_v4  ;;  %v257_v9 = vmul.f32 %v4524_v1, %v4524_v1  ;;  %4104 = vmatprep.subr.mxu1 %v335_v2  ;;  %v4629_v4 = vld [vmem:[%s5603_s24 + $0x28] sm:$0xff] }
  0xa9   :  { %v4533_v10 = vsub.f32 %v4439_v16, %v102_v6  ;;  %v268_v12 = vsel %vm72_vm0, %v256_v8, 0.0  ;;  %4106 = vmatpush3.msra.mxu1 %v335_v2 }
  0xaa   :  { %v4536_v11 = vsub.f32 %v4444_v17, %v103_v7  ;;  %132 = vadd.xlane.f32.xlu1 %v131_v5  ;;  %269 = vadd.xlane.f32.xlu0 %v268_v12  ;;  %v228_v13 = vpop.xlane.xlu0 %227  ;;  %v271_v15 = vsel %vm72_vm0, %v257_v9, 0.0  ;;  %v4292_v5 = vmov 0.0  }
  0xab   :  { %v231_v14 = vpop.xlane.xlu1 %230  ;;  %v242_v18 = vmul.f32 0.0625, %v228_v13  ;;  %v118_v22 = vmul.f32 %v4533_v10, %v4533_v10  ;;  %4105 = vmatprep.subr.mxu1 %v334_v3 }
  0xac   :  { %v243_v19 = vmul.f32 0.0625, %v231_v14  ;;  %v119_v16 = vmul.f32 %v4536_v11, %v4536_v11  ;;  %4107 = vmatpush3.msra.mxu1 %v334_v3 }
  0xad   :  { %v4545_v23 = vsub.f32 %v4453_v20, %v242_v18  ;;  %v134_v26 = vsel %vm72_vm0, %v118_v22, 0.0  ;;  %3860 = vmatprep.subr.mxu1 %v4292_v5 }
  0xae   :  { %v4548_v17 = vsub.f32 %v4458_v21, %v243_v19  ;;  %272 = vadd.xlane.f32.xlu1 %v271_v15  ;;  %135 = vadd.xlane.f32.xlu0 %v134_v26  ;;  %v93_v27 = vpop.xlane.xlu0 %92  ;;  %v137_v31 = vsel %vm72_vm0, %v119_v16, 0.0  ;;  %v345_v21 = vld [vmem:[%s5603_s24 + $0x18] sm:$0xff] }
  0xaf   :  { %v96_v30 = vpop.xlane.xlu1 %95  ;;  %v104_v32 = vmul.f32 0.0625, %v93_v27  ;;  %v258_v34 = vmul.f32 %v4545_v23, %v4545_v23  ;;  %3812 = vmatprep.subr.mxu0 %v345_v21 }
  0xb0   :  { %v105_v33 = vmul.f32 0.0625, %v96_v30  ;;  %v259_v20 = vmul.f32 %v4548_v17, %v4548_v17  ;;  %3813 = vmatpush3.msra.mxu0 %v345_v21 }
  0xb1   :  { %v4560_v35 = vsub.f32 %v4467_v24, %v104_v32  ;;  %v274_v39 = vsel %vm72_vm0, %v258_v34, 0.0  ;;  %v336_v24 = vld [vmem:[%s5604_s28] sm:$0xff]  ;;  %3814 = vmatprep.subr.mxu0 %v344_v40 }
  0xb2   :  { %v4563_v38 = vsub.f32 %v4472_v25, %v105_v33  ;;  %138 = vadd.xlane.f32.xlu1 %v137_v31  ;;  %275 = vadd.xlane.f32.xlu0 %v274_v39  ;;  %v234_v41 = vpop.xlane.xlu0 %233  ;;  %v277_v43 = vsel %vm72_vm0, %v259_v20, 0.0 }
  0xb3   :  { %v237_v42 = vpop.xlane.xlu1 %236  ;;  %v244_v46 = vmul.f32 0.0625, %v234_v41  ;;  %v120_v47 = vmul.f32 %v4560_v35, %v4560_v35  ;;  %3816 = vmatprep.mubr.msk.f32.mxu0 %vm72_vm0, %v336_v24  ;;  %3815 = vmatpush3.msra.mxu0 %v344_v40  ;;  %v4636_v24 = vld [vmem:[%s5577_s4] ss:$0 sm:$0xff] }
  0xb4   :  { %v245_v25 = vmul.f32 0.0625, %v237_v42  ;;  %v121_v48 = vmul.f32 %v4563_v38, %v4563_v38  ;;  %3817 = vmatmul.mubr.msk.f32.vlgmr.msra.gmra.mxu0 %vm72_vm0, %v337_v49  ;;  %3828 = vmatprep.subr.mxu0 %v335_v2 }
  0xb5   :  { %v4582_v50 = vsub.f32 %v4481_v28, %v244_v46  ;;  %v140_v52 = vsel %vm72_vm0, %v120_v47, 0.0  ;;  %3819 = vmatprep.mubr.msk.f32.mxu0 %vm72_vm0, %v338_v53  ;;  %3829 = vmatpush3.msra.mxu0 %v335_v2 }
  0xb6   :  { %v4585_v51 = vsub.f32 %v4486_v29, %v245_v25  ;;  %278 = vadd.xlane.f32.xlu1 %v277_v43  ;;  %141 = vadd.xlane.f32.xlu0 %v140_v52  ;;  %v143_v56 = vsel %vm72_vm0, %v121_v48, 0.0  ;;  %v339_v29 = vld [vmem:[%s5604_s28 + $0x18] sm:$0xff]  ;;  %v4642_v52 = vld [vmem:[%s5578_s5] ss:$0 sm:$0xff] }
  0xb7   :  { %v260_v57 = vmul.f32 %v4582_v50, %v4582_v50  ;;  %3830 = vmatprep.subr.mxu0 %v334_v3 }
  0xb8   :  { %v261_v28 = vmul.f32 %v4585_v51, %v4585_v51  ;;  %3820 = vmatmul.mubr.msk.f32.gmra.mxu0 %vm72_vm0, %v339_v29 }
  0xb9   :  { %v280_v58 = vsel %vm72_vm0, %v260_v57, 0.0  ;;  %3822 = vmatprep.mubr.msk.f32.mxu0 %vm72_vm0, %v340_v59  ;;  %3831 = vmatpush3.msra.mxu0 %v334_v3 }
  0xba   :  { %144 = vadd.xlane.f32.xlu1 %v143_v56  ;;  %281 = vadd.xlane.f32.xlu0 %v280_v58  ;;  %v283_v60 = vsel %vm72_vm0, %v261_v28, 0.0 }
  0xbb   :  { %3844 = vmatprep.subr.mxu0 %v4629_v4 }
  0xbc   :  { %3823 = vmatmul.mubr.msk.f32.gmra.mxu0 %vm72_vm0, %v341_v61 }
  0xbd   :  { %3825 = vmatprep.mubr.msk.f32.mxu0 %vm72_vm0, %v342_v62 }
  0xbe   :  { %284 = vadd.xlane.f32.xlu1 %v283_v60 }
  0xc0   :  { %3826 = vmatmul.mubr.msk.f32.gmra.mxu0 %vm72_vm0, %v343_v63 }
 0x127   :  { %v124_v6 = vpop.xlane.xlu0 %123 }
 0x128   :  { %v146_v7 = vmul.f32 0.0625, %v124_v6 }
 0x12a   :  { %v154_v8 = vadd.f32 1e-05, %v146_v7 }
 0x12b   :  { %v127_v9 = vpop.xlane.xlu1 %126  ;;  %v264_v12 = vpop.xlane.xlu0 %263 }
 0x12c   :  { %4116 = vrsqrt.f32 %v154_v8  ;;  %v147_v13 = vmul.f32 0.0625, %v127_v9  ;;  %v286_v14 = vmul.f32 0.0625, %v264_v12 }
 0x12e   :  { %v155_v15 = vadd.f32 1e-05, %v147_v13  ;;  %v294_v18 = vadd.f32 1e-05, %v286_v14 }
 0x12f   :  { %v267_v19 = vpop.xlane.xlu1 %266  ;;  %v130_v22 = vpop.xlane.xlu0 %129 }
 0x130   :  { %4118 = vrsqrt.f32 %v155_v15  ;;  %v287_v16 = vmul.f32 0.0625, %v267_v19  ;;  %v148_v26 = vmul.f32 0.0625, %v130_v22  ;;  %v604_v19 = vld [vmem:[%s5603_s24 + $0x20] sm:$0xff] }
 0x131   :  { %4120 = vrsqrt.f32 %v294_v18 }
 0x132   :  { %v295_v27 = vadd.f32 1e-05, %v287_v16  ;;  %v156_v30 = vadd.f32 1e-05, %v148_v26 }
 0x133   :  { %v133_v31 = vpop.xlane.xlu1 %132  ;;  %v270_v32 = vpop.xlane.xlu0 %269 }
 0x134   :  { %4122 = vrsqrt.f32 %v295_v27  ;;  %v149_v33 = vmul.f32 0.0625, %v133_v31  ;;  %v288_v34 = vmul.f32 0.0625, %v270_v32 }
 0x135   :  { %4124 = vrsqrt.f32 %v156_v30 }
 0x136   :  { %v157_v20 = vadd.f32 1e-05, %v149_v33  ;;  %v296_v21 = vadd.f32 1e-05, %v288_v34 }
 0x137   :  { %v273_v39 = vpop.xlane.xlu1 %272  ;;  %v136_v40 = vpop.xlane.xlu0 %135 }
 0x138   :  { %4126 = vrsqrt.f32 %v157_v20  ;;  %v289_v41 = vmul.f32 0.0625, %v273_v39  ;;  %v150_v42 = vmul.f32 0.0625, %v136_v40 }
 0x139   :  { %v4117_v43 = vpop.eup %4116  ;;  %4128 = vrsqrt.f32 %v296_v21 }
 0x13a   :  { %v297_v46 = vadd.f32 1e-05, %v289_v41  ;;  %v158_v25 = vadd.f32 1e-05, %v150_v42  ;;  %v170_v47 = vmul.f32 %v4117_v43, %v4492_v36  ;;  %v4672_v41 = vld [vmem:[%s5579_s7 + $0x18] sm:$0xff] }
 0x13b   :  { %v139_v48 = vpop.xlane.xlu1 %138  ;;  %v276_v49 = vpop.xlane.xlu0 %275 }
 0x13c   :  { %4130 = vrsqrt.f32 %v297_v46  ;;  %v151_v53 = vmul.f32 0.0625, %v139_v48  ;;  %v290_v56 = vmul.f32 0.0625, %v276_v49  ;;  %v184_v57 = vmul.f32 %v4636_v24, %v170_v47  ;;  %v4683_v47 = vld [vmem:[%s5579_s7 + $0x10] sm:$0xff] }
 0x13d   :  { %v4119_v28 = vpop.eup %4118  ;;  %4132 = vrsqrt.f32 %v158_v25 }
 0x13e   :  { %v4121_v29 = vpop.eup %4120  ;;  %v171_v58 = vmul.f32 %v4119_v28, %v4500_v44  ;;  %v159_v59 = vadd.f32 1e-05, %v151_v53  ;;  %v298_v60 = vadd.f32 1e-05, %v290_v56  ;;  %v198_v36 = vadd.f32 %v4642_v52, %v184_v57 }
 0x13f   :  { %v279_v61 = vpop.xlane.xlu1 %278  ;;  %v142_v62 = vpop.xlane.xlu0 %141  ;;  %v310_v63 = vmul.f32 %v4121_v29, %v4494_v37 }
 0x140   :  { %v185_v2 = vmul.f32 %v4636_v24, %v171_v58  ;;  %4134 = vrsqrt.f32 %v159_v59  ;;  %v291_v3 = vmul.f32 0.0625, %v279_v61  ;;  %v152_v6 = vmul.f32 0.0625, %v142_v62  ;;  %3832 = vmatprep.mubr.msk.f32.mxu0 %vm72_vm0, %v198_v36 }
 0x141   :  { %v4123_v7 = vpop.eup %4122  ;;  %4136 = vrsqrt.f32 %v298_v60  ;;  %v318_v8 = vmul.f32 %v4636_v24, %v310_v63 }
 0x142   :  { %v4125_v44 = vpop.eup %4124  ;;  %v299_v9 = vadd.f32 1e-05, %v291_v3  ;;  %v160_v12 = vadd.f32 1e-05, %v152_v6  ;;  %v199_v13 = vadd.f32 %v4642_v52, %v185_v2  ;;  %v311_v14 = vmul.f32 %v4123_v7, %v4502_v45 }
 0x143   :  { %v145_v15 = vpop.xlane.xlu1 %144  ;;  %v282_v37 = vpop.xlane.xlu0 %281  ;;  %v326_v18 = vadd.f32 %v4642_v52, %v318_v8  ;;  %v172_v22 = vmul.f32 %v4125_v44, %v4510_v54 }
 0x144   :  { %4138 = vrsqrt.f32 %v299_v9  ;;  %v153_v16 = vmul.f32 0.0625, %v145_v15  ;;  %v292_v26 = vmul.f32 0.0625, %v282_v37  ;;  %3833 = vmatmul.mubr.msk.f32.vlgmr.msra.gmra.mxu0 %vm72_vm0, %v199_v13  ;;  %v319_v27 = vmul.f32 %v4636_v24, %v311_v14 }
 0x145   :  { %v4127_v30 = vpop.eup %4126  ;;  %4140 = vrsqrt.f32 %v160_v12  ;;  %3845 = vmatpush3.msra.mxu0 %v4629_v4  ;;  %3848 = vmatprep.mubr.msk.f32.mxu0 %vm72_vm0, %v326_v18  ;;  %v186_v45 = vmul.f32 %v4636_v24, %v172_v22 }
 0x146   :  { %v4129_v31 = vpop.eup %4128  ;;  %v161_v32 = vadd.f32 1e-05, %v153_v16  ;;  %v300_v33 = vadd.f32 1e-05, %v292_v26  ;;  %3846 = vmatprep.subr.mxu0 %v604_v19  ;;  %v327_v54 = vadd.f32 %v4642_v52, %v319_v27  ;;  %v173_v34 = vmul.f32 %v4127_v30, %v4512_v55 }
 0x147   :  { %v285_v20 = vpop.xlane.xlu1 %284  ;;  %3847 = vmatpush3.msra.mxu0 %v604_v19  ;;  %v200_v21 = vadd.f32 %v4642_v52, %v186_v45  ;;  %v312_v39 = vmul.f32 %v4129_v31, %v4521_v0 }
 0x148   :  { %4142 = vrsqrt.f32 %v161_v32  ;;  %v293_v4 = vmul.f32 0.0625, %v285_v20  ;;  %3849 = vmatmul.mubr.msk.f32.vlgmr.msra.gmra.mxu0 %vm72_vm0, %v327_v54  ;;  %v187_v40 = vmul.f32 %v4636_v24, %v173_v34  ;;  %3882 = vmatprep.subr.mxu0 %v4292_v5  ;;  %v751_v20 = vlaneseq }
 0x149   :  { %v4131_v55 = vpop.eup %4130  ;;  %4144 = vrsqrt.f32 %v300_v33  ;;  %3835 = vmatprep.mubr.msk.f32.mxu1 %vm72_vm0, %v200_v21  ;;  %v320_v42 = vmul.f32 %v4636_v24, %v312_v39  ;;  %3883 = vmatpush3.msra.mxu0 %v4672_v41 }
 0x14a   :  { %v4133_v0 = vpop.eup %4132  ;;  %v301_v43 = vadd.f32 1e-05, %v293_v4  ;;  %v201_v46 = vadd.f32 %v4642_v52, %v187_v40  ;;  %v313_v25 = vmul.f32 %v4131_v55, %v4524_v1  ;;  %3884 = vmatprep.subr.mxu0 %v4292_v5  ;;  %v4765_v55 = vand.u32 127, %v751_v20 }
 0x14b   :  { %v328_v48 = vadd.f32 %v4642_v52, %v320_v42  ;;  %v174_v49 = vmul.f32 %v4133_v0, %v4533_v10  ;;  %3885 = vmatpush3.msra.mxu0 %v4683_v47  ;;  %v4698_v10 = vld [vmem:[%s5579_s7 + $0x8] sm:$0xff] }
 0x14c   :  { %4146 = vrsqrt.f32 %v301_v43  ;;  %3836 = vmatmul.mubr.msk.f32.vlgmr.msra.gmra.mxu1 %vm72_vm0, %v201_v46  ;;  %v321_v53 = vmul.f32 %v4636_v24, %v313_v25  ;;  %3886 = vmatprep.subr.mxu0 %v4292_v5  ;;  %vm755_vm3 = vcmp.lt.s32.totalorder %v4765_v55, 16 }
 0x14d   :  { %v4135_v1 = vpop.eup %4134  ;;  %3851 = vmatprep.mubr.msk.f32.mxu0 %vm72_vm0, %v328_v48  ;;  %v188_v56 = vmul.f32 %v4636_v24, %v174_v49  ;;  %3861 = vmatpush3.msra.mxu1 %v4672_v41  ;;  %v753_v48 = vand.u32 16, %v4765_v55 }
 0x14e   :  { %v4137_v57 = vpop.eup %4136  ;;  %v329_v28 = vadd.f32 %v4642_v52, %v321_v53  ;;  %v175_v29 = vmul.f32 %v4135_v1, %v4536_v11  ;;  %3862 = vmatprep.subr.mxu1 %v4292_v5  ;;  %3887 = vmatpush3.msra.mxu0 %v4698_v10  ;;  %v4714_v11 = vld [vmem:[%s5579_s7] sm:$0xff] }
 0x14f   :  { %v202_v58 = vadd.f32 %v4642_v52, %v188_v56  ;;  %v314_v59 = vmul.f32 %v4137_v57, %v4545_v23  ;;  %3863 = vmatpush3.msra.mxu1 %v4683_v47  ;;  %3888 = vmatprep.subr.mxu0 %v4292_v5  ;;  %vm4772_vm2 = vcmp.eq.s32.totalorder %v753_v48, 0 }
 0x150   :  { %3852 = vmatmul.mubr.msk.f32.gmra.mxu0 %vm72_vm0, %v329_v28  ;;  %v189_v60 = vmul.f32 %v4636_v24, %v175_v29  ;;  %3864 = vmatprep.subr.mxu1 %v4292_v5 }
 0x151   :  { %v4139_v36 = vpop.eup %4138  ;;  %3838 = vmatprep.mubr.msk.f32.mxu1 %vm72_vm0, %v202_v58  ;;  %v322_v23 = vmul.f32 %v4636_v24, %v314_v59  ;;  %3865 = vmatpush3.msra.mxu1 %v4698_v10 }
 0x152   :  { %v4141_v61 = vpop.eup %4140  ;;  %v203_v62 = vadd.f32 %v4642_v52, %v189_v60  ;;  %v315_v63 = vmul.f32 %v4139_v36, %v4548_v17  ;;  %3866 = vmatprep.subr.mxu1 %v4292_v5  ;;  %3889 = vmatpush3.msra.mxu0 %v4714_v11 }
 0x153   :  { %v330_v2 = vadd.f32 %v4642_v52, %v322_v23  ;;  %v176_v3 = vmul.f32 %v4141_v61, %v4560_v35  ;;  %3867 = vmatpush3.msra.mxu1 %v4714_v11  ;;  %3904 = vmatprep.subr.mxu0 %v4292_v5 }
 0x154   :  { %3839 = vmatmul.mubr.msk.f32.gmra.mxu1 %vm72_vm0, %v203_v62  ;;  %v323_v6 = vmul.f32 %v4636_v24, %v315_v63  ;;  %3871 = vmatprep.subr.mxu1 %v4292_v5 }
 0x155   :  { %v4143_v7 = vpop.eup %4142  ;;  %3854 = vmatprep.mubr.msk.f32.mxu0 %vm72_vm0, %v330_v2  ;;  %v190_v17 = vmul.f32 %v4636_v24, %v176_v3 }
 0x156   :  { %v4145_v8 = vpop.eup %4144  ;;  %v331_v44 = vadd.f32 %v4642_v52, %v323_v6  ;;  %v177_v35 = vmul.f32 %v4143_v7, %v4563_v38 }
 0x157   :  { %v204_v9 = vadd.f32 %v4642_v52, %v190_v17  ;;  %v316_v12 = vmul.f32 %v4145_v8, %v4582_v50 }
 0x158   :  { %3855 = vmatmul.mubr.msk.f32.gmra.mxu0 %vm72_vm0, %v331_v44  ;;  %v191_v13 = vmul.f32 %v4636_v24, %v177_v35 }
 0x159   :  { %v4147_v14 = vpop.eup %4146  ;;  %3841 = vmatprep.mubr.msk.f32.mxu1 %vm72_vm0, %v204_v9  ;;  %v324_v15 = vmul.f32 %v4636_v24, %v316_v12  ;;  %v4803_v9 = vld [vmem:[%s5580_s8] ss:$0 sm:$0xff]  ;;  %s4294_s8 = smov 64  }
 0x15a   :  { %v205_v37 = vadd.f32 %v4642_v52, %v191_v13  ;;  %v317_v18 = vmul.f32 %v4147_v14, %v4585_v51 }
 0x15b   :  { %v332_v19 = vadd.f32 %v4642_v52, %v324_v15 }
 0x15c   :  { %3842 = vmatmul.mubr.msk.f32.gmra.mxu1 %vm72_vm0, %v205_v37  ;;  %v325_v38 = vmul.f32 %v4636_v24, %v317_v18 }
 0x15d   :  { %3857 = vmatprep.mubr.msk.f32.mxu0 %vm72_vm0, %v332_v19  ;;  %3868 = vmatprep.mubr.msk.f32.mxu1 %vm4293_vm1, %v4292_v5 }
 0x15e   :  { %v333_v50 = vadd.f32 %v4642_v52, %v325_v38 }
 0x160   :  { %3858 = vmatmul.mubr.msk.f32.gmra.mxu0 %vm72_vm0, %v333_v50  ;;  %3869 = vmatmul.mubr.f32.vlgmr.msra.gmra.mxu1 %v4292_v5 }
 0x161   :  { %3872 = vmatpush3.msra.mxu1 %v4672_v41  ;;  %3879 = vmatprep.mubr.msk.f32.mxu1 %vm4293_vm1, %v4292_v5 }
 0x162   :  { %3873 = vmatprep.subr.mxu1 %v4292_v5  ;;  %3890 = vmatprep.mubr.msk.f32.mxu0 %vm4293_vm1, %v4292_v5 }
 0x163   :  { %3874 = vmatpush3.msra.mxu1 %v4683_v47 }
 0x164   :  { %3875 = vmatprep.subr.mxu1 %v4292_v5 }
 0x165   :  { %3876 = vmatpush3.msra.mxu1 %v4698_v10 }
 0x166   :  { %3877 = vmatprep.subr.mxu1 %v4292_v5 }
 0x167   :  { %3878 = vmatpush3.msra.mxu1 %v4714_v11 }
 0x168   :  { %3893 = vmatprep.subr.mxu1 %v4292_v5 }
 0x174   :  { %v3818_v51 = vpop.f32.mrf.mxu0 }
 0x176   :  { %v436_v24 = vpop.f32.mrf.mxu0 }
 0x178   :  { %v3821_v52 = vpop.f32.mrf.mxu0 }
 0x17a   :  { %v446_v22 = vpop.f32.mrf.mxu0 }
 0x17c   :  { %v3824_v16 = vpop.f32.mrf.mxu0 }
 0x17e   :  { %v456_v26 = vpop.f32.mrf.mxu0 }
 0x180   :  { %v3827_v27 = vpop.f32.mrf.mxu0 }
 0x182   :  { %v466_v30 = vpop.f32.mrf.mxu0 }
 0x204   :  { %v3834_v45 = vpop.f32.mrf.mxu0 }
 0x205   :  { %v571_v32 = vadd.f32 %v3834_v45, %v3818_v51 }
 0x206   :  { %v565_v31 = vpop.f32.mrf.mxu0 }
 0x207   :  { %v566_v63 = vadd.f32 %v565_v31, %v436_v24 }
 0x208   :  { %v3850_v33 = vpop.f32.mrf.mxu0 }
 0x209   :  { %v4763_v54 = vadd.f32 %v3850_v33, %v571_v32 }
 0x20a   :  { %v696_v21 = vpop.f32.mrf.mxu0 }
 0x20b   :  { %v4796_v17 = vadd.f32 %v696_v21, %v566_v63 }
 0x20c   :  { %v3837_v34 = vpop.f32.mrf.mxu1 }
 0x20d   :  { %v581_v4 = vadd.f32 %v3837_v34, %v3821_v52  ;;  %v4836_v34 = vld [vmem:[%s5581_s3] sm:$0xff] }
 0x20e   :  { %v575_v39 = vpop.f32.mrf.mxu1 }
 0x20f   :  { %v576_v42 = vadd.f32 %v575_v39, %v446_v22 }
 0x210   :  { %v3853_v40 = vpop.f32.mrf.mxu0 }
 0x211   :  { %v4767_v0 = vadd.f32 %v3853_v40, %v581_v4 }
 0x212   :  { %v706_v43 = vpop.f32.mrf.mxu0 }
 0x213   :  { %v4769_v46 = vadd.f32 %v706_v43, %v576_v42 }
 0x214   :  { %v3840_v25 = vpop.f32.mrf.mxu1 }
 0x215   :  { %v591_v53 = vadd.f32 %v3840_v25, %v3824_v16 }
 0x216   :  { %v585_v49 = vpop.f32.mrf.mxu1 }
 0x217   :  { %v586_v57 = vadd.f32 %v585_v49, %v456_v26 }
 0x218   :  { %v3856_v1 = vpop.f32.mrf.mxu0 }
 0x219   :  { %v4776_v28 = vadd.f32 %v3856_v1, %v591_v53 }
 0x21a   :  { %v716_v29 = vpop.f32.mrf.mxu0 }
 0x21b   :  { %v4778_v58 = vadd.f32 %v716_v29, %v586_v57  ;;  %v1040_v59 = vsel %vm4772_vm2, %v4769_v46, %v4776_v28  ;;  %v1448_v60 = vsel %vm4772_vm2, %v4776_v28, %v4769_v46 }
 0x21c   :  { %v3843_v36 = vpop.f32.mrf.mxu1 }
 0x21d   :  { %v1176_v23 = vsel %vm4772_vm2, %v4767_v0, %v4778_v58  ;;  %v1312_v61 = vsel %vm4772_vm2, %v4778_v58, %v4767_v0  ;;  %v601_v2 = vadd.f32 %v3843_v36, %v3827_v27  ;;  %v4296_v27 = vmov 0  }
 0x21e   :  { %v595_v62 = vpop.f32.mrf.mxu1  ;;  %4115 = vset.pattern.permute.xlu0 %v4296_v27  ;;  %4114 = vset.pattern.permute.xlu1 %v4296_v27 }
 0x21f   :  { %v596_v3 = vadd.f32 %v595_v62, %v466_v30  ;;  %v4829_v30 = vld [vmem:[%s5581_s3 + $0x38] sm:$0xff] }
 0x220   :  { %v3859_v6 = vpop.f32.mrf.mxu0  ;;  %v836_v7 = vpop.f32.mrf.mxu1 }
 0x221   :  { %v4798_v8 = vadd.f32 %v3859_v6, %v601_v2 }
 0x222   :  { %v726_v44 = vpop.f32.mrf.mxu0  ;;  %v3870_v35 = vpop.f32.mrf.mxu1 }
 0x223   :  { %v765_v12 = vsel %vm4772_vm2, %v4796_v17, %v4798_v8  ;;  %v4809_v13 = vadd.f32 %v726_v44, %v596_v3  ;;  %v1720_v14 = vsel %vm4772_vm2, %v4798_v8, %v4796_v17 }
 0x224   :  { %v840_v15 = vadd.f32 %v836_v7, %v765_v12 }
 0x225   :  { %v904_v37 = vsel %vm4772_vm2, %v4763_v54, %v4809_v13  ;;  %v1584_v18 = vsel %vm4772_vm2, %v4809_v13, %v4763_v54 }
 0x226   :  { %v847_v19 = vadd.f32 %v4803_v9, %v840_v15 }
 0x228   :  { %4148 = vtanh.f32 %v847_v19  ;;  %v848_v50 = vsub.f32 0.0, %v847_v19 }
 0x22a   :  { %v849_v51 = vmul.f32 1.442695, %v848_v50 }
 0x22c   :  { %4150 = vpow2.f32 %v849_v51 }
 0x235   :  { %v4149_v38 = vpop.eup %4148 }
 0x236   :  { %857 = vrot.lane.b32.xlu0 %v4149_v38, %s4294_s8 }
 0x239   :  { %v4151_v24 = vpop.eup %4150 }
 0x23a   :  { %v851_v52 = vadd.f32 1.0, %v4151_v24  ;;  %879 = vperm.xlu0 %4115, %v4829_v30  }
 0x23c   :  { %4152 = vrcp.f32 %v851_v52  ;;  %v4876_v52 = vld [vmem:[%s5581_s3 + $0x30] sm:$0xff] }
 0x249   :  { %v4153_v22 = vpop.eup %4152 }
 0x24a   :  { %v855_v45 = vmul.f32 0.0, %v4153_v22 }
 0x2a8   :  { %v858_v16 = vpop.permute.xlu0 %857 }
 0x2a9   :  { %v860_v26 = vmul.f32 %v4153_v22, %v858_v16 }
 0x2ab   :  { %862 = vrot.lane.b32.xlu1 %v860_v26, %s4295_s6 }
 0x2b5   :  { %v880_v39 = vpop.permute.xlu0 %879 }
 0x31d   :  { %v863_v31 = vpop.permute.xlu1 %862 }
 0x31e   :  { %v865_v32 = vadd.f32 %v863_v31, %v855_v45 }
 0x320   :  { %4154 = vtanh.f32 %v865_v32 }
 0x32d   :  { %v4155_v33 = vpop.eup %4154 }
 0x32e   :  { %868 = vrot.lane.b32.xlu1 %v4155_v33, %s4294_s8 }
 0x332   :  { %874 = vperm.xlu1 %4114, %v4836_v34  }
 0x3a0   :  { %v869_v20 = vpop.permute.xlu1 %868 }
 0x3a1   :  { %v871_v21 = vmul.f32 %v4153_v22, %v869_v20 }
 0x3a3   :  { %884 = vrot.lane.b32.xlu1 %v871_v21, %s4295_s6 }
 0x3a7   :  { %892 = vrot.lane.b32.xlu1 %v865_v32, %s4297_s25 }
 0x3ad   :  { %v875_v4 = vpop.permute.xlu1 %874 }
 0x3ae   :  { %v882_v40 = vsel %vm755_vm3, %v875_v4, %v880_v39 }
 0x3af   :  { %v888_v42 = vsub.f32 1.0, %v882_v40 }
 0x3b1   :  { %v889_v43 = vmul.f32 0.0, %v888_v42 }
 0x415   :  { %v885_v25 = vpop.permute.xlu1 %884 }
 0x416   :  { %v887_v48 = vmul.f32 %v885_v25, %v882_v40 }
 0x418   :  { %v890_v49 = vadd.f32 %v889_v43, %v887_v48 }
 0x419   :  { %v893_v53 = vpop.permute.xlu1 %892 }
 0x41a   :  { %897 = vst.msk [vmem:[#allocation3] sm:$0xff] %vm72_vm0, %v890_v49  ;;  %v895_v1 = vmul.f32 %v893_v53, %v882_v40  ;;  %3880 = vmatmul.mubr.msk.f32.vlgmr.msra.gmra.mxu1 %vm766_vm4, %v890_v49 }
 0x41b   :  { %899 = vst.msk [vmem:[#allocation3 + $0x38] sm:$0xff] %vm898_vm5, %v890_v49  ;;  %3894 = vmatpush3.msra.mxu1 %v4672_v41  ;;  %3901 = vmatprep.mubr.msk.f32.mxu1 %vm4293_vm1, %v4292_v5 }
 0x41c   :  { %v896_v57 = vadd.f32 %v895_v1, %v889_v43  ;;  %3895 = vmatprep.subr.mxu1 %v4292_v5 }
 0x41d   :  { %3896 = vmatpush3.msra.mxu1 %v4683_v47 }
 0x41e   :  { %988 = vrot.lane.b32.xlu1 %v896_v57, %s4295_s6  ;;  %3897 = vmatprep.subr.mxu1 %v4292_v5 }
 0x41f   :  { %3898 = vmatpush3.msra.mxu1 %v4698_v10 }
 0x420   :  { %3899 = vmatprep.subr.mxu1 %v4292_v5 }
 0x421   :  { %3900 = vmatpush3.msra.mxu1 %v4714_v11 }
 0x422   :  { %3915 = vmatprep.subr.mxu1 %v4292_v5 }
 0x490   :  { %v989_v19 = vpop.permute.xlu1 %988 }
 0x4da   :  { %v974_v29 = vpop.f32.mrf.mxu1 }
 0x4db   :  { %v978_v36 = vadd.f32 %v974_v29, %v904_v37  ;;  %v4869_v37 = vld [vmem:[%s5581_s3 + $0x8] sm:$0xff] }
 0x4dc   :  { %v3881_v62 = vpop.f32.mrf.mxu1 }
 0x4dd   :  { %v979_v63 = vadd.f32 %v4803_v9, %v978_v36 }
 0x4df   :  { %4156 = vtanh.f32 %v979_v63  ;;  %v980_v3 = vsub.f32 0.0, %v979_v63 }
 0x4e1   :  { %v981_v6 = vmul.f32 1.442695, %v980_v3 }
 0x4e3   :  { %4158 = vpow2.f32 %v981_v6 }
 0x4ec   :  { %v4157_v2 = vpop.eup %4156 }
 0x4ed   :  { %993 = vrot.lane.b32.xlu0 %v4157_v2, %s4294_s8 }
 0x4f0   :  { %v4159_v7 = vpop.eup %4158 }
 0x4f1   :  { %v983_v44 = vadd.f32 1.0, %v4159_v7 }
 0x4f3   :  { %4160 = vrcp.f32 %v983_v44 }
 0x500   :  { %v4161_v35 = vpop.eup %4160 }
 0x501   :  { %v991_v38 = vmul.f32 %v4161_v35, %v989_v19 }
 0x55f   :  { %v994_v12 = vpop.permute.xlu0 %993 }
 0x560   :  { %v996_v15 = vmul.f32 %v4161_v35, %v994_v12  ;;  %v4915_v12 = vld [vmem:[%s5581_s3 + $0x28] sm:$0xff] }
 0x562   :  { %998 = vrot.lane.b32.xlu0 %v996_v15, %s4295_s6 }
 0x566   :  { %1010 = vperm.xlu0 %4115, %v4869_v37  }
 0x5d4   :  { %v999_v50 = vpop.permute.xlu0 %998 }
 0x5d5   :  { %v1001_v51 = vadd.f32 %v999_v50, %v991_v38 }
 0x5d7   :  { %4162 = vtanh.f32 %v1001_v51 }
 0x5e1   :  { %v1011_v26 = vpop.permute.xlu0 %1010 }
 0x5e4   :  { %v4163_v24 = vpop.eup %4162 }
 0x5e5   :  { %1004 = vrot.lane.b32.xlu1 %v4163_v24, %s4294_s8 }
 0x5e9   :  { %1015 = vperm.xlu1 %4114, %v4876_v52  }
 0x5ed   :  { %1028 = vrot.lane.b32.xlu1 %v1001_v51, %s4297_s25 }
 0x657   :  { %v1005_v22 = vpop.permute.xlu1 %1004 }
 0x658   :  { %v1007_v16 = vmul.f32 %v4161_v35, %v1005_v22 }
 0x65a   :  { %1020 = vrot.lane.b32.xlu0 %v1007_v16, %s4295_s6 }
 0x664   :  { %v1016_v27 = vpop.permute.xlu1 %1015 }
 0x665   :  { %v1018_v45 = vsel %vm755_vm3, %v1011_v26, %v1016_v27 }
 0x666   :  { %v1024_v31 = vsub.f32 1.0, %v1018_v45 }
 0x668   :  { %v1032_v32 = vmul.f32 %v1024_v31, %v896_v57  ;;  %v1029_v33 = vpop.permute.xlu1 %1028  ;;  %v1025_v40 = vmul.f32 %v1024_v31, %v890_v49 }
 0x669   :  { %v1031_v20 = vmul.f32 %v1029_v33, %v1018_v45 }
 0x66b   :  { %v1033_v21 = vadd.f32 %v1032_v32, %v1031_v20 }
 0x66d   :  { %1124 = vrot.lane.b32.xlu1 %v1033_v21, %s4295_s6 }
 0x6cc   :  { %v1021_v39 = vpop.permute.xlu0 %1020 }
 0x6cd   :  { %v1023_v4 = vmul.f32 %v1021_v39, %v1018_v45 }
 0x6cf   :  { %v1026_v42 = vadd.f32 %v1025_v40, %v1023_v4 }
 0x6d1   :  { %1034 = vst.msk [vmem:[#allocation3 + $0x8] sm:$0xff] %vm72_vm0, %v1026_v42  ;;  %3891 = vmatmul.mubr.msk.f32.vlgmr.msra.gmra.mxu0 %vm766_vm4, %v1026_v42 }
 0x6d2   :  { %1035 = vst.msk [vmem:[#allocation3 + $0x30] sm:$0xff] %vm898_vm5, %v1026_v42  ;;  %3905 = vmatpush3.msra.mxu0 %v4672_v41  ;;  %3912 = vmatprep.mubr.msk.f32.mxu0 %vm4293_vm1, %v4292_v5 }
 0x6d3   :  { %3906 = vmatprep.subr.mxu0 %v4292_v5 }
 0x6d4   :  { %3907 = vmatpush3.msra.mxu0 %v4683_v47 }
 0x6d5   :  { %3908 = vmatprep.subr.mxu0 %v4292_v5 }
 0x6d6   :  { %3909 = vmatpush3.msra.mxu0 %v4698_v10 }
 0x6d7   :  { %3910 = vmatprep.subr.mxu0 %v4292_v5 }
 0x6d8   :  { %3911 = vmatpush3.msra.mxu0 %v4714_v11 }
 0x6d9   :  { %3926 = vmatprep.subr.mxu0 %v4292_v5 }
 0x6df   :  { %v1125_v3 = vpop.permute.xlu1 %1124 }
 0x791   :  { %v1110_v43 = vpop.f32.mrf.mxu0 }
 0x792   :  { %v1114_v25 = vadd.f32 %v1110_v43, %v1040_v59  ;;  %v4908_v59 = vld [vmem:[%s5581_s3 + $0x10] sm:$0xff] }
 0x793   :  { %v3892_v48 = vpop.f32.mrf.mxu0 }
 0x794   :  { %v1115_v49 = vadd.f32 %v4803_v9, %v1114_v25 }
 0x796   :  { %4164 = vtanh.f32 %v1115_v49  ;;  %v1116_v1 = vsub.f32 0.0, %v1115_v49 }
 0x798   :  { %v1117_v57 = vmul.f32 1.442695, %v1116_v1 }
 0x79a   :  { %4166 = vpow2.f32 %v1117_v57 }
 0x7a3   :  { %v4165_v53 = vpop.eup %4164 }
 0x7a4   :  { %1129 = vrot.lane.b32.xlu0 %v4165_v53, %s4294_s8 }
 0x7a7   :  { %v4167_v29 = vpop.eup %4166 }
 0x7a8   :  { %v1119_v36 = vadd.f32 1.0, %v4167_v29 }
 0x7aa   :  { %4168 = vrcp.f32 %v1119_v36 }
 0x7b7   :  { %v4169_v62 = vpop.eup %4168 }
 0x7b8   :  { %v1127_v6 = vmul.f32 %v4169_v62, %v1125_v3 }
 0x816   :  { %v1130_v63 = vpop.permute.xlu0 %1129 }
 0x817   :  { %v1132_v2 = vmul.f32 %v4169_v62, %v1130_v63 }
 0x819   :  { %1134 = vrot.lane.b32.xlu0 %v1132_v2, %s4295_s6  ;;  %v4954_v2 = vld [vmem:[%s5581_s3 + $0x20] sm:$0xff] }
 0x81d   :  { %1146 = vperm.xlu0 %4115, %v4908_v59  }
 0x88b   :  { %v1135_v7 = vpop.permute.xlu0 %1134 }
 0x88c   :  { %v1137_v44 = vadd.f32 %v1135_v7, %v1127_v6 }
 0x88e   :  { %4170 = vtanh.f32 %v1137_v44 }
 0x898   :  { %v1147_v38 = vpop.permute.xlu0 %1146 }
 0x89b   :  { %v4171_v35 = vpop.eup %4170 }
 0x89c   :  { %1140 = vrot.lane.b32.xlu1 %v4171_v35, %s4294_s8 }
 0x8a0   :  { %1151 = vperm.xlu1 %4114, %v4915_v12  }
 0x8a4   :  { %1164 = vrot.lane.b32.xlu1 %v1137_v44, %s4297_s25 }
 0x90e   :  { %v1141_v15 = vpop.permute.xlu1 %1140 }
 0x90f   :  { %v1143_v19 = vmul.f32 %v4169_v62, %v1141_v15 }
 0x911   :  { %1156 = vrot.lane.b32.xlu0 %v1143_v19, %s4295_s6 }
 0x91b   :  { %v1152_v50 = vpop.permute.xlu1 %1151 }
 0x91c   :  { %v1154_v51 = vsel %vm755_vm3, %v1147_v38, %v1152_v50 }
 0x91d   :  { %v1160_v24 = vsub.f32 1.0, %v1154_v51 }
 0x91f   :  { %v1168_v22 = vmul.f32 %v1160_v24, %v1033_v21  ;;  %v1165_v16 = vpop.permute.xlu1 %1164  ;;  %v1161_v32 = vmul.f32 %v1160_v24, %v1026_v42 }
 0x920   :  { %v1167_v26 = vmul.f32 %v1165_v16, %v1154_v51 }
 0x922   :  { %v1169_v27 = vadd.f32 %v1168_v22, %v1167_v26 }
 0x924   :  { %1260 = vrot.lane.b32.xlu1 %v1169_v27, %s4295_s6 }
 0x983   :  { %v1157_v45 = vpop.permute.xlu0 %1156 }
 0x984   :  { %v1159_v31 = vmul.f32 %v1157_v45, %v1154_v51 }
 0x986   :  { %v1162_v33 = vadd.f32 %v1161_v32, %v1159_v31 }
 0x988   :  { %1170 = vst.msk [vmem:[#allocation3 + $0x10] sm:$0xff] %vm72_vm0, %v1162_v33  ;;  %3902 = vmatmul.mubr.msk.f32.vlgmr.msra.gmra.mxu1 %vm766_vm4, %v1162_v33 }
 0x989   :  { %1171 = vst.msk [vmem:[#allocation3 + $0x28] sm:$0xff] %vm898_vm5, %v1162_v33  ;;  %3916 = vmatpush3.msra.mxu1 %v4672_v41  ;;  %3923 = vmatprep.mubr.msk.f32.mxu1 %vm4293_vm1, %v4292_v5 }
 0x98a   :  { %3917 = vmatprep.subr.mxu1 %v4292_v5 }
 0x98b   :  { %3918 = vmatpush3.msra.mxu1 %v4683_v47 }
 0x98c   :  { %3919 = vmatprep.subr.mxu1 %v4292_v5 }
 0x98d   :  { %3920 = vmatpush3.msra.mxu1 %v4698_v10 }
 0x98e   :  { %3921 = vmatprep.subr.mxu1 %v4292_v5 }
 0x98f   :  { %3922 = vmatpush3.msra.mxu1 %v4714_v11 }
 0x990   :  { %3937 = vmatprep.subr.mxu1 %v4292_v5 }
 0x996   :  { %v1261_v57 = vpop.permute.xlu1 %1260 }
 0xa48   :  { %v1246_v20 = vpop.f32.mrf.mxu1 }
 0xa49   :  { %v1250_v21 = vadd.f32 %v1246_v20, %v1176_v23  ;;  %v4947_v23 = vld [vmem:[%s5581_s3 + $0x18] sm:$0xff] }
 0xa4a   :  { %v3903_v39 = vpop.f32.mrf.mxu1 }
 0xa4b   :  { %v1251_v4 = vadd.f32 %v4803_v9, %v1250_v21 }
 0xa4d   :  { %4172 = vtanh.f32 %v1251_v4  ;;  %v1252_v42 = vsub.f32 0.0, %v1251_v4 }
 0xa4f   :  { %v1253_v43 = vmul.f32 1.442695, %v1252_v42 }
 0xa51   :  { %4174 = vpow2.f32 %v1253_v43 }
 0xa5a   :  { %v4173_v40 = vpop.eup %4172 }
 0xa5b   :  { %1265 = vrot.lane.b32.xlu0 %v4173_v40, %s4294_s8 }
 0xa5e   :  { %v4175_v25 = vpop.eup %4174 }
 0xa5f   :  { %v1255_v48 = vadd.f32 1.0, %v4175_v25 }
 0xa61   :  { %4176 = vrcp.f32 %v1255_v48 }
 0xa6e   :  { %v4177_v49 = vpop.eup %4176 }
 0xa6f   :  { %v1263_v29 = vmul.f32 %v4177_v49, %v1261_v57 }
 0xacd   :  { %v1266_v53 = vpop.permute.xlu0 %1265 }
 0xace   :  { %v1268_v1 = vmul.f32 %v4177_v49, %v1266_v53 }
 0xad0   :  { %1270 = vrot.lane.b32.xlu0 %v1268_v1, %s4295_s6 }
 0xad4   :  { %1282 = vperm.xlu0 %4115, %v4947_v23  }
 0xb42   :  { %v1271_v36 = vpop.permute.xlu0 %1270 }
 0xb43   :  { %v1273_v62 = vadd.f32 %v1271_v36, %v1263_v29 }
 0xb45   :  { %4178 = vtanh.f32 %v1273_v62 }
 0xb4f   :  { %v1283_v7 = vpop.permute.xlu0 %1282 }
 0xb52   :  { %v4179_v63 = vpop.eup %4178 }
 0xb53   :  { %1276 = vrot.lane.b32.xlu1 %v4179_v63, %s4294_s8 }
 0xb57   :  { %1287 = vperm.xlu1 %4114, %v4954_v2  }
 0xb5b   :  { %1300 = vrot.lane.b32.xlu1 %v1273_v62, %s4297_s25 }
 0xbc5   :  { %v1277_v3 = vpop.permute.xlu1 %1276 }
 0xbc6   :  { %v1279_v6 = vmul.f32 %v4177_v49, %v1277_v3 }
 0xbc8   :  { %1292 = vrot.lane.b32.xlu0 %v1279_v6, %s4295_s6 }
 0xbd2   :  { %v1288_v44 = vpop.permute.xlu1 %1287 }
 0xbd3   :  { %v1290_v35 = vsel %vm755_vm3, %v1283_v7, %v1288_v44 }
 0xbd4   :  { %v1296_v15 = vsub.f32 1.0, %v1290_v35 }
 0xbd6   :  { %v1304_v19 = vmul.f32 %v1296_v15, %v1169_v27  ;;  %v1301_v38 = vpop.permute.xlu1 %1300  ;;  %v1297_v16 = vmul.f32 %v1296_v15, %v1162_v33 }
 0xbd7   :  { %v1303_v50 = vmul.f32 %v1301_v38, %v1290_v35 }
 0xbd9   :  { %v1305_v51 = vadd.f32 %v1304_v19, %v1303_v50 }
 0xbdb   :  { %1396 = vrot.lane.b32.xlu1 %v1305_v51, %s4295_s6 }
 0xc3a   :  { %v1293_v24 = vpop.permute.xlu0 %1292 }
 0xc3b   :  { %v1295_v22 = vmul.f32 %v1293_v24, %v1290_v35 }
 0xc3d   :  { %v1298_v26 = vadd.f32 %v1297_v16, %v1295_v22 }
 0xc3f   :  { %1306 = vst.msk [vmem:[#allocation3 + $0x18] sm:$0xff] %vm72_vm0, %v1298_v26  ;;  %3913 = vmatmul.mubr.msk.f32.vlgmr.msra.gmra.mxu0 %vm766_vm4, %v1298_v26 }
 0xc40   :  { %1307 = vst.msk [vmem:[#allocation3 + $0x20] sm:$0xff] %vm898_vm5, %v1298_v26  ;;  %3927 = vmatpush3.msra.mxu0 %v4672_v41  ;;  %3934 = vmatprep.mubr.msk.f32.mxu0 %vm4293_vm1, %v4292_v5 }
 0xc41   :  { %3928 = vmatprep.subr.mxu0 %v4292_v5 }
 0xc42   :  { %3929 = vmatpush3.msra.mxu0 %v4683_v47 }
 0xc43   :  { %3930 = vmatprep.subr.mxu0 %v4292_v5 }
 0xc44   :  { %3931 = vmatpush3.msra.mxu0 %v4698_v10 }
 0xc45   :  { %3932 = vmatprep.subr.mxu0 %v4292_v5 }
 0xc46   :  { %3933 = vmatpush3.msra.mxu0 %v4714_v11 }
 0xc4d   :  { %v1397_v0 = vpop.permute.xlu1 %1396 }
 0xcff   :  { %v1382_v27 = vpop.f32.mrf.mxu0 }
 0xd00   :  { %v1386_v45 = vadd.f32 %v1382_v27, %v1312_v61 }
 0xd01   :  { %v3914_v31 = vpop.f32.mrf.mxu0 }
 0xd02   :  { %v1387_v32 = vadd.f32 %v4803_v9, %v1386_v45 }
 0xd04   :  { %4180 = vtanh.f32 %v1387_v32  ;;  %v1388_v20 = vsub.f32 0.0, %v1387_v32 }
 0xd06   :  { %v1389_v21 = vmul.f32 1.442695, %v1388_v20 }
 0xd08   :  { %4182 = vpow2.f32 %v1389_v21 }
 0xd11   :  { %v4181_v33 = vpop.eup %4180 }
 0xd12   :  { %1401 = vrot.lane.b32.xlu0 %v4181_v33, %s4294_s8 }
 0xd15   :  { %v4183_v39 = vpop.eup %4182 }
 0xd16   :  { %v1391_v4 = vadd.f32 1.0, %v4183_v39 }
 0xd18   :  { %4184 = vrcp.f32 %v1391_v4 }
 0xd25   :  { %v4185_v40 = vpop.eup %4184 }
 0xd26   :  { %v1399_v58 = vmul.f32 %v4185_v40, %v1397_v0 }
 0xd84   :  { %v1402_v42 = vpop.permute.xlu0 %1401 }
 0xd85   :  { %v1404_v43 = vmul.f32 %v4185_v40, %v1402_v42 }
 0xd87   :  { %1406 = vrot.lane.b32.xlu0 %v1404_v43, %s4295_s6 }
 0xd8b   :  { %1418 = vperm.xlu0 %4115, %v4954_v2  }
 0xdf9   :  { %v1407_v61 = vpop.permute.xlu0 %1406 }
 0xdfa   :  { %v1409_v25 = vadd.f32 %v1407_v61, %v1399_v58 }
 0xdfc   :  { %4186 = vtanh.f32 %v1409_v25 }
 0xe06   :  { %v1419_v1 = vpop.permute.xlu0 %1418 }
 0xe09   :  { %v4187_v48 = vpop.eup %4186 }
 0xe0a   :  { %1412 = vrot.lane.b32.xlu1 %v4187_v48, %s4294_s8 }
 0xe0e   :  { %1423 = vperm.xlu1 %4114, %v4947_v23  }
 0xe12   :  { %1436 = vrot.lane.b32.xlu1 %v1409_v25, %s4297_s25 }
 0xe7c   :  { %v1413_v49 = vpop.permute.xlu1 %1412 }
 0xe7d   :  { %v1415_v53 = vmul.f32 %v4185_v40, %v1413_v49 }
 0xe7f   :  { %1428 = vrot.lane.b32.xlu0 %v1415_v53, %s4295_s6 }
 0xe89   :  { %v1424_v57 = vpop.permute.xlu1 %1423 }
 0xe8a   :  { %v1426_v29 = vsel %vm755_vm3, %v1419_v1, %v1424_v57 }
 0xe8b   :  { %v1432_v36 = vsub.f32 1.0, %v1426_v29 }
 0xe8d   :  { %v1440_v62 = vmul.f32 %v1432_v36, %v1305_v51  ;;  %v1437_v63 = vpop.permute.xlu1 %1436  ;;  %v1433_v35 = vmul.f32 %v1432_v36, %v1298_v26 }
 0xe8e   :  { %v1439_v3 = vmul.f32 %v1437_v63, %v1426_v29 }
 0xe90   :  { %v1441_v6 = vadd.f32 %v1440_v62, %v1439_v3 }
 0xe92   :  { %1532 = vrot.lane.b32.xlu1 %v1441_v6, %s4295_s6 }
 0xef1   :  { %v1429_v7 = vpop.permute.xlu0 %1428 }
 0xef2   :  { %v1431_v44 = vmul.f32 %v1429_v7, %v1426_v29 }
 0xef4   :  { %v1434_v15 = vadd.f32 %v1433_v35, %v1431_v44 }
 0xef6   :  { %1442 = vst.msk [vmem:[#allocation3 + $0x20] sm:$0xff] %vm72_vm0, %v1434_v15  ;;  %3924 = vmatmul.mubr.msk.f32.vlgmr.msra.gmra.mxu1 %vm766_vm4, %v1434_v15 }
 0xef7   :  { %1443 = vst.msk [vmem:[#allocation3 + $0x18] sm:$0xff] %vm898_vm5, %v1434_v15  ;;  %3938 = vmatpush3.msra.mxu1 %v4672_v41  ;;  %3945 = vmatprep.mubr.msk.f32.mxu1 %vm4293_vm1, %v4292_v5 }
 0xef8   :  { %3939 = vmatprep.subr.mxu1 %v4292_v5 }
 0xef9   :  { %3940 = vmatpush3.msra.mxu1 %v4683_v47 }
 0xefa   :  { %3941 = vmatprep.subr.mxu1 %v4292_v5 }
 0xefb   :  { %3942 = vmatpush3.msra.mxu1 %v4698_v10 }
 0xefc   :  { %3943 = vmatprep.subr.mxu1 %v4292_v5 }
 0xefd   :  { %3944 = vmatpush3.msra.mxu1 %v4714_v11 }
 0xefe   :  { %3968 = vmatprep.subr.mxu1 %v4292_v5 }
 0xf04   :  { %v1533_v46 = vpop.permute.xlu1 %1532 }
 0xfb6   :  { %v1518_v19 = vpop.f32.mrf.mxu1 }
 0xfb7   :  { %v1522_v41 = vadd.f32 %v1518_v19, %v1448_v60 }
 0xfb8   :  { %v3925_v38 = vpop.f32.mrf.mxu1 }
 0xfb9   :  { %v1523_v47 = vadd.f32 %v4803_v9, %v1522_v41 }
 0xfbb   :  { %4188 = vtanh.f32 %v1523_v47  ;;  %v1524_v10 = vsub.f32 0.0, %v1523_v47 }
 0xfbd   :  { %v1525_v51 = vmul.f32 1.442695, %v1524_v10 }
 0xfbf   :  { %4190 = vpow2.f32 %v1525_v51 }
 0xfc8   :  { %v4189_v50 = vpop.eup %4188 }
 0xfc9   :  { %1537 = vrot.lane.b32.xlu0 %v4189_v50, %s4294_s8 }
 0xfcc   :  { %v4191_v11 = vpop.eup %4190 }
 0xfcd   :  { %v1527_v24 = vadd.f32 1.0, %v4191_v11 }
 0xfcf   :  { %4192 = vrcp.f32 %v1527_v24 }
 0xfdc   :  { %v4193_v22 = vpop.eup %4192 }
 0xfdd   :  { %v1535_v28 = vmul.f32 %v4193_v22, %v1533_v46 }
0x103b   :  { %v1538_v16 = vpop.permute.xlu0 %1537 }
0x103c   :  { %v1540_v26 = vmul.f32 %v4193_v22, %v1538_v16 }
0x103e   :  { %1542 = vrot.lane.b32.xlu0 %v1540_v26, %s4295_s6 }
0x1042   :  { %1554 = vperm.xlu0 %4115, %v4915_v12  }
0x10b0   :  { %v1543_v60 = vpop.permute.xlu0 %1542 }
0x10b1   :  { %v1545_v27 = vadd.f32 %v1543_v60, %v1535_v28 }
0x10b3   :  { %4194 = vtanh.f32 %v1545_v27 }
0x10bd   :  { %v1555_v33 = vpop.permute.xlu0 %1554 }
0x10c0   :  { %v4195_v45 = vpop.eup %4194 }
0x10c1   :  { %1548 = vrot.lane.b32.xlu1 %v4195_v45, %s4294_s8 }
0x10c5   :  { %1559 = vperm.xlu1 %4114, %v4908_v59  }
0x10c9   :  { %1572 = vrot.lane.b32.xlu1 %v1545_v27, %s4297_s25 }
0x1133   :  { %v1549_v31 = vpop.permute.xlu1 %1548 }
0x1134   :  { %v1551_v32 = vmul.f32 %v4193_v22, %v1549_v31 }
0x1136   :  { %1564 = vrot.lane.b32.xlu0 %v1551_v32, %s4295_s6 }
0x1140   :  { %v1560_v20 = vpop.permute.xlu1 %1559 }
0x1141   :  { %v1562_v21 = vsel %vm755_vm3, %v1555_v33, %v1560_v20 }
0x1142   :  { %v1568_v39 = vsub.f32 1.0, %v1562_v21 }
0x1144   :  { %v1576_v4 = vmul.f32 %v1568_v39, %v1441_v6  ;;  %v1573_v40 = vpop.permute.xlu1 %1572  ;;  %v1569_v61 = vmul.f32 %v1568_v39, %v1434_v15 }
0x1145   :  { %v1575_v42 = vmul.f32 %v1573_v40, %v1562_v21 }
0x1147   :  { %v1577_v43 = vadd.f32 %v1576_v4, %v1575_v42 }
0x1149   :  { %1668 = vrot.lane.b32.xlu1 %v1577_v43, %s4295_s6 }
0x11a8   :  { %v1565_v0 = vpop.permute.xlu0 %1564 }
0x11a9   :  { %v1567_v58 = vmul.f32 %v1565_v0, %v1562_v21  ;;  %v1855_v0 = vld [vmem:[%s5582_s9 + $0x10] sm:$0xff] }
0x11ab   :  { %v1570_v25 = vadd.f32 %v1569_v61, %v1567_v58  ;;  %v1854_v58 = vld [vmem:[%s5582_s9 + $0x8] sm:$0xff]  ;;  %v1853_v61 = vld [vmem:[%s5582_s9] sm:$0xff] }
0x11ad   :  { %1578 = vst.msk [vmem:[#allocation3 + $0x28] sm:$0xff] %vm72_vm0, %v1570_v25  ;;  %3935 = vmatmul.mubr.msk.f32.vlgmr.msra.gmra.mxu0 %vm766_vm4, %v1570_v25 }
0x11ae   :  { %1579 = vst.msk [vmem:[#allocation3 + $0x10] sm:$0xff] %vm898_vm5, %v1570_v25 }
0x11bb   :  { %v1669_v54 = vpop.permute.xlu1 %1668 }
0x126d   :  { %v1654_v48 = vpop.f32.mrf.mxu0 }
0x126e   :  { %v1658_v49 = vadd.f32 %v1654_v48, %v1584_v18 }
0x126f   :  { %v3936_v53 = vpop.f32.mrf.mxu0 }
0x1270   :  { %v1659_v1 = vadd.f32 %v4803_v9, %v1658_v49  ;;  %v5076_v49 = vld [vmem:[%s5583_s10 + $0x18] sm:$0xff]  ;;  %v5082_v53 = vld [vmem:[%s5583_s10 + $0x10] sm:$0xff] }
0x1272   :  { %4196 = vtanh.f32 %v1659_v1  ;;  %v1660_v29 = vsub.f32 0.0, %v1659_v1  ;;  %v5090_v1 = vld [vmem:[%s5583_s10 + $0x8] sm:$0xff] }
0x1274   :  { %v1661_v36 = vmul.f32 1.442695, %v1660_v29 }
0x1276   :  { %4198 = vpow2.f32 %v1661_v36 }
0x127f   :  { %v4197_v57 = vpop.eup %4196 }
0x1280   :  { %1673 = vrot.lane.b32.xlu0 %v4197_v57, %s4294_s8  ;;  %v5096_v57 = vld [vmem:[%s5583_s10] sm:$0xff] }
0x1283   :  { %v4199_v62 = vpop.eup %4198 }
0x1284   :  { %v1663_v63 = vadd.f32 1.0, %v4199_v62 }
0x1286   :  { %4200 = vrcp.f32 %v1663_v63 }
0x1293   :  { %v4201_v3 = vpop.eup %4200 }
0x1294   :  { %v1671_v13 = vmul.f32 %v4201_v3, %v1669_v54 }
0x12f2   :  { %v1674_v6 = vpop.permute.xlu0 %1673 }
0x12f3   :  { %v1676_v7 = vmul.f32 %v4201_v3, %v1674_v6 }
0x12f5   :  { %1678 = vrot.lane.b32.xlu0 %v1676_v7, %s4295_s6 }
0x12f9   :  { %1690 = vperm.xlu0 %4115, %v4876_v52  }
0x1367   :  { %v1679_v18 = vpop.permute.xlu0 %1678 }
0x1368   :  { %v1681_v44 = vadd.f32 %v1679_v18, %v1671_v13 }
0x136a   :  { %4202 = vtanh.f32 %v1681_v44 }
0x1374   :  { %v1691_v41 = vpop.permute.xlu0 %1690 }
0x1377   :  { %v4203_v35 = vpop.eup %4202 }
0x1378   :  { %1684 = vrot.lane.b32.xlu1 %v4203_v35, %s4294_s8  ;;  %v1848_v35 = vld [vmem:[#allocation3 + $0x18] sm:$0xff] }
0x137c   :  { %1695 = vperm.xlu1 %4114, %v4869_v37  }
0x1380   :  { %1708 = vrot.lane.b32.xlu1 %v1681_v44, %s4297_s25  ;;  %v1847_v44 = vld [vmem:[#allocation3 + $0x10] sm:$0xff] }
0x13ea   :  { %v1685_v15 = vpop.permute.xlu1 %1684 }
0x13eb   :  { %v1687_v19 = vmul.f32 %v4201_v3, %v1685_v15  ;;  %v1849_v15 = vld [vmem:[#allocation3 + $0x20] sm:$0xff] }
0x13ed   :  { %1700 = vrot.lane.b32.xlu0 %v1687_v19, %s4295_s6  ;;  %v1850_v19 = vld [vmem:[#allocation3 + $0x28] sm:$0xff] }
0x13f7   :  { %v1696_v38 = vpop.permute.xlu1 %1695 }
0x13f8   :  { %v1698_v47 = vsel %vm755_vm3, %v1691_v41, %v1696_v38 }
0x13f9   :  { %v1704_v50 = vsub.f32 1.0, %v1698_v47 }
0x13fb   :  { %v1712_v10 = vmul.f32 %v1704_v50, %v1577_v43  ;;  %v1709_v51 = vpop.permute.xlu1 %1708  ;;  %v1705_v26 = vmul.f32 %v1704_v50, %v1570_v25  ;;  %v1856_v43 = vld [vmem:[%s5582_s9 + $0x18] sm:$0xff] }
0x13fc   :  { %v1711_v11 = vmul.f32 %v1709_v51, %v1698_v47  ;;  %3948 = vmatprep.subr.mxu0 %v1856_v43 }
0x13fd   :  { %3949 = vmatpush3.msra.mxu0 %v1856_v43 }
0x13fe   :  { %v1713_v24 = vadd.f32 %v1712_v10, %v1711_v11  ;;  %3950 = vmatprep.subr.mxu0 %v1855_v0 }
0x13ff   :  { %3951 = vmatpush3.msra.mxu0 %v1855_v0 }
0x1400   :  { %1804 = vrot.lane.b32.xlu1 %v1713_v24, %s4295_s6  ;;  %3952 = vmatprep.subr.mxu0 %v1854_v58 }
0x1401   :  { %3953 = vmatpush3.msra.mxu0 %v1854_v58 }
0x1402   :  { %3954 = vmatprep.subr.mxu0 %v1853_v61 }
0x1403   :  { %3955 = vmatpush3.msra.mxu0 %v1853_v61 }
0x1404   :  { %3990 = vmatprep.subr.mxu0 %v4292_v5 }
0x145f   :  { %v1701_v22 = vpop.permute.xlu0 %1700 }
0x1460   :  { %v1703_v16 = vmul.f32 %v1701_v22, %v1698_v47 }
0x1462   :  { %v5038_v46 = vadd.f32 %v1705_v26, %v1703_v16 }
0x1464   :  { %1714 = vst.msk [vmem:[#allocation3 + $0x30] sm:$0xff] %vm72_vm0, %v5038_v46  ;;  %3946 = vmatmul.mubr.msk.f32.vlgmr.msra.gmra.mxu1 %vm766_vm4, %v5038_v46 }
0x1465   :  { %1715 = vst.msk [vmem:[#allocation3 + $0x8] sm:$0xff] %vm898_vm5, %v5038_v46  ;;  %3976 = vmatprep.mubr.msk.f32.mxu1 %vm4293_vm1, %v4292_v5  ;;  %3969 = vmatpush3.msra.mxu1 %v5076_v49 }
0x1466   :  { %3970 = vmatprep.subr.mxu1 %v4292_v5 }
0x1467   :  { %3971 = vmatpush3.msra.mxu1 %v5082_v53 }
0x1468   :  { %3972 = vmatprep.subr.mxu1 %v4292_v5 }
0x1469   :  { %3973 = vmatpush3.msra.mxu1 %v5090_v1 }
0x146a   :  { %3974 = vmatprep.subr.mxu1 %v4292_v5 }
0x146b   :  { %3975 = vmatpush3.msra.mxu1 %v5096_v57  ;;  %v1851_v41 = vld [vmem:[#allocation3 + $0x30] sm:$0xff] }
0x146c   :  { %3977 = vmatmul.mubr.f32.vlgmr.msra.gmra.mxu1 %v4292_v5  ;;  %3979 = vmatprep.subr.mxu1 %v4292_v5  ;;  %v1846_v18 = vld [vmem:[#allocation3 + $0x8] sm:$0xff] }
0x146d   :  { %3980 = vmatpush3.msra.mxu1 %v5076_v49  ;;  %3987 = vmatprep.mubr.msk.f32.mxu1 %vm4293_vm1, %v4292_v5 }
0x146e   :  { %3981 = vmatprep.subr.mxu1 %v4292_v5 }
0x146f   :  { %3982 = vmatpush3.msra.mxu1 %v5082_v53 }
0x1470   :  { %3983 = vmatprep.subr.mxu1 %v4292_v5 }
0x1471   :  { %3984 = vmatpush3.msra.mxu1 %v5090_v1 }
0x1472   :  { %v1805_v17 = vpop.permute.xlu1 %1804  ;;  %3985 = vmatprep.subr.mxu1 %v4292_v5 }
0x1473   :  { %3986 = vmatpush3.msra.mxu1 %v5096_v57 }
0x1474   :  { %4001 = vmatprep.subr.mxu1 %v4292_v5 }
0x1524   :  { %v1790_v28 = vpop.f32.mrf.mxu1 }
0x1525   :  { %v1794_v60 = vadd.f32 %v1790_v28, %v1720_v14 }
0x1526   :  { %v3947_v27 = vpop.f32.mrf.mxu1 }
0x1527   :  { %v1795_v45 = vadd.f32 %v4803_v9, %v1794_v60 }
0x1529   :  { %4204 = vtanh.f32 %v1795_v45  ;;  %v1796_v32 = vsub.f32 0.0, %v1795_v45  ;;  %v5168_v45 = vld [vmem:[%s5584_s11] ss:$0 sm:$0xff] }
0x152b   :  { %v1797_v33 = vmul.f32 1.442695, %v1796_v32 }
0x152c   :  { %v2070_v47 = vpop.f32.mrf.mxu1 }
0x152d   :  { %4206 = vpow2.f32 %v1797_v33 }
0x152e   :  { %v3978_v50 = vpop.f32.mrf.mxu1 }
0x1536   :  { %v4205_v31 = vpop.eup %4204 }
0x1537   :  { %1809 = vrot.lane.b32.xlu0 %v4205_v31, %s4294_s8 }
0x153a   :  { %v4207_v20 = vpop.eup %4206 }
0x153b   :  { %v1799_v21 = vadd.f32 1.0, %v4207_v20 }
0x153d   :  { %4208 = vrcp.f32 %v1799_v21 }
0x154a   :  { %v4209_v39 = vpop.eup %4208 }
0x154b   :  { %v1807_v8 = vmul.f32 %v4209_v39, %v1805_v17 }
0x15a9   :  { %v1810_v4 = vpop.permute.xlu0 %1809 }
0x15aa   :  { %v1812_v40 = vmul.f32 %v4209_v39, %v1810_v4 }
0x15ac   :  { %1814 = vrot.lane.b32.xlu0 %v1812_v40, %s4295_s6 }
0x15b0   :  { %1826 = vperm.xlu0 %4115, %v4829_v30  }
0x161e   :  { %v1815_v9 = vpop.permute.xlu0 %1814 }
0x161f   :  { %v1817_v14 = vadd.f32 %v1815_v9, %v1807_v8 }
0x1621   :  { %4210 = vtanh.f32 %v1817_v14 }
0x162b   :  { %v1827_v36 = vpop.permute.xlu0 %1826 }
0x162e   :  { %v4211_v42 = vpop.eup %4210 }
0x162f   :  { %1820 = vrot.lane.b32.xlu1 %v4211_v42, %s4294_s8 }
0x1633   :  { %1831 = vperm.xlu1 %4114, %v4836_v34  }
0x16a1   :  { %v1821_v25 = vpop.permute.xlu1 %1820 }
0x16a2   :  { %v1823_v48 = vmul.f32 %v4209_v39, %v1821_v25 }
0x16a4   :  { %1836 = vrot.lane.b32.xlu0 %v1823_v48, %s4295_s6 }
0x16ae   :  { %v1832_v29 = vpop.permute.xlu1 %1831 }
0x16af   :  { %v1834_v62 = vsel %vm755_vm3, %v1827_v36, %v1832_v29 }
0x16b0   :  { %v1840_v63 = vsub.f32 1.0, %v1834_v62 }
0x16b2   :  { %v1841_v7 = vmul.f32 %v1840_v63, %v5038_v46 }
0x1716   :  { %v1837_v3 = vpop.permute.xlu0 %1836 }
0x1717   :  { %v1839_v6 = vmul.f32 %v1837_v3, %v1834_v62 }
0x1719   :  { %v1842_v54 = vadd.f32 %v1841_v7, %v1839_v6 }
0x171b   :  { %1843 = vst.msk [vmem:[#allocation3 + $0x38] sm:$0xff] %vm72_vm0, %v1842_v54 }
0x171c   :  { %1844 = vst.msk [vmem:[#allocation3] sm:$0xff] %vm898_vm5, %v1842_v54 }
0x1722   :  { %v1852_v38 = vld [vmem:[#allocation3 + $0x38] sm:$0xff] }
0x1723   :  { %v1845_v13 = vld [vmem:[#allocation3] sm:$0xff] }
0x1724   :  { %3956 = vmatprep.mubr.msk.f32.mxu0 %vm766_vm4, %v1845_v13 }
0x1725   :  { %3957 = vmatmul.mubr.msk.f32.vlgmr.msra.gmra.mxu0 %vm766_vm4, %v1846_v18 }
0x1726   :  { %3959 = vmatprep.mubr.msk.f32.mxu0 %vm766_vm4, %v1847_v44  ;;  %3991 = vmatpush3.msra.mxu0 %v5076_v49 }
0x1727   :  { %3992 = vmatprep.subr.mxu0 %v4292_v5 }
0x1728   :  { %3993 = vmatpush3.msra.mxu0 %v5082_v53 }
0x1729   :  { %3960 = vmatmul.mubr.msk.f32.gmra.mxu0 %vm766_vm4, %v1848_v35  ;;  %3994 = vmatprep.subr.mxu0 %v4292_v5 }
0x172a   :  { %3962 = vmatprep.mubr.msk.f32.mxu0 %vm766_vm4, %v1849_v15  ;;  %3995 = vmatpush3.msra.mxu0 %v5090_v1 }
0x172b   :  { %3996 = vmatprep.subr.mxu0 %v4292_v5 }
0x172c   :  { %3997 = vmatpush3.msra.mxu0 %v5096_v57 }
0x172d   :  { %3963 = vmatmul.mubr.msk.f32.gmra.mxu0 %vm766_vm4, %v1850_v19  ;;  %4012 = vmatprep.subr.mxu0 %v4292_v5 }
0x172e   :  { %3965 = vmatprep.mubr.msk.f32.mxu0 %vm766_vm4, %v1851_v41 }
0x1731   :  { %3966 = vmatmul.mubr.msk.f32.gmra.mxu0 %vm766_vm4, %v1852_v38 }
0x1732   :  { %3998 = vmatprep.mubr.msk.f32.mxu0 %vm4293_vm1, %v4292_v5 }
0x17e5   :  { %v5135_v10 = vpop.f32.mrf.mxu0 }
0x17e7   :  { %v5137_v51 = vpop.f32.mrf.mxu0 }
0x17e9   :  { %v5139_v11 = vpop.f32.mrf.mxu0 }
0x17eb   :  { %v5141_v24 = vpop.f32.mrf.mxu0 }
0x17ed   :  { %v5143_v22 = vpop.f32.mrf.mxu0 }
0x17ee   :  { %v2273_v16 = vsel %vm4772_vm2, %v5141_v24, %v5143_v22  ;;  %v2681_v26 = vsel %vm4772_vm2, %v5143_v22, %v5141_v24  ;;  %v5338_v24 = vld [vmem:[%s5581_s3 + $0x28] sm:$0xff] }
0x17ef   :  { %v5153_v46 = vpop.f32.mrf.mxu0 }
0x17f0   :  { %v2409_v28 = vsel %vm4772_vm2, %v5139_v11, %v5153_v46  ;;  %v2545_v60 = vsel %vm4772_vm2, %v5153_v46, %v5139_v11  ;;  %v5300_v11 = vld [vmem:[%s5581_s3 + $0x20] sm:$0xff] }
0x17f1   :  { %v5163_v27 = vpop.f32.mrf.mxu0 }
0x17f2   :  { %v2003_v31 = vsel %vm4772_vm2, %v5137_v51, %v5163_v27  ;;  %v2953_v32 = vsel %vm4772_vm2, %v5163_v27, %v5137_v51  ;;  %v5395_v51 = vld [vmem:[%s5581_s3 + $0x38] sm:$0xff] }
0x17f3   :  { %v2074_v33 = vadd.f32 %v2070_v47, %v2003_v31  ;;  %v5202_v13 = vpop.f32.mrf.mxu0 }
0x17f4   :  { %v2137_v18 = vsel %vm4772_vm2, %v5135_v10, %v5202_v13 }
0x17f5   :  { %v2081_v20 = vadd.f32 %v5168_v45, %v2074_v33 }
0x17f7   :  { %4212 = vtanh.f32 %v2081_v20  ;;  %v2082_v39 = vsub.f32 0.0, %v2081_v20 }
0x17f9   :  { %v2083_v4 = vmul.f32 1.442695, %v2082_v39 }
0x17fb   :  { %4214 = vpow2.f32 %v2083_v4 }
0x1804   :  { %v4213_v21 = vpop.eup %4212 }
0x1805   :  { %2091 = vrot.lane.b32.xlu1 %v4213_v21, %s4294_s8 }
0x1808   :  { %v4215_v40 = vpop.eup %4214 }
0x1809   :  { %v2085_v17 = vadd.f32 1.0, %v4215_v40 }
0x180b   :  { %4216 = vrcp.f32 %v2085_v17 }
0x1818   :  { %v4217_v8 = vpop.eup %4216 }
0x1819   :  { %v2089_v42 = vmul.f32 0.0, %v4217_v8 }
0x1877   :  { %v2092_v9 = vpop.permute.xlu1 %2091 }
0x1878   :  { %v2094_v14 = vmul.f32 %v4217_v8, %v2092_v9 }
0x187a   :  { %2096 = vrot.lane.b32.xlu0 %v2094_v14, %s4295_s6 }
0x187e   :  { %2108 = vperm.xlu0 %4115, %v4836_v34  }
0x18ec   :  { %v2097_v43 = vpop.permute.xlu0 %2096 }
0x18ed   :  { %v2099_v0 = vadd.f32 %v2097_v43, %v2089_v42 }
0x18ef   :  { %4218 = vtanh.f32 %v2099_v0 }
0x18f9   :  { %v2109_v48 = vpop.permute.xlu0 %2108 }
0x18fc   :  { %v4219_v58 = vpop.eup %4218 }
0x18fd   :  { %2102 = vrot.lane.b32.xlu1 %v4219_v58, %s4294_s8 }
0x1901   :  { %2113 = vperm.xlu1 %4114, %v4829_v30  }
0x1905   :  { %2126 = vrot.lane.b32.xlu1 %v2099_v0, %s4297_s25 }
0x196f   :  { %v2103_v61 = vpop.permute.xlu1 %2102 }
0x1970   :  { %v2105_v25 = vmul.f32 %v4217_v8, %v2103_v61 }
0x1972   :  { %2118 = vrot.lane.b32.xlu0 %v2105_v25, %s4295_s6 }
0x197c   :  { %v2114_v29 = vpop.permute.xlu1 %2113 }
0x197d   :  { %v2116_v34 = vsel %vm755_vm3, %v2109_v48, %v2114_v29 }
0x197e   :  { %v2122_v36 = vsub.f32 1.0, %v2116_v34 }
0x1980   :  { %v2123_v62 = vmul.f32 0.0, %v2122_v36  ;;  %v2127_v63 = vpop.permute.xlu1 %2126 }
0x1981   :  { %v2129_v3 = vmul.f32 %v2127_v63, %v2116_v34 }
0x1983   :  { %v2130_v6 = vadd.f32 %v2129_v3, %v2123_v62 }
0x1985   :  { %2221 = vrot.lane.b32.xlu1 %v2130_v6, %s4295_s6 }
0x19e4   :  { %v2119_v7 = vpop.permute.xlu0 %2118 }
0x19e5   :  { %v2121_v30 = vmul.f32 %v2119_v7, %v2116_v34 }
0x19e7   :  { %v2124_v54 = vadd.f32 %v2123_v62, %v2121_v30 }
0x19e9   :  { %2131 = vst.msk [vmem:[#allocation3] sm:$0xff] %vm72_vm0, %v2124_v54  ;;  %3988 = vmatmul.mubr.msk.f32.vlgmr.msra.gmra.mxu1 %vm766_vm4, %v2124_v54 }
0x19ea   :  { %2132 = vst.msk [vmem:[#allocation3 + $0x38] sm:$0xff] %vm898_vm5, %v2124_v54  ;;  %4002 = vmatpush3.msra.mxu1 %v5076_v49  ;;  %4009 = vmatprep.mubr.msk.f32.mxu1 %vm4293_vm1, %v4292_v5 }
0x19eb   :  { %4003 = vmatprep.subr.mxu1 %v4292_v5 }
0x19ec   :  { %4004 = vmatpush3.msra.mxu1 %v5082_v53 }
0x19ed   :  { %4005 = vmatprep.subr.mxu1 %v4292_v5 }
0x19ee   :  { %4006 = vmatpush3.msra.mxu1 %v5090_v1 }
0x19ef   :  { %4007 = vmatprep.subr.mxu1 %v4292_v5 }
0x19f0   :  { %4008 = vmatpush3.msra.mxu1 %v5096_v57 }
0x19f1   :  { %4023 = vmatprep.subr.mxu1 %v4292_v5 }
0x19f7   :  { %v2222_v39 = vpop.permute.xlu1 %2221 }
0x1aa9   :  { %v2207_v44 = vpop.f32.mrf.mxu1 }
0x1aaa   :  { %v2211_v35 = vadd.f32 %v2207_v44, %v2137_v18 }
0x1aab   :  { %v3989_v15 = vpop.f32.mrf.mxu1 }
0x1aac   :  { %v2212_v19 = vadd.f32 %v5168_v45, %v2211_v35 }
0x1aae   :  { %4220 = vtanh.f32 %v2212_v19  ;;  %v2213_v38 = vsub.f32 0.0, %v2212_v19 }
0x1ab0   :  { %v2214_v47 = vmul.f32 1.442695, %v2213_v38 }
0x1ab2   :  { %4222 = vpow2.f32 %v2214_v47 }
0x1abb   :  { %v4221_v41 = vpop.eup %4220 }
0x1abc   :  { %2226 = vrot.lane.b32.xlu0 %v4221_v41, %s4294_s8 }
0x1abf   :  { %v4223_v50 = vpop.eup %4222 }
0x1ac0   :  { %v2216_v31 = vadd.f32 1.0, %v4223_v50 }
0x1ac2   :  { %4224 = vrcp.f32 %v2216_v31 }
0x1acf   :  { %v4225_v33 = vpop.eup %4224 }
0x1ad0   :  { %v2224_v4 = vmul.f32 %v4225_v33, %v2222_v39 }
0x1b2e   :  { %v2227_v20 = vpop.permute.xlu0 %2226 }
0x1b2f   :  { %v2229_v21 = vmul.f32 %v4225_v33, %v2227_v20 }
0x1b31   :  { %2231 = vrot.lane.b32.xlu0 %v2229_v21, %s4295_s6 }
0x1b35   :  { %2243 = vperm.xlu0 %4115, %v4869_v37  }
0x1ba3   :  { %v2232_v40 = vpop.permute.xlu0 %2231 }
0x1ba4   :  { %v2234_v17 = vadd.f32 %v2232_v40, %v2224_v4 }
0x1ba6   :  { %4226 = vtanh.f32 %v2234_v17 }
0x1bb0   :  { %v2244_v42 = vpop.permute.xlu0 %2243 }
0x1bb3   :  { %v4227_v8 = vpop.eup %4226 }
0x1bb4   :  { %2237 = vrot.lane.b32.xlu1 %v4227_v8, %s4294_s8 }
0x1bb8   :  { %2248 = vperm.xlu1 %4114, %v4876_v52  }
0x1bbc   :  { %2261 = vrot.lane.b32.xlu1 %v2234_v17, %s4297_s25 }
0x1c26   :  { %v2238_v9 = vpop.permute.xlu1 %2237 }
0x1c27   :  { %v2240_v14 = vmul.f32 %v4225_v33, %v2238_v9 }
0x1c29   :  { %2253 = vrot.lane.b32.xlu0 %v2240_v14, %s4295_s6 }
0x1c33   :  { %v2249_v43 = vpop.permute.xlu1 %2248 }
0x1c34   :  { %v2251_v37 = vsel %vm755_vm3, %v2244_v42, %v2249_v43 }
0x1c35   :  { %v2257_v0 = vsub.f32 1.0, %v2251_v37 }
0x1c37   :  { %v2265_v58 = vmul.f32 %v2257_v0, %v2130_v6  ;;  %v2262_v61 = vpop.permute.xlu1 %2261  ;;  %v2258_v34 = vmul.f32 %v2257_v0, %v2124_v54 }
0x1c38   :  { %v2264_v25 = vmul.f32 %v2262_v61, %v2251_v37 }
0x1c3a   :  { %v2266_v48 = vadd.f32 %v2265_v58, %v2264_v25 }
0x1c3c   :  { %2357 = vrot.lane.b32.xlu1 %v2266_v48, %s4295_s6 }
0x1c9b   :  { %v2254_v29 = vpop.permute.xlu0 %2253 }
0x1c9c   :  { %v2256_v52 = vmul.f32 %v2254_v29, %v2251_v37 }
0x1c9e   :  { %v2259_v36 = vadd.f32 %v2258_v34, %v2256_v52 }
0x1ca0   :  { %2267 = vst.msk [vmem:[#allocation3 + $0x8] sm:$0xff] %vm72_vm0, %v2259_v36  ;;  %3999 = vmatmul.mubr.msk.f32.vlgmr.msra.gmra.mxu0 %vm766_vm4, %v2259_v36 }
0x1ca1   :  { %2268 = vst.msk [vmem:[#allocation3 + $0x30] sm:$0xff] %vm898_vm5, %v2259_v36  ;;  %4013 = vmatpush3.msra.mxu0 %v5076_v49  ;;  %4020 = vmatprep.mubr.msk.f32.mxu0 %vm4293_vm1, %v4292_v5 }
0x1ca2   :  { %4014 = vmatprep.subr.mxu0 %v4292_v5 }
0x1ca3   :  { %4015 = vmatpush3.msra.mxu0 %v5082_v53 }
0x1ca4   :  { %4016 = vmatprep.subr.mxu0 %v4292_v5 }
0x1ca5   :  { %4017 = vmatpush3.msra.mxu0 %v5090_v1 }
0x1ca6   :  { %4018 = vmatprep.subr.mxu0 %v4292_v5 }
0x1ca7   :  { %4019 = vmatpush3.msra.mxu0 %v5096_v57 }
0x1ca8   :  { %4034 = vmatprep.subr.mxu0 %v4292_v5 }
0x1d60   :  { %v2343_v62 = vpop.f32.mrf.mxu0 }
0x1d61   :  { %v2347_v63 = vadd.f32 %v2343_v62, %v2273_v16  ;;  %v2358_v16 = vpop.permute.xlu1 %2357 }
0x1d62   :  { %v4000_v3 = vpop.f32.mrf.mxu0 }
0x1d63   :  { %v2348_v6 = vadd.f32 %v5168_v45, %v2347_v63 }
0x1d65   :  { %4228 = vtanh.f32 %v2348_v6  ;;  %v2349_v30 = vsub.f32 0.0, %v2348_v6 }
0x1d67   :  { %v2350_v54 = vmul.f32 1.442695, %v2349_v30 }
0x1d69   :  { %4230 = vpow2.f32 %v2350_v54 }
0x1d72   :  { %v4229_v7 = vpop.eup %4228 }
0x1d73   :  { %2362 = vrot.lane.b32.xlu0 %v4229_v7, %s4294_s8 }
0x1d76   :  { %v4231_v18 = vpop.eup %4230 }
0x1d77   :  { %v2352_v44 = vadd.f32 1.0, %v4231_v18 }
0x1d79   :  { %4232 = vrcp.f32 %v2352_v44 }
0x1d86   :  { %v4233_v35 = vpop.eup %4232 }
0x1d87   :  { %v2360_v41 = vmul.f32 %v4233_v35, %v2358_v16 }
0x1de5   :  { %v2363_v15 = vpop.permute.xlu0 %2362 }
0x1de6   :  { %v2365_v19 = vmul.f32 %v4233_v35, %v2363_v15 }
0x1de8   :  { %2367 = vrot.lane.b32.xlu0 %v2365_v19, %s4295_s6 }
0x1dec   :  { %2379 = vperm.xlu0 %4115, %v4908_v59  }
0x1e5a   :  { %v2368_v38 = vpop.permute.xlu0 %2367 }
0x1e5b   :  { %v2370_v47 = vadd.f32 %v2368_v38, %v2360_v41 }
0x1e5d   :  { %4234 = vtanh.f32 %v2370_v47 }
0x1e67   :  { %v2380_v20 = vpop.permute.xlu0 %2379 }
0x1e6a   :  { %v4235_v50 = vpop.eup %4234 }
0x1e6b   :  { %2373 = vrot.lane.b32.xlu1 %v4235_v50, %s4294_s8 }
0x1e6f   :  { %2384 = vperm.xlu1 %4114, %v4915_v12  }
0x1e73   :  { %2397 = vrot.lane.b32.xlu1 %v2370_v47, %s4297_s25 }
0x1edd   :  { %v2374_v31 = vpop.permute.xlu1 %2373 }
0x1ede   :  { %v2376_v33 = vmul.f32 %v4233_v35, %v2374_v31 }
0x1ee0   :  { %2389 = vrot.lane.b32.xlu0 %v2376_v33, %s4295_s6 }
0x1eea   :  { %v2385_v21 = vpop.permute.xlu1 %2384 }
0x1eeb   :  { %v2387_v59 = vsel %vm755_vm3, %v2380_v20, %v2385_v21 }
0x1eec   :  { %v2393_v39 = vsub.f32 1.0, %v2387_v59 }
0x1eee   :  { %v2401_v4 = vmul.f32 %v2393_v39, %v2266_v48  ;;  %v2398_v40 = vpop.permute.xlu1 %2397  ;;  %v2394_v14 = vmul.f32 %v2393_v39, %v2259_v36 }
0x1eef   :  { %v2400_v17 = vmul.f32 %v2398_v40, %v2387_v59 }
0x1ef1   :  { %v2402_v8 = vadd.f32 %v2401_v4, %v2400_v17 }
0x1ef3   :  { %2493 = vrot.lane.b32.xlu1 %v2402_v8, %s4295_s6 }
0x1f52   :  { %v2390_v9 = vpop.permute.xlu0 %2389 }
0x1f53   :  { %v2392_v12 = vmul.f32 %v2390_v9, %v2387_v59 }
0x1f55   :  { %v2395_v42 = vadd.f32 %v2394_v14, %v2392_v12 }
0x1f57   :  { %2403 = vst.msk [vmem:[#allocation3 + $0x10] sm:$0xff] %vm72_vm0, %v2395_v42  ;;  %4010 = vmatmul.mubr.msk.f32.vlgmr.msra.gmra.mxu1 %vm766_vm4, %v2395_v42 }
0x1f58   :  { %2404 = vst.msk [vmem:[#allocation3 + $0x28] sm:$0xff] %vm898_vm5, %v2395_v42  ;;  %4024 = vmatpush3.msra.mxu1 %v5076_v49  ;;  %4031 = vmatprep.mubr.msk.f32.mxu1 %vm4293_vm1, %v4292_v5 }
0x1f59   :  { %4025 = vmatprep.subr.mxu1 %v4292_v5 }
0x1f5a   :  { %4026 = vmatpush3.msra.mxu1 %v5082_v53 }
0x1f5b   :  { %4027 = vmatprep.subr.mxu1 %v4292_v5 }
0x1f5c   :  { %4028 = vmatpush3.msra.mxu1 %v5090_v1 }
0x1f5d   :  { %4029 = vmatprep.subr.mxu1 %v4292_v5 }
0x1f5e   :  { %4030 = vmatpush3.msra.mxu1 %v5096_v57 }
0x1f5f   :  { %4045 = vmatprep.subr.mxu1 %v4292_v5 }
0x2017   :  { %v2479_v43 = vpop.f32.mrf.mxu1 }
0x2018   :  { %v2483_v37 = vadd.f32 %v2479_v43, %v2409_v28  ;;  %v2494_v28 = vpop.permute.xlu1 %2493 }
0x2019   :  { %v4011_v0 = vpop.f32.mrf.mxu1 }
0x201a   :  { %v2484_v58 = vadd.f32 %v5168_v45, %v2483_v37  ;;  %v5307_v37 = vld [vmem:[%s5581_s3 + $0x18] sm:$0xff] }
0x201c   :  { %4236 = vtanh.f32 %v2484_v58  ;;  %v2485_v25 = vsub.f32 0.0, %v2484_v58 }
0x201e   :  { %v2486_v48 = vmul.f32 1.442695, %v2485_v25 }
0x2020   :  { %4238 = vpow2.f32 %v2486_v48 }
0x2029   :  { %v4237_v61 = vpop.eup %4236 }
0x202a   :  { %2498 = vrot.lane.b32.xlu0 %v4237_v61, %s4294_s8 }
0x202d   :  { %v4239_v29 = vpop.eup %4238 }
0x202e   :  { %v2488_v52 = vadd.f32 1.0, %v4239_v29 }
0x2030   :  { %4240 = vrcp.f32 %v2488_v52 }
0x203d   :  { %v4241_v34 = vpop.eup %4240 }
0x203e   :  { %v2496_v63 = vmul.f32 %v4241_v34, %v2494_v28 }
0x209c   :  { %v2499_v36 = vpop.permute.xlu0 %2498 }
0x209d   :  { %v2501_v62 = vmul.f32 %v4241_v34, %v2499_v36 }
0x209f   :  { %2503 = vrot.lane.b32.xlu0 %v2501_v62, %s4295_s6 }
0x20a3   :  { %2515 = vperm.xlu0 %4115, %v4947_v23  }
0x2111   :  { %v2504_v3 = vpop.permute.xlu0 %2503 }
0x2112   :  { %v2506_v6 = vadd.f32 %v2504_v3, %v2496_v63 }
0x2114   :  { %4242 = vtanh.f32 %v2506_v6 }
0x211e   :  { %v2516_v18 = vpop.permute.xlu0 %2515 }
0x2121   :  { %v4243_v7 = vpop.eup %4242 }
0x2122   :  { %2509 = vrot.lane.b32.xlu1 %v4243_v7, %s4294_s8 }
0x2126   :  { %2520 = vperm.xlu1 %4114, %v4954_v2  }
0x212a   :  { %2533 = vrot.lane.b32.xlu1 %v2506_v6, %s4297_s25 }
0x2194   :  { %v2510_v30 = vpop.permute.xlu1 %2509 }
0x2195   :  { %v2512_v54 = vmul.f32 %v4241_v34, %v2510_v30 }
0x2197   :  { %2525 = vrot.lane.b32.xlu0 %v2512_v54, %s4295_s6 }
0x21a1   :  { %v2521_v44 = vpop.permute.xlu1 %2520 }
0x21a2   :  { %v2523_v23 = vsel %vm755_vm3, %v2516_v18, %v2521_v44 }
0x21a3   :  { %v2529_v35 = vsub.f32 1.0, %v2523_v23 }
0x21a5   :  { %v2537_v15 = vmul.f32 %v2529_v35, %v2402_v8  ;;  %v2534_v19 = vpop.permute.xlu1 %2533  ;;  %v2530_v47 = vmul.f32 %v2529_v35, %v2395_v42 }
0x21a6   :  { %v2536_v16 = vmul.f32 %v2534_v19, %v2523_v23 }
0x21a8   :  { %v2538_v41 = vadd.f32 %v2537_v15, %v2536_v16 }
0x21aa   :  { %2629 = vrot.lane.b32.xlu1 %v2538_v41, %s4295_s6 }
0x2209   :  { %v2526_v38 = vpop.permute.xlu0 %2525 }
0x220a   :  { %v2528_v2 = vmul.f32 %v2526_v38, %v2523_v23 }
0x220c   :  { %v2531_v50 = vadd.f32 %v2530_v47, %v2528_v2 }
0x220e   :  { %2539 = vst.msk [vmem:[#allocation3 + $0x18] sm:$0xff] %vm72_vm0, %v2531_v50  ;;  %4021 = vmatmul.mubr.msk.f32.vlgmr.msra.gmra.mxu0 %vm766_vm4, %v2531_v50 }
0x220f   :  { %2540 = vst.msk [vmem:[#allocation3 + $0x20] sm:$0xff] %vm898_vm5, %v2531_v50  ;;  %4035 = vmatpush3.msra.mxu0 %v5076_v49  ;;  %4042 = vmatprep.mubr.msk.f32.mxu0 %vm4293_vm1, %v4292_v5 }
0x2210   :  { %4036 = vmatprep.subr.mxu0 %v4292_v5 }
0x2211   :  { %4037 = vmatpush3.msra.mxu0 %v5082_v53 }
0x2212   :  { %4038 = vmatprep.subr.mxu0 %v4292_v5 }
0x2213   :  { %4039 = vmatpush3.msra.mxu0 %v5090_v1 }
0x2214   :  { %4040 = vmatprep.subr.mxu0 %v4292_v5 }
0x2215   :  { %4041 = vmatpush3.msra.mxu0 %v5096_v57 }
0x221c   :  { %v2630_v46 = vpop.permute.xlu1 %2629 }
0x22ce   :  { %v2615_v31 = vpop.f32.mrf.mxu0 }
0x22cf   :  { %v2619_v33 = vadd.f32 %v2615_v31, %v2545_v60 }
0x22d0   :  { %v4022_v20 = vpop.f32.mrf.mxu0 }
0x22d1   :  { %v2620_v21 = vadd.f32 %v5168_v45, %v2619_v33 }
0x22d3   :  { %4244 = vtanh.f32 %v2620_v21  ;;  %v2621_v39 = vsub.f32 0.0, %v2620_v21 }
0x22d5   :  { %v2622_v4 = vmul.f32 1.442695, %v2621_v39 }
0x22d7   :  { %4246 = vpow2.f32 %v2622_v4 }
0x22e0   :  { %v4245_v59 = vpop.eup %4244 }
0x22e1   :  { %2634 = vrot.lane.b32.xlu0 %v4245_v59, %s4294_s8 }
0x22e4   :  { %v4247_v40 = vpop.eup %4246 }
0x22e5   :  { %v2624_v17 = vadd.f32 1.0, %v4247_v40 }
0x22e7   :  { %4248 = vrcp.f32 %v2624_v17 }
0x22f4   :  { %v4249_v8 = vpop.eup %4248 }
0x22f5   :  { %v2632_v60 = vmul.f32 %v4249_v8, %v2630_v46 }
0x2353   :  { %v2635_v9 = vpop.permute.xlu0 %2634 }
0x2354   :  { %v2637_v12 = vmul.f32 %v4249_v8, %v2635_v9  ;;  %v2817_v9 = vsel %vm4772_vm2, %v5202_v13, %v5135_v10  ;;  %v5366_v10 = vld [vmem:[%s5581_s3 + $0x30] sm:$0xff] }
0x2356   :  { %2639 = vrot.lane.b32.xlu0 %v2637_v12, %s4295_s6 }
0x235a   :  { %2651 = vperm.xlu0 %4115, %v5300_v11  }
0x23c8   :  { %v2640_v14 = vpop.permute.xlu0 %2639 }
0x23c9   :  { %v2642_v42 = vadd.f32 %v2640_v14, %v2632_v60 }
0x23cb   :  { %4250 = vtanh.f32 %v2642_v42 }
0x23d5   :  { %v2652_v61 = vpop.permute.xlu0 %2651 }
0x23d8   :  { %v4251_v43 = vpop.eup %4250 }
0x23d9   :  { %2645 = vrot.lane.b32.xlu1 %v4251_v43, %s4294_s8 }
0x23dd   :  { %2656 = vperm.xlu1 %4114, %v5307_v37  }
0x23e1   :  { %2669 = vrot.lane.b32.xlu1 %v2642_v42, %s4297_s25 }
0x244b   :  { %v2646_v0 = vpop.permute.xlu1 %2645 }
0x244c   :  { %v2648_v58 = vmul.f32 %v4249_v8, %v2646_v0 }
0x244e   :  { %2661 = vrot.lane.b32.xlu0 %v2648_v58, %s4295_s6 }
0x2458   :  { %v2657_v25 = vpop.permute.xlu1 %2656 }
0x2459   :  { %v2659_v48 = vsel %vm755_vm3, %v2652_v61, %v2657_v25 }
0x245a   :  { %v2665_v29 = vsub.f32 1.0, %v2659_v48 }
0x245c   :  { %v2673_v52 = vmul.f32 %v2665_v29, %v2538_v41  ;;  %v2670_v34 = vpop.permute.xlu1 %2669  ;;  %v2666_v3 = vmul.f32 %v2665_v29, %v2531_v50  ;;  %v5345_v41 = vld [vmem:[%s5581_s3 + $0x10] sm:$0xff] }
0x245d   :  { %v2672_v36 = vmul.f32 %v2670_v34, %v2659_v48 }
0x245f   :  { %v2674_v62 = vadd.f32 %v2673_v52, %v2672_v36 }
0x2461   :  { %2765 = vrot.lane.b32.xlu1 %v2674_v62, %s4295_s6 }
0x24c0   :  { %v2662_v28 = vpop.permute.xlu0 %2661 }
0x24c1   :  { %v2664_v63 = vmul.f32 %v2662_v28, %v2659_v48  ;;  %v5373_v28 = vld [vmem:[%s5581_s3 + $0x8] sm:$0xff] }
0x24c3   :  { %v2667_v6 = vadd.f32 %v2666_v3, %v2664_v63 }
0x24c5   :  { %2675 = vst.msk [vmem:[#allocation3 + $0x20] sm:$0xff] %vm72_vm0, %v2667_v6  ;;  %4032 = vmatmul.mubr.msk.f32.vlgmr.msra.gmra.mxu1 %vm766_vm4, %v2667_v6 }
0x24c6   :  { %2676 = vst.msk [vmem:[#allocation3 + $0x18] sm:$0xff] %vm898_vm5, %v2667_v6  ;;  %4046 = vmatpush3.msra.mxu1 %v5076_v49  ;;  %4053 = vmatprep.mubr.msk.f32.mxu1 %vm4293_vm1, %v4292_v5 }
0x24c7   :  { %4047 = vmatprep.subr.mxu1 %v4292_v5 }
0x24c8   :  { %4048 = vmatpush3.msra.mxu1 %v5082_v53 }
0x24c9   :  { %4049 = vmatprep.subr.mxu1 %v4292_v5 }
0x24ca   :  { %4050 = vmatpush3.msra.mxu1 %v5090_v1 }
0x24cb   :  { %4051 = vmatprep.subr.mxu1 %v4292_v5 }
0x24cc   :  { %4052 = vmatpush3.msra.mxu1 %v5096_v57 }
0x24d3   :  { %v2766_v22 = vpop.permute.xlu1 %2765 }
0x2585   :  { %v2751_v7 = vpop.f32.mrf.mxu1 }
0x2586   :  { %v2755_v49 = vadd.f32 %v2751_v7, %v2681_v26 }
0x2587   :  { %v4033_v30 = vpop.f32.mrf.mxu1 }
0x2588   :  { %v2756_v54 = vadd.f32 %v5168_v45, %v2755_v49 }
0x258a   :  { %4252 = vtanh.f32 %v2756_v54  ;;  %v2757_v18 = vsub.f32 0.0, %v2756_v54 }
0x258c   :  { %v2758_v1 = vmul.f32 1.442695, %v2757_v18 }
0x258e   :  { %4254 = vpow2.f32 %v2758_v1 }
0x2597   :  { %v4253_v53 = vpop.eup %4252 }
0x2598   :  { %2770 = vrot.lane.b32.xlu0 %v4253_v53, %s4294_s8 }
0x259b   :  { %v4255_v5 = vpop.eup %4254 }
0x259c   :  { %v2760_v44 = vadd.f32 1.0, %v4255_v5 }
0x259e   :  { %4256 = vrcp.f32 %v2760_v44 }
0x25ab   :  { %v4257_v57 = vpop.eup %4256 }
0x25ac   :  { %v2768_v26 = vmul.f32 %v4257_v57, %v2766_v22 }
0x260a   :  { %v2771_v23 = vpop.permute.xlu0 %2770 }
0x260b   :  { %v2773_v35 = vmul.f32 %v4257_v57, %v2771_v23 }
0x260d   :  { %2775 = vrot.lane.b32.xlu0 %v2773_v35, %s4295_s6 }
0x2611   :  { %2787 = vperm.xlu0 %4115, %v5338_v24  }
0x267f   :  { %v2776_v15 = vpop.permute.xlu0 %2775 }
0x2680   :  { %v2778_v19 = vadd.f32 %v2776_v15, %v2768_v26 }
0x2682   :  { %4258 = vtanh.f32 %v2778_v19 }
0x268c   :  { %v2788_v47 = vpop.permute.xlu0 %2787 }
0x268f   :  { %v4259_v16 = vpop.eup %4258 }
0x2690   :  { %2781 = vrot.lane.b32.xlu1 %v4259_v16, %s4294_s8 }
0x2694   :  { %2792 = vperm.xlu1 %4114, %v5345_v41  }
0x2698   :  { %2805 = vrot.lane.b32.xlu1 %v2778_v19, %s4297_s25 }
0x2702   :  { %v2782_v38 = vpop.permute.xlu1 %2781 }
0x2703   :  { %v2784_v2 = vmul.f32 %v4257_v57, %v2782_v38 }
0x2705   :  { %2797 = vrot.lane.b32.xlu0 %v2784_v2, %s4295_s6 }
0x270f   :  { %v2793_v50 = vpop.permute.xlu1 %2792 }
0x2710   :  { %v2795_v31 = vsel %vm755_vm3, %v2788_v47, %v2793_v50 }
0x2711   :  { %v2801_v33 = vsub.f32 1.0, %v2795_v31 }
0x2713   :  { %v2809_v20 = vmul.f32 %v2801_v33, %v2674_v62  ;;  %v2806_v21 = vpop.permute.xlu1 %2805  ;;  %v2802_v17 = vmul.f32 %v2801_v33, %v2667_v6 }
0x2714   :  { %v2808_v59 = vmul.f32 %v2806_v21, %v2795_v31  ;;  %v5402_v21 = vld [vmem:[%s5581_s3] sm:$0xff] }
0x2716   :  { %v2810_v39 = vadd.f32 %v2809_v20, %v2808_v59 }
0x2718   :  { %2901 = vrot.lane.b32.xlu1 %v2810_v39, %s4295_s6 }
0x2777   :  { %v2798_v4 = vpop.permute.xlu0 %2797 }
0x2778   :  { %v2800_v40 = vmul.f32 %v2798_v4, %v2795_v31 }
0x277a   :  { %v2803_v8 = vadd.f32 %v2802_v17, %v2800_v40 }
0x277c   :  { %2811 = vst.msk [vmem:[#allocation3 + $0x28] sm:$0xff] %vm72_vm0, %v2803_v8  ;;  %4043 = vmatmul.mubr.msk.f32.vlgmr.msra.gmra.mxu0 %vm766_vm4, %v2803_v8 }
0x277d   :  { %2812 = vst.msk [vmem:[#allocation3 + $0x10] sm:$0xff] %vm898_vm5, %v2803_v8 }
0x2784   :  { %v3080_v17 = vld [vmem:[#allocation3 + $0x10] sm:$0xff] }
0x278a   :  { %v2902_v13 = vpop.permute.xlu1 %2901 }
0x283c   :  { %v2887_v12 = vpop.f32.mrf.mxu0 }
0x283d   :  { %v2891_v46 = vadd.f32 %v2887_v12, %v2817_v9  ;;  %v3081_v9 = vld [vmem:[#allocation3 + $0x18] sm:$0xff] }
0x283e   :  { %v4044_v60 = vpop.f32.mrf.mxu0  ;;  %v3097_v12 = vsel %vm766_vm4, %v3081_v9, 0.0 }
0x283f   :  { %v2892_v14 = vadd.f32 %v5168_v45, %v2891_v46  ;;  %v3083_v46 = vld [vmem:[#allocation3 + $0x28] sm:$0xff] }
0x2840   :  { %v3103_v60 = vsel %vm766_vm4, %v3083_v46, 0.0 }
0x2841   :  { %4260 = vtanh.f32 %v2892_v14  ;;  %v2893_v43 = vsub.f32 0.0, %v2892_v14 }
0x2843   :  { %v2894_v0 = vmul.f32 1.442695, %v2893_v43 }
0x2845   :  { %4262 = vpow2.f32 %v2894_v0 }
0x284e   :  { %v4261_v42 = vpop.eup %4260 }
0x284f   :  { %2906 = vrot.lane.b32.xlu0 %v4261_v42, %s4294_s8 }
0x2852   :  { %v4263_v58 = vpop.eup %4262 }
0x2853   :  { %v2896_v61 = vadd.f32 1.0, %v4263_v58 }
0x2855   :  { %4264 = vrcp.f32 %v2896_v61 }
0x2862   :  { %v4265_v25 = vpop.eup %4264 }
0x2863   :  { %v2904_v52 = vmul.f32 %v4265_v25, %v2902_v13 }
0x28c1   :  { %v2907_v48 = vpop.permute.xlu0 %2906 }
0x28c2   :  { %v2909_v29 = vmul.f32 %v4265_v25, %v2907_v48 }
0x28c4   :  { %2911 = vrot.lane.b32.xlu0 %v2909_v29, %s4295_s6 }
0x28c8   :  { %2923 = vperm.xlu0 %4115, %v5366_v10  }
0x2936   :  { %v2912_v34 = vpop.permute.xlu0 %2911 }
0x2937   :  { %v2914_v36 = vadd.f32 %v2912_v34, %v2904_v52 }
0x2939   :  { %4266 = vtanh.f32 %v2914_v36 }
0x2943   :  { %v2924_v6 = vpop.permute.xlu0 %2923 }
0x2946   :  { %v4267_v62 = vpop.eup %4266 }
0x2947   :  { %2917 = vrot.lane.b32.xlu1 %v4267_v62, %s4294_s8 }
0x294b   :  { %2928 = vperm.xlu1 %4114, %v5373_v28  }
0x294f   :  { %2941 = vrot.lane.b32.xlu1 %v2914_v36, %s4297_s25  ;;  %v3082_v36 = vld [vmem:[#allocation3 + $0x20] sm:$0xff] }
0x2950   :  { %v3100_v55 = vsel %vm766_vm4, %v3082_v36, 0.0 }
0x29b9   :  { %v2918_v63 = vpop.permute.xlu1 %2917 }
0x29ba   :  { %v2920_v3 = vmul.f32 %v4265_v25, %v2918_v63 }
0x29bc   :  { %2933 = vrot.lane.b32.xlu0 %v2920_v3, %s4295_s6 }
0x29c6   :  { %v2929_v7 = vpop.permute.xlu1 %2928 }
0x29c7   :  { %v2931_v49 = vsel %vm755_vm3, %v2924_v6, %v2929_v7 }
0x29c8   :  { %v2937_v30 = vsub.f32 1.0, %v2931_v49 }
0x29ca   :  { %v2945_v54 = vmul.f32 %v2937_v30, %v2810_v39  ;;  %v2942_v53 = vpop.permute.xlu1 %2941  ;;  %v2938_v57 = vmul.f32 %v2937_v30, %v2803_v8  ;;  %v3094_v8 = vsel %vm766_vm4, %v3080_v17, 0.0 }
0x29cb   :  { %v2944_v18 = vmul.f32 %v2942_v53, %v2931_v49 }
0x29cd   :  { %v2946_v1 = vadd.f32 %v2945_v54, %v2944_v18 }
0x29cf   :  { %3037 = vrot.lane.b32.xlu1 %v2946_v1, %s4295_s6 }
0x2a2e   :  { %v2934_v5 = vpop.permute.xlu0 %2933 }
0x2a2f   :  { %v2936_v44 = vmul.f32 %v2934_v5, %v2931_v49 }
0x2a31   :  { %v2939_v23 = vadd.f32 %v2938_v57, %v2936_v44 }
0x2a33   :  { %2947 = vst.msk [vmem:[#allocation3 + $0x30] sm:$0xff] %vm72_vm0, %v2939_v23  ;;  %4054 = vmatmul.mubr.msk.f32.vlgmr.msra.gmra.mxu1 %vm766_vm4, %v2939_v23 }
0x2a34   :  { %2948 = vst.msk [vmem:[#allocation3 + $0x8] sm:$0xff] %vm898_vm5, %v2939_v23 }
0x2a3a   :  { %v3084_v62 = vld [vmem:[#allocation3 + $0x30] sm:$0xff] }
0x2a3b   :  { %v3079_v4 = vld [vmem:[#allocation3 + $0x8] sm:$0xff]  ;;  %v3106_v63 = vsel %vm766_vm4, %v3084_v62, 0.0 }
0x2a3c   :  { %v3091_v40 = vsel %vm766_vm4, %v3079_v4, 0.0 }
0x2a41   :  { %v3038_v27 = vpop.permute.xlu1 %3037 }
0x2af3   :  { %v3023_v35 = vpop.f32.mrf.mxu1 }
0x2af4   :  { %v3027_v22 = vadd.f32 %v3023_v35, %v2953_v32 }
0x2af5   :  { %v4055_v26 = vpop.f32.mrf.mxu1 }
0x2af6   :  { %v3028_v15 = vadd.f32 %v5168_v45, %v3027_v22 }
0x2af8   :  { %4268 = vtanh.f32 %v3028_v15  ;;  %v3029_v16 = vsub.f32 0.0, %v3028_v15 }
0x2afa   :  { %v3030_v38 = vmul.f32 1.442695, %v3029_v16 }
0x2afc   :  { %4270 = vpow2.f32 %v3030_v38 }
0x2b05   :  { %v4269_v19 = vpop.eup %4268 }
0x2b06   :  { %3042 = vrot.lane.b32.xlu0 %v4269_v19, %s4294_s8 }
0x2b09   :  { %v4271_v2 = vpop.eup %4270 }
0x2b0a   :  { %v3032_v47 = vadd.f32 1.0, %v4271_v2 }
0x2b0c   :  { %4272 = vrcp.f32 %v3032_v47 }
0x2b19   :  { %v4273_v50 = vpop.eup %4272 }
0x2b1a   :  { %v3040_v45 = vmul.f32 %v4273_v50, %v3038_v27 }
0x2b78   :  { %v3043_v31 = vpop.permute.xlu0 %3042 }
0x2b79   :  { %v3045_v56 = vmul.f32 %v4273_v50, %v3043_v31 }
0x2b7b   :  { %3047 = vrot.lane.b32.xlu0 %v3045_v56, %s4295_s6 }
0x2b7f   :  { %3059 = vperm.xlu0 %4115, %v5395_v51  }
0x2bed   :  { %v3048_v32 = vpop.permute.xlu0 %3047 }
0x2bee   :  { %v3050_v33 = vadd.f32 %v3048_v32, %v3040_v45 }
0x2bf0   :  { %4274 = vtanh.f32 %v3050_v33 }
0x2bfa   :  { %v3060_v42 = vpop.permute.xlu0 %3059 }
0x2bfd   :  { %v4275_v20 = vpop.eup %4274 }
0x2bfe   :  { %3053 = vrot.lane.b32.xlu1 %v4275_v20, %s4294_s8 }
0x2c02   :  { %3064 = vperm.xlu1 %4114, %v5402_v21  }
0x2c70   :  { %v3054_v59 = vpop.permute.xlu1 %3053 }
0x2c71   :  { %v3056_v39 = vmul.f32 %v4273_v50, %v3054_v59 }
0x2c73   :  { %3069 = vrot.lane.b32.xlu0 %v3056_v39, %s4295_s6 }
0x2c7d   :  { %v3065_v14 = vpop.permute.xlu1 %3064 }
0x2c7e   :  { %v3067_v43 = vsel %vm755_vm3, %v3060_v42, %v3065_v14  ;;  %v3224_v14 = vld [vmem:[%s5585_s14 + $0x18] sm:$0xff]  ;;  %v3223_v42 = vld [vmem:[%s5585_s14 + $0x10] sm:$0xff] }
0x2c7f   :  { %v3073_v0 = vsub.f32 1.0, %v3067_v43  ;;  %4056 = vmatprep.subr.mxu0 %v3224_v14 }
0x2c80   :  { %4057 = vmatpush3.msra.mxu0 %v3224_v14 }
0x2c81   :  { %v3074_v25 = vmul.f32 %v3073_v0, %v2939_v23  ;;  %4058 = vmatprep.subr.mxu0 %v3223_v42 }
0x2c82   :  { %4059 = vmatpush3.msra.mxu0 %v3223_v42 }
0x2c92   :  { %3092 = vadd.xlane.f32.xlu0 %v3091_v40 }
0x2c96   :  { %3095 = vadd.xlane.f32.xlu0 %v3094_v8 }
0x2c9a   :  { %3098 = vadd.xlane.f32.xlu0 %v3097_v12 }
0x2c9e   :  { %3104 = vadd.xlane.f32.xlu0 %v3103_v60 }
0x2ce5   :  { %v3070_v58 = vpop.permute.xlu0 %3069 }
0x2ce6   :  { %v3072_v61 = vmul.f32 %v3070_v58, %v3067_v43  ;;  %v3222_v43 = vld [vmem:[%s5585_s14 + $0x8] sm:$0xff] }
0x2ce7   :  { %4060 = vmatprep.subr.mxu0 %v3222_v43 }
0x2ce8   :  { %v3075_v48 = vadd.f32 %v3074_v25, %v3072_v61  ;;  %4061 = vmatpush3.msra.mxu0 %v3222_v43 }
0x2cea   :  { %3076 = vst.msk [vmem:[#allocation3 + $0x38] sm:$0xff] %vm72_vm0, %v3075_v48 }
0x2ceb   :  { %3077 = vst.msk [vmem:[#allocation3] sm:$0xff] %vm898_vm5, %v3075_v48 }
0x2cf1   :  { %v3085_v13 = vld [vmem:[#allocation3 + $0x38] sm:$0xff] }
0x2cf2   :  { %v3078_v29 = vld [vmem:[#allocation3] sm:$0xff]  ;;  %v3109_v34 = vsel %vm766_vm4, %v3085_v13, 0.0 }
0x2cf3   :  { %v3088_v52 = vsel %vm766_vm4, %v3078_v29, 0.0  ;;  %3110 = vadd.xlane.f32.xlu0 %v3109_v34 }
0x2cf4   :  { %3089 = vadd.xlane.f32.xlu1 %v3088_v52 }
0x2cf8   :  { %3101 = vadd.xlane.f32.xlu1 %v3100_v55 }
0x2cfc   :  { %3107 = vadd.xlane.f32.xlu1 %v3106_v63 }
0x2d1b   :  { %v3093_v3 = vpop.xlane.xlu0 %3092 }
0x2d1c   :  { %v3114_v6 = vmul.f32 0.03125, %v3093_v3 }
0x2d1e   :  { %v5418_v7 = vsub.f32 %v3079_v4, %v3114_v6 }
0x2d1f   :  { %v3096_v49 = vpop.xlane.xlu0 %3095 }
0x2d20   :  { %v3130_v30 = vmul.f32 %v5418_v7, %v5418_v7  ;;  %v3115_v15 = vmul.f32 0.03125, %v3096_v49 }
0x2d22   :  { %v3140_v54 = vsel %vm766_vm4, %v3130_v30, 0.0  ;;  %v5433_v47 = vsub.f32 %v3080_v17, %v3115_v15 }
0x2d23   :  { %v3099_v53 = vpop.xlane.xlu0 %3098  ;;  %3141 = vadd.xlane.f32.xlu0 %v3140_v54 }
0x2d24   :  { %v3116_v18 = vmul.f32 0.03125, %v3099_v53  ;;  %v3131_v39 = vmul.f32 %v5433_v47, %v5433_v47 }
0x2d26   :  { %v5423_v1 = vsub.f32 %v3081_v9, %v3116_v18  ;;  %v3143_v8 = vsel %vm766_vm4, %v3131_v39, 0.0 }
0x2d27   :  { %v3105_v5 = vpop.xlane.xlu0 %3104 }
0x2d28   :  { %v3118_v44 = vmul.f32 0.03125, %v3105_v5  ;;  %v3132_v57 = vmul.f32 %v5423_v1, %v5423_v1 }
0x2d2a   :  { %v5427_v23 = vsub.f32 %v3083_v46, %v3118_v44  ;;  %v3146_v35 = vsel %vm766_vm4, %v3132_v57, 0.0 }
0x2d2b   :  { %3147 = vadd.xlane.f32.xlu0 %v3146_v35 }
0x2d2c   :  { %v3134_v22 = vmul.f32 %v5427_v23, %v5427_v23 }
0x2d2e   :  { %v3152_v26 = vsel %vm766_vm4, %v3134_v22, 0.0  ;;  %v3642_v22 = vld [vmem:[%s5587_s12] ss:$0 sm:$0xff] }
0x2d2f   :  { %3153 = vadd.xlane.f32.xlu0 %v3152_v26 }
0x2d7c   :  { %v3111_v16 = vpop.xlane.xlu0 %3110 }
0x2d7d   :  { %v3090_v19 = vpop.xlane.xlu1 %3089  ;;  %v3120_v2 = vmul.f32 0.03125, %v3111_v16 }
0x2d7e   :  { %v3113_v38 = vmul.f32 0.03125, %v3090_v19 }
0x2d7f   :  { %v5437_v31 = vsub.f32 %v3085_v13, %v3120_v2  ;;  %v3643_v2 = vld [vmem:[%s5588_s13] ss:$0 sm:$0xff] }
0x2d80   :  { %v5435_v50 = vsub.f32 %v3078_v29, %v3113_v38 }
0x2d81   :  { %v3102_v56 = vpop.xlane.xlu1 %3101  ;;  %v3136_v32 = vmul.f32 %v5437_v31, %v5437_v31 }
0x2d82   :  { %v3117_v27 = vmul.f32 0.03125, %v3102_v56  ;;  %v3129_v45 = vmul.f32 %v5435_v50, %v5435_v50 }
0x2d83   :  { %v3158_v59 = vsel %vm766_vm4, %v3136_v32, 0.0 }
0x2d84   :  { %v5443_v33 = vsub.f32 %v3082_v36, %v3117_v27  ;;  %v3137_v20 = vsel %vm766_vm4, %v3129_v45, 0.0  ;;  %3159 = vadd.xlane.f32.xlu0 %v3158_v59 }
0x2d85   :  { %3138 = vadd.xlane.f32.xlu1 %v3137_v20  ;;  %v3108_v4 = vpop.xlane.xlu1 %3107 }
0x2d86   :  { %v3119_v40 = vmul.f32 0.03125, %v3108_v4  ;;  %v3133_v9 = vmul.f32 %v5443_v33, %v5443_v33 }
0x2d88   :  { %v5449_v17 = vsub.f32 %v3084_v62, %v3119_v40  ;;  %v3149_v12 = vsel %vm766_vm4, %v3133_v9, 0.0 }
0x2d89   :  { %3144 = vadd.xlane.f32.xlu1 %v3143_v8 }
0x2d8a   :  { %v3135_v46 = vmul.f32 %v5449_v17, %v5449_v17 }
0x2d8c   :  { %v3155_v60 = vsel %vm766_vm4, %v3135_v46, 0.0 }
0x2d8d   :  { %3150 = vadd.xlane.f32.xlu1 %v3149_v12 }
0x2d91   :  { %3156 = vadd.xlane.f32.xlu1 %v3155_v60 }
0x2d9a   :  { %3528 = vperm.xlu0 %4115, %v5373_v28   ;;  %v3376_v28 = vld [vmem:[%s5586_s16 + $0x38] sm:$0xff] }
0x2d9b   :  { %4076 = vmatprep.subr.mxu1 %v3376_v28 }
0x2d9c   :  { %4077 = vmatpush3.msra.mxu1 %v3376_v28  ;;  %v3370_v28 = vld [vmem:[%s5586_s16 + $0x8] sm:$0xff] }
0x2d9e   :  { %3564 = vperm.xlu0 %4115, %v5338_v24   ;;  %v3221_v24 = vld [vmem:[%s5585_s14] sm:$0xff] }
0x2d9f   :  { %4062 = vmatprep.subr.mxu0 %v3221_v24 }
0x2da0   :  { %4063 = vmatpush3.msra.mxu0 %v3221_v24 }
0x2da2   :  { %3518 = vperm.xlu1 %4114, %v5402_v21   ;;  %3582 = vperm.xlu0 %4115, %v5395_v51   ;;  %v3375_v51 = vld [vmem:[%s5586_s16 + $0x30] sm:$0xff] }
0x2da3   :  { %4078 = vmatprep.subr.mxu1 %v3375_v51 }
0x2da4   :  { %4079 = vmatpush3.msra.mxu1 %v3375_v51  ;;  %v3369_v51 = vld [vmem:[%s5586_s16] sm:$0xff] }
0x2da6   :  { %3537 = vperm.xlu1 %4114, %v5345_v41   ;;  %v3374_v41 = vld [vmem:[%s5586_s16 + $0x28] sm:$0xff] }
0x2da7   :  { %4080 = vmatprep.subr.mxu1 %v3374_v41 }
0x2da8   :  { %4081 = vmatpush3.msra.mxu1 %v3374_v41  ;;  %v3644_v41 = vld [vmem:[%s5589_s15] ss:$0 sm:$0xff] }
0x2daa   :  { %3546 = vperm.xlu1 %4114, %v5307_v37  }
0x2dac   :  { %v3142_v37 = vpop.xlane.xlu0 %3141 }
0x2dad   :  { %v3162_v21 = vmul.f32 0.03125, %v3142_v37 }
0x2dae   :  { %3555 = vperm.xlu1 %4114, %v5300_v11   ;;  %v3373_v11 = vld [vmem:[%s5586_s16 + $0x20] sm:$0xff] }
0x2daf   :  { %4082 = vmatprep.subr.mxu1 %v3373_v11  ;;  %v3170_v0 = vadd.f32 1e-05, %v3162_v21 }
0x2db0   :  { %4083 = vmatpush3.msra.mxu1 %v3373_v11 }
0x2db1   :  { %4276 = vrsqrt.f32 %v3170_v0 }
0x2db2   :  { %3573 = vperm.xlu1 %4114, %v5366_v10  }
0x2db4   :  { %v3148_v10 = vpop.xlane.xlu0 %3147 }
0x2db5   :  { %v3164_v58 = vmul.f32 0.03125, %v3148_v10 }
0x2db7   :  { %v3172_v25 = vadd.f32 1e-05, %v3164_v58 }
0x2db8   :  { %v3154_v61 = vpop.xlane.xlu0 %3153 }
0x2db9   :  { %v3166_v48 = vmul.f32 0.03125, %v3154_v61  ;;  %4278 = vrsqrt.f32 %v3172_v25 }
0x2dbb   :  { %v3174_v36 = vadd.f32 1e-05, %v3166_v48 }
0x2dbe   :  { %v4277_v18 = vpop.eup %4276 }
0x2dbf   :  { %v3186_v57 = vmul.f32 %v4277_v18, %v5418_v7 }
0x2dc1   :  { %v3200_v19 = vmul.f32 %v3642_v22, %v3186_v57  ;;  %v3653_v57 = vld [vmem:[%s5590_s17] ss:$0 sm:$0xff] }
0x2dc3   :  { %v3214_v32 = vadd.f32 %v3643_v2, %v3200_v19 }
0x2dc6   :  { %v4279_v35 = vpop.eup %4278 }
0x2dc7   :  { %v3188_v16 = vmul.f32 %v4279_v35, %v5423_v1 }
0x2dc9   :  { %v3202_v20 = vmul.f32 %v3642_v22, %v3188_v16 }
0x2dcb   :  { %v3216_v8 = vadd.f32 %v3643_v2, %v3202_v20 }
0x2e0d   :  { %v3160_v52 = vpop.xlane.xlu0 %3159 }
0x2e0e   :  { %v3139_v29 = vpop.xlane.xlu1 %3138  ;;  %v3168_v55 = vmul.f32 0.03125, %v3160_v52 }
0x2e0f   :  { %v3161_v13 = vmul.f32 0.03125, %v3139_v29 }
0x2e10   :  { %v3176_v6 = vadd.f32 1e-05, %v3168_v55 }
0x2e11   :  { %v3169_v34 = vadd.f32 1e-05, %v3161_v13 }
0x2e12   :  { %v3145_v62 = vpop.xlane.xlu1 %3144 }
0x2e13   :  { %4280 = vrsqrt.f32 %v3169_v34  ;;  %v3163_v63 = vmul.f32 0.03125, %v3145_v62 }
0x2e14   :  { %4282 = vrsqrt.f32 %v3174_v36 }
0x2e15   :  { %v3171_v3 = vadd.f32 1e-05, %v3163_v63 }
0x2e16   :  { %v3151_v49 = vpop.xlane.xlu1 %3150 }
0x2e17   :  { %4284 = vrsqrt.f32 %v3171_v3  ;;  %v3165_v30 = vmul.f32 0.03125, %v3151_v49 }
0x2e18   :  { %4286 = vrsqrt.f32 %v3176_v6 }
0x2e19   :  { %v3173_v54 = vadd.f32 1e-05, %v3165_v30 }
0x2e1a   :  { %v3157_v53 = vpop.xlane.xlu1 %3156 }
0x2e1b   :  { %4288 = vrsqrt.f32 %v3173_v54  ;;  %v3167_v5 = vmul.f32 0.03125, %v3157_v53 }
0x2e1d   :  { %v3175_v44 = vadd.f32 1e-05, %v3167_v5 }
0x2e1e   :  { %v3519_v5 = vpop.permute.xlu1 %3518 }
0x2e1f   :  { %4290 = vrsqrt.f32 %v3175_v44 }
0x2e20   :  { %v4281_v26 = vpop.eup %4280 }
0x2e21   :  { %v3185_v15 = vmul.f32 %v4281_v26, %v5435_v50  ;;  %v4283_v38 = vpop.eup %4282  ;;  %v3529_v26 = vpop.permute.xlu0 %3528 }
0x2e22   :  { %v3190_v59 = vmul.f32 %v4283_v38, %v5427_v23  ;;  %v3538_v44 = vpop.permute.xlu1 %3537 }
0x2e23   :  { %v3199_v56 = vmul.f32 %v3642_v22, %v3185_v15  ;;  %v3514_v15 = vld [vmem:[%s5591_s18] sm:$0xff] }
0x2e24   :  { %v4285_v27 = vpop.eup %4284  ;;  %v3204_v9 = vmul.f32 %v3642_v22, %v3190_v59 }
0x2e25   :  { %v3213_v7 = vadd.f32 %v3643_v2, %v3199_v56  ;;  %v3187_v45 = vmul.f32 %v4285_v27, %v5433_v47  ;;  %v4287_v39 = vpop.eup %4286 }
0x2e26   :  { %v3192_v12 = vmul.f32 %v4287_v39, %v5437_v31  ;;  %v3218_v14 = vadd.f32 %v3643_v2, %v3204_v9  ;;  %v3372_v31 = vld [vmem:[%s5586_s16 + $0x18] sm:$0xff] }
0x2e27   :  { %4064 = vmatprep.mubr.msk.f32.mxu0 %vm766_vm4, %v3213_v7  ;;  %v3201_v50 = vmul.f32 %v3642_v22, %v3187_v45  ;;  %4084 = vmatprep.subr.mxu1 %v3372_v31 }
0x2e28   :  { %v4289_v4 = vpop.eup %4288  ;;  %4065 = vmatmul.mubr.msk.f32.vlgmr.msra.gmra.mxu0 %vm766_vm4, %v3214_v32  ;;  %v3206_v42 = vmul.f32 %v3642_v22, %v3192_v12  ;;  %4085 = vmatpush3.msra.mxu1 %v3372_v31 }
0x2e29   :  { %v3215_v1 = vadd.f32 %v3643_v2, %v3201_v50  ;;  %v3189_v40 = vmul.f32 %v4289_v4, %v5443_v33  ;;  %v3565_v50 = vpop.permute.xlu0 %3564 }
0x2e2a   :  { %v3220_v24 = vadd.f32 %v3643_v2, %v3206_v42 }
0x2e2b   :  { %4067 = vmatprep.mubr.msk.f32.mxu0 %vm766_vm4, %v3215_v1  ;;  %v3203_v47 = vmul.f32 %v3642_v22, %v3189_v40 }
0x2e2c   :  { %v4291_v46 = vpop.eup %4290  ;;  %4068 = vmatmul.mubr.msk.f32.gmra.mxu0 %vm766_vm4, %v3216_v8 }
0x2e2d   :  { %v3217_v23 = vadd.f32 %v3643_v2, %v3203_v47  ;;  %v3191_v60 = vmul.f32 %v4291_v46, %v5449_v17  ;;  %v3371_v17 = vld [vmem:[%s5586_s16 + $0x10] sm:$0xff] }
0x2e2e   :  { %4086 = vmatprep.subr.mxu1 %v3371_v17 }
0x2e2f   :  { %4070 = vmatprep.mubr.msk.f32.mxu0 %vm766_vm4, %v3217_v23  ;;  %v3205_v43 = vmul.f32 %v3642_v22, %v3191_v60  ;;  %4087 = vmatpush3.msra.mxu1 %v3371_v17 }
0x2e30   :  { %4071 = vmatmul.mubr.msk.f32.gmra.mxu0 %vm766_vm4, %v3218_v14  ;;  %4088 = vmatprep.subr.mxu1 %v3370_v28 }
0x2e31   :  { %v3219_v33 = vadd.f32 %v3643_v2, %v3205_v43  ;;  %4089 = vmatpush3.msra.mxu1 %v3370_v28  ;;  %v3547_v2 = vpop.permute.xlu1 %3546 }
0x2e32   :  { %4090 = vmatprep.subr.mxu1 %v3369_v51 }
0x2e33   :  { %4073 = vmatprep.mubr.msk.f32.mxu0 %vm766_vm4, %v3219_v33  ;;  %4091 = vmatpush3.msra.mxu1 %v3369_v51  ;;  %v3583_v33 = vpop.permute.xlu0 %3582 }
0x2e34   :  { %4074 = vmatmul.mubr.msk.f32.gmra.mxu0 %vm766_vm4, %v3220_v24 }
0x2e35   :  { %v3556_v9 = vpop.permute.xlu1 %3555 }
0x2e39   :  { %v3574_v51 = vpop.permute.xlu1 %3573 }
0x2ee8   :  { %v4066_v11 = vpop.f32.mrf.mxu0 }
0x2ee9   :  { %v3328_v37 = vadd.f32 %v4066_v11, %v3644_v41 }
0x2eea   :  { %v3322_v10 = vpop.f32.mrf.mxu0 }
0x2eeb   :  { %v3323_v21 = vadd.f32 %v3644_v41, %v3322_v10  ;;  %v3362_v61 = vmax.f32 %v3328_v37, 0.0 }
0x2eec   :  { %v4069_v0 = vpop.f32.mrf.mxu0 }
0x2eed   :  { %v3361_v58 = vmax.f32 %v3323_v21, 0.0  ;;  %v3338_v25 = vadd.f32 %v4069_v0, %v3644_v41 }
0x2eee   :  { %v3332_v48 = vpop.f32.mrf.mxu0 }
0x2eef   :  { %v3333_v29 = vadd.f32 %v3644_v41, %v3332_v48  ;;  %4092 = vmatprep.mubr.msk.f32.mxu1 %vm3384_vm6, %v3361_v58  ;;  %v3364_v34 = vmax.f32 %v3338_v25, 0.0 }
0x2ef0   :  { %v4072_v13 = vpop.f32.mrf.mxu0  ;;  %4093 = vmatmul.mubr.msk.f32.vlgmr.msra.gmra.mxu1 %vm3384_vm6, %v3362_v61 }
0x2ef1   :  { %v3363_v52 = vmax.f32 %v3333_v29, 0.0  ;;  %v3348_v36 = vadd.f32 %v4072_v13, %v3644_v41 }
0x2ef2   :  { %v3342_v55 = vpop.f32.mrf.mxu0 }
0x2ef3   :  { %v3343_v62 = vadd.f32 %v3644_v41, %v3342_v55  ;;  %4095 = vmatprep.mubr.msk.f32.mxu1 %vm3384_vm6, %v3363_v52  ;;  %v3366_v6 = vmax.f32 %v3348_v36, 0.0 }
0x2ef4   :  { %v4075_v63 = vpop.f32.mrf.mxu0  ;;  %4096 = vmatmul.mubr.msk.f32.gmra.mxu1 %vm3384_vm6, %v3364_v34 }
0x2ef5   :  { %v3365_v3 = vmax.f32 %v3343_v62, 0.0  ;;  %v3358_v49 = vadd.f32 %v4075_v63, %v3644_v41 }
0x2ef6   :  { %v3352_v30 = vpop.f32.mrf.mxu0 }
0x2ef7   :  { %v3353_v54 = vadd.f32 %v3644_v41, %v3352_v30  ;;  %4098 = vmatprep.mubr.msk.f32.mxu1 %vm3384_vm6, %v3365_v3  ;;  %v3368_v18 = vmax.f32 %v3358_v49, 0.0 }
0x2ef8   :  { %4099 = vmatmul.mubr.msk.f32.gmra.mxu1 %vm3384_vm6, %v3366_v6 }
0x2ef9   :  { %v3367_v53 = vmax.f32 %v3353_v54, 0.0 }
0x2efb   :  { %4101 = vmatprep.mubr.msk.f32.mxu1 %vm3384_vm6, %v3367_v53 }
0x2efc   :  { %4102 = vmatmul.mubr.msk.f32.gmra.mxu1 %vm3384_vm6, %v3368_v18 }
0x2fb0   :  { %v4094_v35 = vpop.f32.mrf.mxu1 }
0x2fb1   :  { %v3481_v22 = vadd.f32 %v4094_v35, %v3653_v57 }
0x2fb2   :  { %v3475_v19 = vpop.f32.mrf.mxu1 }
0x2fb3   :  { %v3531_v16 = vmul.f32 %v3529_v26, %v3481_v22  ;;  %v3476_v38 = vadd.f32 %v3653_v57, %v3475_v19 }
0x2fb4   :  { %v4097_v56 = vpop.f32.mrf.mxu1 }
0x2fb5   :  { %v3532_v27 = vadd.f32 %v3531_v16, %v3514_v15  ;;  %v3521_v7 = vmul.f32 %v3519_v5, %v3476_v38  ;;  %v3491_v45 = vadd.f32 %v4097_v56, %v3653_v57 }
0x2fb6   :  { %v3485_v32 = vpop.f32.mrf.mxu1 }
0x2fb7   :  { %3533 = vst.msk [vmem:[%s5592_s19 + $0x8] sm:$0xff] %vm3523_vm7, %v3532_v27  ;;  %v3522_v20 = vadd.f32 %v3521_v7, %v3514_v15  ;;  %v3549_v59 = vmul.f32 %v3547_v2, %v3491_v45  ;;  %v3486_v39 = vadd.f32 %v3653_v57, %v3485_v32 }
0x2fb8   :  { %v4100_v4 = vpop.f32.mrf.mxu1 }
0x2fb9   :  { %3524 = vst.msk [vmem:[%s5592_s19] sm:$0xff] %vm3523_vm7, %v3522_v20  ;;  %v3550_v1 = vadd.f32 %v3549_v59, %v3514_v15  ;;  %v3540_v40 = vmul.f32 %v3538_v44, %v3486_v39  ;;  %v3501_v8 = vadd.f32 %v4100_v4, %v3653_v57 }
0x2fba   :  { %v3495_v12 = vpop.f32.mrf.mxu1 }
0x2fbb   :  { %3551 = vst.msk [vmem:[%s5592_s19 + $0x18] sm:$0xff] %vm3523_vm7, %v3550_v1  ;;  %v3541_v47 = vadd.f32 %v3540_v40, %v3514_v15  ;;  %v3567_v46 = vmul.f32 %v3565_v50, %v3501_v8  ;;  %v3496_v23 = vadd.f32 %v3653_v57, %v3495_v12 }
0x2fbc   :  { %v4103_v60 = vpop.f32.mrf.mxu1 }
0x2fbd   :  { %3542 = vst.msk [vmem:[%s5592_s19 + $0x10] sm:$0xff] %vm3523_vm7, %v3541_v47  ;;  %v3568_v14 = vadd.f32 %v3567_v46, %v3514_v15  ;;  %v3558_v42 = vmul.f32 %v3556_v9, %v3496_v23  ;;  %v3511_v43 = vadd.f32 %v4103_v60, %v3653_v57 }
0x2fbe   :  { %v3505_v24 = vpop.f32.mrf.mxu1 }
0x2fbf   :  { %3569 = vst.msk [vmem:[%s5592_s19 + $0x28] sm:$0xff] %vm3523_vm7, %v3568_v14  ;;  %v3559_v31 = vadd.f32 %v3558_v42, %v3514_v15  ;;  %v3585_v17 = vmul.f32 %v3583_v33, %v3511_v43  ;;  %v3506_v28 = vadd.f32 %v3653_v57, %v3505_v24 }
0x2fc1   :  { %3560 = vst.msk [vmem:[%s5592_s19 + $0x20] sm:$0xff] %vm3523_vm7, %v3559_v31  ;;  %v3586_v41 = vadd.f32 %v3585_v17, %v3514_v15  ;;  %v3576_v11 = vmul.f32 %v3574_v51, %v3506_v28 }
0x2fc3   :  { %3587 = vst.msk [vmem:[%s5592_s19 + $0x38] sm:$0xff] %vm3523_vm7, %v3586_v41  ;;  %v3577_v37 = vadd.f32 %v3576_v11, %v3514_v15 }
0x2fc5   :  { %3578 = vst.msk [vmem:[%s5592_s19 + $0x30] sm:$0xff] %vm3523_vm7, %v3577_v37 }

</bundles_post_ra>
